<compile_context>
chip_gen: v5e
topology: v5e:2x2
jax: 0.10.0
libtpu: 0.0.40
codegen_flags: <defaults>
</compile_context>

<pallas_src>
import math

import jax
import jax.numpy as jnp
from jax import lax
from jax.experimental import pallas as pl
from jax.experimental.pallas import tpu as pltpu


# ----------------------------------------------------------------------------
# Pallas kernel (one batch image per grid step)
# ----------------------------------------------------------------------------
def svd_block_kernel(x_ref, w1_ref, b1_ref, wf_ref, bf_ref, o_ref,
                     xpad_ref, h1pad_ref, p1_ref, p2_ref):
    _, H, W, Cin = x_ref.shape
    Cout = o_ref.shape[-1]
    Hh, Wh = H // 2, W // 2
    Hp, Wp = H + 2, W + 2

    # ---- in-kernel zero padding of x: zero only the border ring, write the
    # ---- interior exactly once.
    xpad_ref[:, 0:1, :, :] = jnp.zeros((1, 1, Wp, Cin), jnp.float32)
    xpad_ref[:, Hp - 1:Hp, :, :] = jnp.zeros((1, 1, Wp, Cin), jnp.float32)
    xpad_ref[:, 1:H + 1, 0:1, :] = jnp.zeros((1, H, 1, Cin), jnp.float32)
    xpad_ref[:, 1:H + 1, Wp - 1:Wp, :] = jnp.zeros((1, H, 1, Cin), jnp.float32)
    xpad_ref[:, 1:H + 1, 1:W + 1, :] = x_ref[...]

    # ---- conv1 as ONE im2col matmul: p1 (H*W, 9*Cin) @ w1 (9*Cin, Cout) ------
    for dy in range(3):
        for dx in range(3):
            tap = xpad_ref[:, dy:dy + H, dx:dx + W, :]          # (1, H, W, Cin)
            col = (dy * 3 + dx) * Cin
            p1_ref[:, col:col + Cin] = tap.reshape(H * W, Cin)  # free reshape
    h1 = jnp.dot(p1_ref[...].astype(jnp.bfloat16), w1_ref[...],
                 preferred_element_type=jnp.float32)
    h1 = jnp.maximum(h1 + b1_ref[...], 0.0)                     # (H*W, Cout) f32

    # ---- pad h1 (border ring only) for the pool-folded conv2 -----------------
    h1pad_ref[:, 0:1, :, :] = jnp.zeros((1, 1, Wp, Cout), jnp.float32)
    h1pad_ref[:, Hp - 1:Hp, :, :] = jnp.zeros((1, 1, Wp, Cout), jnp.float32)
    h1pad_ref[:, 1:H + 1, 0:1, :] = jnp.zeros((1, H, 1, Cout), jnp.float32)
    h1pad_ref[:, 1:H + 1, Wp - 1:Wp, :] = jnp.zeros((1, H, 1, Cout), jnp.float32)
    h1pad_ref[:, 1:H + 1, 1:W + 1, :] = h1.reshape(1, H, W, Cout)

    # ---- fused residual + shortcut patch matrix ------------------------------
    # residual taps: 4x4 / stride-2 windows of padded h1 (pool folded into W2)
    for ry in range(4):
        for rx in range(4):
            tap = h1pad_ref[:, pl.ds(ry, Hh, stride=2),
                            pl.ds(rx, Wh, stride=2), :]         # (1, Hh, Wh, Cout)
            col = (ry * 4 + rx) * Cout
            p2_ref[:, col:col + Cout] = tap.reshape(Hh * Wh, Cout)
    # shortcut taps: 2x2 / stride-2 windows of x (pool folded into 0.25*wsc);
    # +1 offsets skip the pad ring of xpad.
    sc_base = 16 * Cout
    for dr in range(2):
        for dc in range(2):
            tap = xpad_ref[:, pl.ds(1 + dr, Hh, stride=2),
                           pl.ds(1 + dc, Wh, stride=2), :]      # (1, Hh, Wh, Cin)
            col = sc_base + (dr * 2 + dc) * Cin
            p2_ref[:, col:col + Cin] = tap.reshape(Hh * Wh, Cin)

    # ---- ONE matmul produces the whole output tile: K = 16*Cout + 4*Cin ------
    out = jnp.dot(p2_ref[...].astype(jnp.bfloat16), wf_ref[...],
                  preferred_element_type=jnp.float32) + bf_ref[...]
    o_ref[...] = out.reshape(1, Hh, Wh, Cout).astype(o_ref.dtype)


# ----------------------------------------------------------------------------
# Wrapper: weight folding (pool -> conv), branch fusion, grid setup
# ----------------------------------------------------------------------------
def _fold_pool_into_conv3x3(w2):
    """avg_pool2d(conv3x3_pad1(h), 2)  ==  conv4x4_stride2_pad1(h, W_eff)."""
    cin, cout = w2.shape[2], w2.shape[3]
    w_eff = jnp.zeros((4, 4, cin, cout), w2.dtype)
    for dr in (0, 1):
        for dc in (0, 1):
            w_eff = w_eff.at[dr:dr + 3, dc:dc + 3].add(w2)
    return 0.25 * w_eff


def svd_optimized_block(x_nchw, params):
    """x_nchw: (N, Cin, H, W) f32 -> (N, Cout, H//2, W//2) f32."""
    w1, b1, w2, b2, wsc, bsc = params        # w1/w2: HWIO, wsc: (Cin, Cout)
    N, Cin, H, W = x_nchw.shape
    Cout = w1.shape[-1]
    assert H % 2 == 0 and W % 2 == 0, "pooling math assumes even H, W"
    Hh, Wh = H // 2, W // 2

    x = jnp.transpose(x_nchw, (0, 2, 3, 1))                      # NHWC, unpadded

    # conv1 im2col weight, rows ordered (dy, dx, ci)
    w1_mat = w1.reshape(9 * Cin, Cout).astype(jnp.bfloat16)

    # residual: conv2 with the pool folded in -> (4,4,Cout,Cout), rows (ry,rx,ci)
    w2_mat = _fold_pool_into_conv3x3(w2).reshape(16 * Cout, Cout)
    # shortcut: pool + 1x1 conv -> 2x2/stride-2 conv with 0.25*wsc on every tap
    wsc_mat = jnp.tile(0.25 * wsc, (4, 1))                       # (4*Cin, Cout)
    # both branches share output pixels & channels -> fuse into one matmul
    wf_mat = jnp.concatenate([w2_mat, wsc_mat], axis=0).astype(jnp.bfloat16)

    b1_row = b1.reshape(1, Cout).astype(jnp.float32)
    bf_row = (b2 + bsc).reshape(1, Cout).astype(jnp.float32)

    out_nhwc = pl.pallas_call(
        svd_block_kernel,
        out_shape=jax.ShapeDtypeStruct((N, Hh, Wh, Cout), jnp.float32),
        grid=(N,),
        in_specs=[
            pl.BlockSpec((1, H, W, Cin), lambda n: (n, 0, 0, 0)),
            pl.BlockSpec(w1_mat.shape, lambda n: (0, 0)),
            pl.BlockSpec(b1_row.shape, lambda n: (0, 0)),
            pl.BlockSpec(wf_mat.shape, lambda n: (0, 0)),
            pl.BlockSpec(bf_row.shape, lambda n: (0, 0)),
        ],
        out_specs=pl.BlockSpec((1, Hh, Wh, Cout), lambda n: (n, 0, 0, 0)),
        scratch_shapes=[
            pltpu.VMEM((1, H + 2, W + 2, Cin), jnp.float32),     # padded x
            pltpu.VMEM((1, H + 2, W + 2, Cout), jnp.float32),    # padded relu(c1(x))
            pltpu.VMEM((H * W, 9 * Cin), jnp.float32),           # conv1 im2col
            pltpu.VMEM((Hh * Wh, 16 * Cout + 4 * Cin), jnp.float32),  # fused im2col
        ],
        compiler_params=pltpu.CompilerParams(
            dimension_semantics=("parallel",),       # shard batch across TCs (v7x)
            vmem_limit_bytes=64 * 1024 * 1024),
    )(x, w1_mat, b1_row, wf_mat, bf_row)

    return jnp.transpose(out_nhwc, (0, 3, 1, 2))                 # back to NCHW


# ----------------------------------------------------------------------------
# Deterministic SVD-parameterized conv weights (as in SVDConv2d.__init__)
# ----------------------------------------------------------------------------
def make_svd_conv_params(key, in_ch, out_ch, ksize):
    fan = in_ch * ksize * ksize
    r = min(out_ch, fan)
    kU, kS, kV, kb = jax.random.split(key, 4)
    U = jax.random.normal(kU, (out_ch, r), jnp.float32) / math.sqrt(r)
    S = jax.random.uniform(kS, (r,), jnp.float32, minval=0.5, maxval=1.5)
    V = jax.random.normal(kV, (r, fan), jnp.float32) / math.sqrt(fan)
    w_oif = (U * S) @ V                                        # (out, in*k*k)
    w_oikk = w_oif.reshape(out_ch, in_ch, ksize, ksize)        # PyTorch OIHW
    w_hwio = jnp.transpose(w_oikk, (2, 3, 1, 0))               # HWIO for NHWC conv
    b = 0.1 * jax.random.normal(kb, (out_ch,), jnp.float32)
    return w_hwio, b


# ----------------------------------------------------------------------------
# Pure-JAX reference (unfused convs + explicit avg-pool) for correctness check
# ----------------------------------------------------------------------------
def _ref_pool2(x):
    return 0.25 * (x[:, 0::2, 0::2, :] + x[:, 1::2, 0::2, :]
                   + x[:, 0::2, 1::2, :] + x[:, 1::2, 1::2, :])


def reference_forward(x_nchw, params):
    w1, b1, w2, b2, wsc, bsc = params
    x = jnp.transpose(x_nchw, (0, 2, 3, 1))

    def conv(h, w, b, pad):
        y = lax.conv_general_dilated(
            h, w, window_strides=(1, 1), padding=[(pad, pad), (pad, pad)],
            dimension_numbers=("NHWC", "HWIO", "NHWC"))
        return y + b

    h = jnp.maximum(conv(x, w1, b1, 1), 0.0)
    res = _ref_pool2(conv(h, w2, b2, 1))
    sc = conv(_ref_pool2(x), wsc[None, None], bsc, 0)
    return jnp.transpose(sc + res, (0, 3, 1, 2))


# ----------------------------------------------------------------------------
if __name__ == "__main__":
    N, IN_CH, OUT_CH, H, W = 2, 4, 8, 16, 16

    key = jax.random.PRNGKey(0)
    kx, k1, k2, k3 = jax.random.split(key, 4)

    x = jax.random.normal(kx, (N, IN_CH, H, W), jnp.float32)

    w1, b1 = make_svd_conv_params(k1, IN_CH, OUT_CH, 3)        # c1: 3x3, pad 1
    w2, b2 = make_svd_conv_params(k2, OUT_CH, OUT_CH, 3)       # c2: 3x3, pad 1
    wsc4, bsc = make_svd_conv_params(k3, IN_CH, OUT_CH, 1)     # c_sc: 1x1, pad 0
    wsc = wsc4[0, 0]                                           # (Cin, Cout)
    params = (w1, b1, w2, b2, wsc, bsc)

    out = svd_optimized_block(x, params)
    out = jax.block_until_ready(out)

    ref = reference_forward(x, params)
    assert out.shape == (N, OUT_CH, H // 2, W // 2), out.shape
    # bf16 MXU inputs with f32 accumulation -> allow a few % numerical slack.
    assert jnp.allclose(out, ref, rtol=5e-2, atol=5e-2), (
        float(jnp.max(jnp.abs(out - ref))))

    print("KERNEL_OK")
</pallas_src>

<mosaic_0001>
module attributes {stable_mosaic.version = 11 : i64} {
  func.func @svd_block_kernel(%arg0: i32, %arg1: memref<1x16x16x4xf32, #tpu.memory_space<vmem>>, %arg2: memref<36x8xbf16, #tpu.memory_space<vmem>>, %arg3: memref<1x8xf32, #tpu.memory_space<vmem>>, %arg4: memref<144x8xbf16, #tpu.memory_space<vmem>>, %arg5: memref<1x8xf32, #tpu.memory_space<vmem>>, %arg6: memref<1x8x8x8xf32, #tpu.memory_space<vmem>>, %arg7: memref<1x18x18x4xf32, #tpu.memory_space<vmem>>, %arg8: memref<1x18x18x8xf32, #tpu.memory_space<vmem>>, %arg9: memref<256x36xf32, #tpu.memory_space<vmem>>, %arg10: memref<64x144xf32, #tpu.memory_space<vmem>>) attributes {dimension_semantics = [#tpu.dimension_semantics<parallel>], iteration_bounds = array<i64: 2>, scalar_prefetch = 0 : i64, scratch_operands = 4 : i64, tpu.core_type = #tpu.core_type<tc>, window_params = [{transform_indices = @transform_0, window_bounds = array<i64: 1, 16, 16, 4>}, {pipeline_mode = #tpu.pipeline_mode<synchronous>, transform_indices = @transform_1, window_bounds = array<i64: 36, 8>}, {pipeline_mode = #tpu.pipeline_mode<synchronous>, transform_indices = @transform_2, window_bounds = array<i64: 1, 8>}, {pipeline_mode = #tpu.pipeline_mode<synchronous>, transform_indices = @transform_3, window_bounds = array<i64: 144, 8>}, {pipeline_mode = #tpu.pipeline_mode<synchronous>, transform_indices = @transform_4, window_bounds = array<i64: 1, 8>}, {transform_indices = @transform_5, window_bounds = array<i64: 1, 8, 8, 8>}]} {
    %cst = arith.constant 0.000000e+00 : f32
    %0 = vector.broadcast %cst : f32 to vector<1x1x18x4xf32>
    %c0 = arith.constant 0 : index
    %c0_0 = arith.constant 0 : index
    %c0_1 = arith.constant 0 : index
    %c0_2 = arith.constant 0 : index
    %1 = vector.load %arg7[%c0, %c0_0, %c0_1, %c0_2] : memref<1x18x18x4xf32, #tpu.memory_space<vmem>>, vector<1x1x18x4xf32>
    tpu.vector_store %arg7[%c0, %c0_0, %c0_1, %c0_2], %0 {strides = array<i32>} : memref<1x18x18x4xf32, #tpu.memory_space<vmem>>, vector<1x1x18x4xf32>,
    %cst_3 = arith.constant 0.000000e+00 : f32
    %2 = vector.broadcast %cst_3 : f32 to vector<1x1x18x4xf32>
    %c0_4 = arith.constant 0 : index
    %c17 = arith.constant 17 : index
    %c0_5 = arith.constant 0 : index
    %c0_6 = arith.constant 0 : index
    %3 = vector.load %arg7[%c0_4, %c17, %c0_5, %c0_6] : memref<1x18x18x4xf32, #tpu.memory_space<vmem>>, vector<1x1x18x4xf32>
    tpu.vector_store %arg7[%c0_4, %c17, %c0_5, %c0_6], %2 {strides = array<i32>} : memref<1x18x18x4xf32, #tpu.memory_space<vmem>>, vector<1x1x18x4xf32>,
    %cst_7 = arith.constant 0.000000e+00 : f32
    %4 = vector.broadcast %cst_7 : f32 to vector<1x16x1x4xf32>
    %c0_8 = arith.constant 0 : index
    %c1 = arith.constant 1 : index
    %c0_9 = arith.constant 0 : index
    %c0_10 = arith.constant 0 : index
    %5 = vector.load %arg7[%c0_8, %c1, %c0_9, %c0_10] : memref<1x18x18x4xf32, #tpu.memory_space<vmem>>, vector<1x16x1x4xf32>
    tpu.vector_store %arg7[%c0_8, %c1, %c0_9, %c0_10], %4 {strides = array<i32>} : memref<1x18x18x4xf32, #tpu.memory_space<vmem>>, vector<1x16x1x4xf32>,
    %cst_11 = arith.constant 0.000000e+00 : f32
    %6 = vector.broadcast %cst_11 : f32 to vector<1x16x1x4xf32>
    %c0_12 = arith.constant 0 : index
    %c1_13 = arith.constant 1 : index
    %c17_14 = arith.constant 17 : index
    %c0_15 = arith.constant 0 : index
    %7 = vector.load %arg7[%c0_12, %c1_13, %c17_14, %c0_15] : memref<1x18x18x4xf32, #tpu.memory_space<vmem>>, vector<1x16x1x4xf32>
    tpu.vector_store %arg7[%c0_12, %c1_13, %c17_14, %c0_15], %6 {strides = array<i32>} : memref<1x18x18x4xf32, #tpu.memory_space<vmem>>, vector<1x16x1x4xf32>,
    %c0_16 = arith.constant 0 : index
    %c0_17 = arith.constant 0 : index
    %c0_18 = arith.constant 0 : index
    %c0_19 = arith.constant 0 : index
    %8 = vector.load %arg1[%c0_16, %c0_17, %c0_18, %c0_19] : memref<1x16x16x4xf32, #tpu.memory_space<vmem>>, vector<1x16x16x4xf32>
    %c0_20 = arith.constant 0 : index
    %c1_21 = arith.constant 1 : index
    %c1_22 = arith.constant 1 : index
    %c0_23 = arith.constant 0 : index
    %9 = vector.load %arg7[%c0_20, %c1_21, %c1_22, %c0_23] : memref<1x18x18x4xf32, #tpu.memory_space<vmem>>, vector<1x16x16x4xf32>
    tpu.vector_store %arg7[%c0_20, %c1_21, %c1_22, %c0_23], %8 {strides = array<i32>} : memref<1x18x18x4xf32, #tpu.memory_space<vmem>>, vector<1x16x16x4xf32>,
    %c0_24 = arith.constant 0 : index
    %c0_25 = arith.constant 0 : index
    %c0_26 = arith.constant 0 : index
    %c0_27 = arith.constant 0 : index
    %10 = vector.load %arg7[%c0_24, %c0_25, %c0_26, %c0_27] : memref<1x18x18x4xf32, #tpu.memory_space<vmem>>, vector<1x16x16x4xf32>
    %11 = vector.shape_cast %10 : vector<1x16x16x4xf32> to vector<256x4xf32>
    %c0_28 = arith.constant 0 : index
    %c0_29 = arith.constant 0 : index
    %12 = vector.load %arg9[%c0_28, %c0_29] : memref<256x36xf32, #tpu.memory_space<vmem>>, vector<256x4xf32>
    tpu.vector_store %arg9[%c0_28, %c0_29], %11 {strides = array<i32>} : memref<256x36xf32, #tpu.memory_space<vmem>>, vector<256x4xf32>,
    %c0_30 = arith.constant 0 : index
    %c0_31 = arith.constant 0 : index
    %c1_32 = arith.constant 1 : index
    %c0_33 = arith.constant 0 : index
    %13 = vector.load %arg7[%c0_30, %c0_31, %c1_32, %c0_33] : memref<1x18x18x4xf32, #tpu.memory_space<vmem>>, vector<1x16x16x4xf32>
    %14 = vector.shape_cast %13 : vector<1x16x16x4xf32> to vector<256x4xf32>
    %c0_34 = arith.constant 0 : index
    %c4 = arith.constant 4 : index
    %15 = vector.load %arg9[%c0_34, %c4] : memref<256x36xf32, #tpu.memory_space<vmem>>, vector<256x4xf32>
    tpu.vector_store %arg9[%c0_34, %c4], %14 {strides = array<i32>} : memref<256x36xf32, #tpu.memory_space<vmem>>, vector<256x4xf32>,
    %c0_35 = arith.constant 0 : index
    %c0_36 = arith.constant 0 : index
    %c2 = arith.constant 2 : index
    %c0_37 = arith.constant 0 : index
    %16 = vector.load %arg7[%c0_35, %c0_36, %c2, %c0_37] : memref<1x18x18x4xf32, #tpu.memory_space<vmem>>, vector<1x16x16x4xf32>
    %17 = vector.shape_cast %16 : vector<1x16x16x4xf32> to vector<256x4xf32>
    %c0_38 = arith.constant 0 : index
    %c8 = arith.constant 8 : index
    %18 = vector.load %arg9[%c0_38, %c8] : memref<256x36xf32, #tpu.memory_space<vmem>>, vector<256x4xf32>
    tpu.vector_store %arg9[%c0_38, %c8], %17 {strides = array<i32>} : memref<256x36xf32, #tpu.memory_space<vmem>>, vector<256x4xf32>,
    %c0_39 = arith.constant 0 : index
    %c1_40 = arith.constant 1 : index
    %c0_41 = arith.constant 0 : index
    %c0_42 = arith.constant 0 : index
    %19 = vector.load %arg7[%c0_39, %c1_40, %c0_41, %c0_42] : memref<1x18x18x4xf32, #tpu.memory_space<vmem>>, vector<1x16x16x4xf32>
    %20 = vector.shape_cast %19 : vector<1x16x16x4xf32> to vector<256x4xf32>
    %c0_43 = arith.constant 0 : index
    %c12 = arith.constant 12 : index
    %21 = vector.load %arg9[%c0_43, %c12] : memref<256x36xf32, #tpu.memory_space<vmem>>, vector<256x4xf32>
    tpu.vector_store %arg9[%c0_43, %c12], %20 {strides = array<i32>} : memref<256x36xf32, #tpu.memory_space<vmem>>, vector<256x4xf32>,
    %c0_44 = arith.constant 0 : index
    %c1_45 = arith.constant 1 : index
    %c1_46 = arith.constant 1 : index
    %c0_47 = arith.constant 0 : index
    %22 = vector.load %arg7[%c0_44, %c1_45, %c1_46, %c0_47] : memref<1x18x18x4xf32, #tpu.memory_space<vmem>>, vector<1x16x16x4xf32>
    %23 = vector.shape_cast %22 : vector<1x16x16x4xf32> to vector<256x4xf32>
    %c0_48 = arith.constant 0 : index
    %c16 = arith.constant 16 : index
    %24 = vector.load %arg9[%c0_48, %c16] : memref<256x36xf32, #tpu.memory_space<vmem>>, vector<256x4xf32>
    tpu.vector_store %arg9[%c0_48, %c16], %23 {strides = array<i32>} : memref<256x36xf32, #tpu.memory_space<vmem>>, vector<256x4xf32>,
    %c0_49 = arith.constant 0 : index
    %c1_50 = arith.constant 1 : index
    %c2_51 = arith.constant 2 : index
    %c0_52 = arith.constant 0 : index
    %25 = vector.load %arg7[%c0_49, %c1_50, %c2_51, %c0_52] : memref<1x18x18x4xf32, #tpu.memory_space<vmem>>, vector<1x16x16x4xf32>
    %26 = vector.shape_cast %25 : vector<1x16x16x4xf32> to vector<256x4xf32>
    %c0_53 = arith.constant 0 : index
    %c20 = arith.constant 20 : index
    %27 = vector.load %arg9[%c0_53, %c20] : memref<256x36xf32, #tpu.memory_space<vmem>>, vector<256x4xf32>
    tpu.vector_store %arg9[%c0_53, %c20], %26 {strides = array<i32>} : memref<256x36xf32, #tpu.memory_space<vmem>>, vector<256x4xf32>,
    %c0_54 = arith.constant 0 : index
    %c2_55 = arith.constant 2 : index
    %c0_56 = arith.constant 0 : index
    %c0_57 = arith.constant 0 : index
    %28 = vector.load %arg7[%c0_54, %c2_55, %c0_56, %c0_57] : memref<1x18x18x4xf32, #tpu.memory_space<vmem>>, vector<1x16x16x4xf32>
    %29 = vector.shape_cast %28 : vector<1x16x16x4xf32> to vector<256x4xf32>
    %c0_58 = arith.constant 0 : index
    %c24 = arith.constant 24 : index
    %30 = vector.load %arg9[%c0_58, %c24] : memref<256x36xf32, #tpu.memory_space<vmem>>, vector<256x4xf32>
    tpu.vector_store %arg9[%c0_58, %c24], %29 {strides = array<i32>} : memref<256x36xf32, #tpu.memory_space<vmem>>, vector<256x4xf32>,
    %c0_59 = arith.constant 0 : index
    %c2_60 = arith.constant 2 : index
    %c1_61 = arith.constant 1 : index
    %c0_62 = arith.constant 0 : index
    %31 = vector.load %arg7[%c0_59, %c2_60, %c1_61, %c0_62] : memref<1x18x18x4xf32, #tpu.memory_space<vmem>>, vector<1x16x16x4xf32>
    %32 = vector.shape_cast %31 : vector<1x16x16x4xf32> to vector<256x4xf32>
    %c0_63 = arith.constant 0 : index
    %c28 = arith.constant 28 : index
    %33 = vector.load %arg9[%c0_63, %c28] : memref<256x36xf32, #tpu.memory_space<vmem>>, vector<256x4xf32>
    tpu.vector_store %arg9[%c0_63, %c28], %32 {strides = array<i32>} : memref<256x36xf32, #tpu.memory_space<vmem>>, vector<256x4xf32>,
    %c0_64 = arith.constant 0 : index
    %c2_65 = arith.constant 2 : index
    %c2_66 = arith.constant 2 : index
    %c0_67 = arith.constant 0 : index
    %34 = vector.load %arg7[%c0_64, %c2_65, %c2_66, %c0_67] : memref<1x18x18x4xf32, #tpu.memory_space<vmem>>, vector<1x16x16x4xf32>
    %35 = vector.shape_cast %34 : vector<1x16x16x4xf32> to vector<256x4xf32>
    %c0_68 = arith.constant 0 : index
    %c32 = arith.constant 32 : index
    %36 = vector.load %arg9[%c0_68, %c32] : memref<256x36xf32, #tpu.memory_space<vmem>>, vector<256x4xf32>
    tpu.vector_store %arg9[%c0_68, %c32], %35 {strides = array<i32>} : memref<256x36xf32, #tpu.memory_space<vmem>>, vector<256x4xf32>,
    %c0_69 = arith.constant 0 : index
    %c0_70 = arith.constant 0 : index
    %37 = vector.load %arg9[%c0_69, %c0_70] : memref<256x36xf32, #tpu.memory_space<vmem>>, vector<256x36xf32>
    %38 = arith.truncf %37 : vector<256x36xf32> to vector<256x36xbf16>
    %c0_71 = arith.constant 0 : index
    %c0_72 = arith.constant 0 : index
    %39 = vector.load %arg2[%c0_71, %c0_72] : memref<36x8xbf16, #tpu.memory_space<vmem>>, vector<36x8xbf16>
    %cst_73 = arith.constant dense<0.000000e+00> : vector<256x8xf32>
    %40 = tpu.matmul %38, %39, %cst_73 {dimension_numbers = #tpu.dot_dimension_numbers<[1], [0], [0], [1], [0, 0, 1, 1], [], []>} : vector<256x36xbf16>, vector<36x8xbf16>, vector<256x8xf32> -> vector<256x8xf32>
    %c0_74 = arith.constant 0 : index
    %c0_75 = arith.constant 0 : index
    %41 = vector.load %arg3[%c0_74, %c0_75] : memref<1x8xf32, #tpu.memory_space<vmem>>, vector<1x8xf32>
    %42 = vector.broadcast %41 : vector<1x8xf32> to vector<256x8xf32>
    %43 = arith.addf %40, %42 : vector<256x8xf32>
    %cst_76 = arith.constant 0.000000e+00 : f32
    %44 = vector.broadcast %cst_76 : f32 to vector<256x8xf32>
    %45 = arith.maximumf %43, %44 : vector<256x8xf32>
    %cst_77 = arith.constant 0.000000e+00 : f32
    %46 = vector.broadcast %cst_77 : f32 to vector<1x1x18x8xf32>
    %c0_78 = arith.constant 0 : index
    %c0_79 = arith.constant 0 : index
    %c0_80 = arith.constant 0 : index
    %c0_81 = arith.constant 0 : index
    %47 = vector.load %arg8[%c0_78, %c0_79, %c0_80, %c0_81] : memref<1x18x18x8xf32, #tpu.memory_space<vmem>>, vector<1x1x18x8xf32>
    tpu.vector_store %arg8[%c0_78, %c0_79, %c0_80, %c0_81], %46 {strides = array<i32>} : memref<1x18x18x8xf32, #tpu.memory_space<vmem>>, vector<1x1x18x8xf32>,
    %cst_82 = arith.constant 0.000000e+00 : f32
    %48 = vector.broadcast %cst_82 : f32 to vector<1x1x18x8xf32>
    %c0_83 = arith.constant 0 : index
    %c17_84 = arith.constant 17 : index
    %c0_85 = arith.constant 0 : index
    %c0_86 = arith.constant 0 : index
    %49 = vector.load %arg8[%c0_83, %c17_84, %c0_85, %c0_86] : memref<1x18x18x8xf32, #tpu.memory_space<vmem>>, vector<1x1x18x8xf32>
    tpu.vector_store %arg8[%c0_83, %c17_84, %c0_85, %c0_86], %48 {strides = array<i32>} : memref<1x18x18x8xf32, #tpu.memory_space<vmem>>, vector<1x1x18x8xf32>,
    %cst_87 = arith.constant 0.000000e+00 : f32
    %50 = vector.broadcast %cst_87 : f32 to vector<1x16x1x8xf32>
    %c0_88 = arith.constant 0 : index
    %c1_89 = arith.constant 1 : index
    %c0_90 = arith.constant 0 : index
    %c0_91 = arith.constant 0 : index
    %51 = vector.load %arg8[%c0_88, %c1_89, %c0_90, %c0_91] : memref<1x18x18x8xf32, #tpu.memory_space<vmem>>, vector<1x16x1x8xf32>
    tpu.vector_store %arg8[%c0_88, %c1_89, %c0_90, %c0_91], %50 {strides = array<i32>} : memref<1x18x18x8xf32, #tpu.memory_space<vmem>>, vector<1x16x1x8xf32>,
    %cst_92 = arith.constant 0.000000e+00 : f32
    %52 = vector.broadcast %cst_92 : f32 to vector<1x16x1x8xf32>
    %c0_93 = arith.constant 0 : index
    %c1_94 = arith.constant 1 : index
    %c17_95 = arith.constant 17 : index
    %c0_96 = arith.constant 0 : index
    %53 = vector.load %arg8[%c0_93, %c1_94, %c17_95, %c0_96] : memref<1x18x18x8xf32, #tpu.memory_space<vmem>>, vector<1x16x1x8xf32>
    tpu.vector_store %arg8[%c0_93, %c1_94, %c17_95, %c0_96], %52 {strides = array<i32>} : memref<1x18x18x8xf32, #tpu.memory_space<vmem>>, vector<1x16x1x8xf32>,
    %54 = vector.shape_cast %45 : vector<256x8xf32> to vector<1x16x16x8xf32>
    %c0_97 = arith.constant 0 : index
    %c1_98 = arith.constant 1 : index
    %c1_99 = arith.constant 1 : index
    %c0_100 = arith.constant 0 : index
    %55 = vector.load %arg8[%c0_97, %c1_98, %c1_99, %c0_100] : memref<1x18x18x8xf32, #tpu.memory_space<vmem>>, vector<1x16x16x8xf32>
    tpu.vector_store %arg8[%c0_97, %c1_98, %c1_99, %c0_100], %54 {strides = array<i32>} : memref<1x18x18x8xf32, #tpu.memory_space<vmem>>, vector<1x16x16x8xf32>,
    %c0_101 = arith.constant 0 : index
    %c0_102 = arith.constant 0 : index
    %c0_103 = arith.constant 0 : index
    %c0_104 = arith.constant 0 : index
    %56 = tpu.strided_load %arg8[%c0_101, %c0_102, %c0_103, %c0_104] {strides = array<i32: 1, 2, 2, 1>} : memref<1x18x18x8xf32, #tpu.memory_space<vmem>>, vector<1x8x8x8xf32>
    %57 = vector.shape_cast %56 : vector<1x8x8x8xf32> to vector<64x8xf32>
    %c0_105 = arith.constant 0 : index
    %c0_106 = arith.constant 0 : index
    %58 = vector.load %arg10[%c0_105, %c0_106] : memref<64x144xf32, #tpu.memory_space<vmem>>, vector<64x8xf32>
    tpu.vector_store %arg10[%c0_105, %c0_106], %57 {strides = array<i32>} : memref<64x144xf32, #tpu.memory_space<vmem>>, vector<64x8xf32>,
    %c0_107 = arith.constant 0 : index
    %c0_108 = arith.constant 0 : index
    %c1_109 = arith.constant 1 : index
    %c0_110 = arith.constant 0 : index
    %59 = tpu.strided_load %arg8[%c0_107, %c0_108, %c1_109, %c0_110] {strides = array<i32: 1, 2, 2, 1>} : memref<1x18x18x8xf32, #tpu.memory_space<vmem>>, vector<1x8x8x8xf32>
    %60 = vector.shape_cast %59 : vector<1x8x8x8xf32> to vector<64x8xf32>
    %c0_111 = arith.constant 0 : index
    %c8_112 = arith.constant 8 : index
    %61 = vector.load %arg10[%c0_111, %c8_112] : memref<64x144xf32, #tpu.memory_space<vmem>>, vector<64x8xf32>
    tpu.vector_store %arg10[%c0_111, %c8_112], %60 {strides = array<i32>} : memref<64x144xf32, #tpu.memory_space<vmem>>, vector<64x8xf32>,
    %c0_113 = arith.constant 0 : index
    %c0_114 = arith.constant 0 : index
    %c2_115 = arith.constant 2 : index
    %c0_116 = arith.constant 0 : index
    %62 = tpu.strided_load %arg8[%c0_113, %c0_114, %c2_115, %c0_116] {strides = array<i32: 1, 2, 2, 1>} : memref<1x18x18x8xf32, #tpu.memory_space<vmem>>, vector<1x8x8x8xf32>
    %63 = vector.shape_cast %62 : vector<1x8x8x8xf32> to vector<64x8xf32>
    %c0_117 = arith.constant 0 : index
    %c16_118 = arith.constant 16 : index
    %64 = vector.load %arg10[%c0_117, %c16_118] : memref<64x144xf32, #tpu.memory_space<vmem>>, vector<64x8xf32>
    tpu.vector_store %arg10[%c0_117, %c16_118], %63 {strides = array<i32>} : memref<64x144xf32, #tpu.memory_space<vmem>>, vector<64x8xf32>,
    %c0_119 = arith.constant 0 : index
    %c0_120 = arith.constant 0 : index
    %c3 = arith.constant 3 : index
    %c0_121 = arith.constant 0 : index
    %65 = tpu.strided_load %arg8[%c0_119, %c0_120, %c3, %c0_121] {strides = array<i32: 1, 2, 2, 1>} : memref<1x18x18x8xf32, #tpu.memory_space<vmem>>, vector<1x8x8x8xf32>
    %66 = vector.shape_cast %65 : vector<1x8x8x8xf32> to vector<64x8xf32>
    %c0_122 = arith.constant 0 : index
    %c24_123 = arith.constant 24 : index
    %67 = vector.load %arg10[%c0_122, %c24_123] : memref<64x144xf32, #tpu.memory_space<vmem>>, vector<64x8xf32>
    tpu.vector_store %arg10[%c0_122, %c24_123], %66 {strides = array<i32>} : memref<64x144xf32, #tpu.memory_space<vmem>>, vector<64x8xf32>,
    %c0_124 = arith.constant 0 : index
    %c1_125 = arith.constant 1 : index
    %c0_126 = arith.constant 0 : index
    %c0_127 = arith.constant 0 : index
    %68 = tpu.strided_load %arg8[%c0_124, %c1_125, %c0_126, %c0_127] {strides = array<i32: 1, 2, 2, 1>} : memref<1x18x18x8xf32, #tpu.memory_space<vmem>>, vector<1x8x8x8xf32>
    %69 = vector.shape_cast %68 : vector<1x8x8x8xf32> to vector<64x8xf32>
    %c0_128 = arith.constant 0 : index
    %c32_129 = arith.constant 32 : index
    %70 = vector.load %arg10[%c0_128, %c32_129] : memref<64x144xf32, #tpu.memory_space<vmem>>, vector<64x8xf32>
    tpu.vector_store %arg10[%c0_128, %c32_129], %69 {strides = array<i32>} : memref<64x144xf32, #tpu.memory_space<vmem>>, vector<64x8xf32>,
    %c0_130 = arith.constant 0 : index
    %c1_131 = arith.constant 1 : index
    %c1_132 = arith.constant 1 : index
    %c0_133 = arith.constant 0 : index
    %71 = tpu.strided_load %arg8[%c0_130, %c1_131, %c1_132, %c0_133] {strides = array<i32: 1, 2, 2, 1>} : memref<1x18x18x8xf32, #tpu.memory_space<vmem>>, vector<1x8x8x8xf32>
    %72 = vector.shape_cast %71 : vector<1x8x8x8xf32> to vector<64x8xf32>
    %c0_134 = arith.constant 0 : index
    %c40 = arith.constant 40 : index
    %73 = vector.load %arg10[%c0_134, %c40] : memref<64x144xf32, #tpu.memory_space<vmem>>, vector<64x8xf32>
    tpu.vector_store %arg10[%c0_134, %c40], %72 {strides = array<i32>} : memref<64x144xf32, #tpu.memory_space<vmem>>, vector<64x8xf32>,
    %c0_135 = arith.constant 0 : index
    %c1_136 = arith.constant 1 : index
    %c2_137 = arith.constant 2 : index
    %c0_138 = arith.constant 0 : index
    %74 = tpu.strided_load %arg8[%c0_135, %c1_136, %c2_137, %c0_138] {strides = array<i32: 1, 2, 2, 1>} : memref<1x18x18x8xf32, #tpu.memory_space<vmem>>, vector<1x8x8x8xf32>
    %75 = vector.shape_cast %74 : vector<1x8x8x8xf32> to vector<64x8xf32>
    %c0_139 = arith.constant 0 : index
    %c48 = arith.constant 48 : index
    %76 = vector.load %arg10[%c0_139, %c48] : memref<64x144xf32, #tpu.memory_space<vmem>>, vector<64x8xf32>
    tpu.vector_store %arg10[%c0_139, %c48], %75 {strides = array<i32>} : memref<64x144xf32, #tpu.memory_space<vmem>>, vector<64x8xf32>,
    %c0_140 = arith.constant 0 : index
    %c1_141 = arith.constant 1 : index
    %c3_142 = arith.constant 3 : index
    %c0_143 = arith.constant 0 : index
    %77 = tpu.strided_load %arg8[%c0_140, %c1_141, %c3_142, %c0_143] {strides = array<i32: 1, 2, 2, 1>} : memref<1x18x18x8xf32, #tpu.memory_space<vmem>>, vector<1x8x8x8xf32>
    %78 = vector.shape_cast %77 : vector<1x8x8x8xf32> to vector<64x8xf32>
    %c0_144 = arith.constant 0 : index
    %c56 = arith.constant 56 : index
    %79 = vector.load %arg10[%c0_144, %c56] : memref<64x144xf32, #tpu.memory_space<vmem>>, vector<64x8xf32>
    tpu.vector_store %arg10[%c0_144, %c56], %78 {strides = array<i32>} : memref<64x144xf32, #tpu.memory_space<vmem>>, vector<64x8xf32>,
    %c0_145 = arith.constant 0 : index
    %c2_146 = arith.constant 2 : index
    %c0_147 = arith.constant 0 : index
    %c0_148 = arith.constant 0 : index
    %80 = tpu.strided_load %arg8[%c0_145, %c2_146, %c0_147, %c0_148] {strides = array<i32: 1, 2, 2, 1>} : memref<1x18x18x8xf32, #tpu.memory_space<vmem>>, vector<1x8x8x8xf32>
    %81 = vector.shape_cast %80 : vector<1x8x8x8xf32> to vector<64x8xf32>
    %c0_149 = arith.constant 0 : index
    %c64 = arith.constant 64 : index
    %82 = vector.load %arg10[%c0_149, %c64] : memref<64x144xf32, #tpu.memory_space<vmem>>, vector<64x8xf32>
    tpu.vector_store %arg10[%c0_149, %c64], %81 {strides = array<i32>} : memref<64x144xf32, #tpu.memory_space<vmem>>, vector<64x8xf32>,
    %c0_150 = arith.constant 0 : index
    %c2_151 = arith.constant 2 : index
    %c1_152 = arith.constant 1 : index
    %c0_153 = arith.constant 0 : index
    %83 = tpu.strided_load %arg8[%c0_150, %c2_151, %c1_152, %c0_153] {strides = array<i32: 1, 2, 2, 1>} : memref<1x18x18x8xf32, #tpu.memory_space<vmem>>, vector<1x8x8x8xf32>
    %84 = vector.shape_cast %83 : vector<1x8x8x8xf32> to vector<64x8xf32>
    %c0_154 = arith.constant 0 : index
    %c72 = arith.constant 72 : index
    %85 = vector.load %arg10[%c0_154, %c72] : memref<64x144xf32, #tpu.memory_space<vmem>>, vector<64x8xf32>
    tpu.vector_store %arg10[%c0_154, %c72], %84 {strides = array<i32>} : memref<64x144xf32, #tpu.memory_space<vmem>>, vector<64x8xf32>,
    %c0_155 = arith.constant 0 : index
    %c2_156 = arith.constant 2 : index
    %c2_157 = arith.constant 2 : index
    %c0_158 = arith.constant 0 : index
    %86 = tpu.strided_load %arg8[%c0_155, %c2_156, %c2_157, %c0_158] {strides = array<i32: 1, 2, 2, 1>} : memref<1x18x18x8xf32, #tpu.memory_space<vmem>>, vector<1x8x8x8xf32>
    %87 = vector.shape_cast %86 : vector<1x8x8x8xf32> to vector<64x8xf32>
    %c0_159 = arith.constant 0 : index
    %c80 = arith.constant 80 : index
    %88 = vector.load %arg10[%c0_159, %c80] : memref<64x144xf32, #tpu.memory_space<vmem>>, vector<64x8xf32>
    tpu.vector_store %arg10[%c0_159, %c80], %87 {strides = array<i32>} : memref<64x144xf32, #tpu.memory_space<vmem>>, vector<64x8xf32>,
    %c0_160 = arith.constant 0 : index
    %c2_161 = arith.constant 2 : index
    %c3_162 = arith.constant 3 : index
    %c0_163 = arith.constant 0 : index
    %89 = tpu.strided_load %arg8[%c0_160, %c2_161, %c3_162, %c0_163] {strides = array<i32: 1, 2, 2, 1>} : memref<1x18x18x8xf32, #tpu.memory_space<vmem>>, vector<1x8x8x8xf32>
    %90 = vector.shape_cast %89 : vector<1x8x8x8xf32> to vector<64x8xf32>
    %c0_164 = arith.constant 0 : index
    %c88 = arith.constant 88 : index
    %91 = vector.load %arg10[%c0_164, %c88] : memref<64x144xf32, #tpu.memory_space<vmem>>, vector<64x8xf32>
    tpu.vector_store %arg10[%c0_164, %c88], %90 {strides = array<i32>} : memref<64x144xf32, #tpu.memory_space<vmem>>, vector<64x8xf32>,
    %c0_165 = arith.constant 0 : index
    %c3_166 = arith.constant 3 : index
    %c0_167 = arith.constant 0 : index
    %c0_168 = arith.constant 0 : index
    %92 = tpu.strided_load %arg8[%c0_165, %c3_166, %c0_167, %c0_168] {strides = array<i32: 1, 2, 2, 1>} : memref<1x18x18x8xf32, #tpu.memory_space<vmem>>, vector<1x8x8x8xf32>
    %93 = vector.shape_cast %92 : vector<1x8x8x8xf32> to vector<64x8xf32>
    %c0_169 = arith.constant 0 : index
    %c96 = arith.constant 96 : index
    %94 = vector.load %arg10[%c0_169, %c96] : memref<64x144xf32, #tpu.memory_space<vmem>>, vector<64x8xf32>
    tpu.vector_store %arg10[%c0_169, %c96], %93 {strides = array<i32>} : memref<64x144xf32, #tpu.memory_space<vmem>>, vector<64x8xf32>,
    %c0_170 = arith.constant 0 : index
    %c3_171 = arith.constant 3 : index
    %c1_172 = arith.constant 1 : index
    %c0_173 = arith.constant 0 : index
    %95 = tpu.strided_load %arg8[%c0_170, %c3_171, %c1_172, %c0_173] {strides = array<i32: 1, 2, 2, 1>} : memref<1x18x18x8xf32, #tpu.memory_space<vmem>>, vector<1x8x8x8xf32>
    %96 = vector.shape_cast %95 : vector<1x8x8x8xf32> to vector<64x8xf32>
    %c0_174 = arith.constant 0 : index
    %c104 = arith.constant 104 : index
    %97 = vector.load %arg10[%c0_174, %c104] : memref<64x144xf32, #tpu.memory_space<vmem>>, vector<64x8xf32>
    tpu.vector_store %arg10[%c0_174, %c104], %96 {strides = array<i32>} : memref<64x144xf32, #tpu.memory_space<vmem>>, vector<64x8xf32>,
    %c0_175 = arith.constant 0 : index
    %c3_176 = arith.constant 3 : index
    %c2_177 = arith.constant 2 : index
    %c0_178 = arith.constant 0 : index
    %98 = tpu.strided_load %arg8[%c0_175, %c3_176, %c2_177, %c0_178] {strides = array<i32: 1, 2, 2, 1>} : memref<1x18x18x8xf32, #tpu.memory_space<vmem>>, vector<1x8x8x8xf32>
    %99 = vector.shape_cast %98 : vector<1x8x8x8xf32> to vector<64x8xf32>
    %c0_179 = arith.constant 0 : index
    %c112 = arith.constant 112 : index
    %100 = vector.load %arg10[%c0_179, %c112] : memref<64x144xf32, #tpu.memory_space<vmem>>, vector<64x8xf32>
    tpu.vector_store %arg10[%c0_179, %c112], %99 {strides = array<i32>} : memref<64x144xf32, #tpu.memory_space<vmem>>, vector<64x8xf32>,
    %c0_180 = arith.constant 0 : index
    %c3_181 = arith.constant 3 : index
    %c3_182 = arith.constant 3 : index
    %c0_183 = arith.constant 0 : index
    %101 = tpu.strided_load %arg8[%c0_180, %c3_181, %c3_182, %c0_183] {strides = array<i32: 1, 2, 2, 1>} : memref<1x18x18x8xf32, #tpu.memory_space<vmem>>, vector<1x8x8x8xf32>
    %102 = vector.shape_cast %101 : vector<1x8x8x8xf32> to vector<64x8xf32>
    %c0_184 = arith.constant 0 : index
    %c120 = arith.constant 120 : index
    %103 = vector.load %arg10[%c0_184, %c120] : memref<64x144xf32, #tpu.memory_space<vmem>>, vector<64x8xf32>
    tpu.vector_store %arg10[%c0_184, %c120], %102 {strides = array<i32>} : memref<64x144xf32, #tpu.memory_space<vmem>>, vector<64x8xf32>,
    %c0_185 = arith.constant 0 : index
    %c1_186 = arith.constant 1 : index
    %c1_187 = arith.constant 1 : index
    %c0_188 = arith.constant 0 : index
    %104 = tpu.strided_load %arg7[%c0_185, %c1_186, %c1_187, %c0_188] {strides = array<i32: 1, 2, 2, 1>} : memref<1x18x18x4xf32, #tpu.memory_space<vmem>>, vector<1x8x8x4xf32>
    %105 = vector.shape_cast %104 : vector<1x8x8x4xf32> to vector<64x4xf32>
    %c0_189 = arith.constant 0 : index
    %c128 = arith.constant 128 : index
    %106 = vector.load %arg10[%c0_189, %c128] : memref<64x144xf32, #tpu.memory_space<vmem>>, vector<64x4xf32>
    tpu.vector_store %arg10[%c0_189, %c128], %105 {strides = array<i32>} : memref<64x144xf32, #tpu.memory_space<vmem>>, vector<64x4xf32>,
    %c0_190 = arith.constant 0 : index
    %c1_191 = arith.constant 1 : index
    %c2_192 = arith.constant 2 : index
    %c0_193 = arith.constant 0 : index
    %107 = tpu.strided_load %arg7[%c0_190, %c1_191, %c2_192, %c0_193] {strides = array<i32: 1, 2, 2, 1>} : memref<1x18x18x4xf32, #tpu.memory_space<vmem>>, vector<1x8x8x4xf32>
    %108 = vector.shape_cast %107 : vector<1x8x8x4xf32> to vector<64x4xf32>
    %c0_194 = arith.constant 0 : index
    %c132 = arith.constant 132 : index
    %109 = vector.load %arg10[%c0_194, %c132] : memref<64x144xf32, #tpu.memory_space<vmem>>, vector<64x4xf32>
    tpu.vector_store %arg10[%c0_194, %c132], %108 {strides = array<i32>} : memref<64x144xf32, #tpu.memory_space<vmem>>, vector<64x4xf32>,
    %c0_195 = arith.constant 0 : index
    %c2_196 = arith.constant 2 : index
    %c1_197 = arith.constant 1 : index
    %c0_198 = arith.constant 0 : index
    %110 = tpu.strided_load %arg7[%c0_195, %c2_196, %c1_197, %c0_198] {strides = array<i32: 1, 2, 2, 1>} : memref<1x18x18x4xf32, #tpu.memory_space<vmem>>, vector<1x8x8x4xf32>
    %111 = vector.shape_cast %110 : vector<1x8x8x4xf32> to vector<64x4xf32>
    %c0_199 = arith.constant 0 : index
    %c136 = arith.constant 136 : index
    %112 = vector.load %arg10[%c0_199, %c136] : memref<64x144xf32, #tpu.memory_space<vmem>>, vector<64x4xf32>
    tpu.vector_store %arg10[%c0_199, %c136], %111 {strides = array<i32>} : memref<64x144xf32, #tpu.memory_space<vmem>>, vector<64x4xf32>,
    %c0_200 = arith.constant 0 : index
    %c2_201 = arith.constant 2 : index
    %c2_202 = arith.constant 2 : index
    %c0_203 = arith.constant 0 : index
    %113 = tpu.strided_load %arg7[%c0_200, %c2_201, %c2_202, %c0_203] {strides = array<i32: 1, 2, 2, 1>} : memref<1x18x18x4xf32, #tpu.memory_space<vmem>>, vector<1x8x8x4xf32>
    %114 = vector.shape_cast %113 : vector<1x8x8x4xf32> to vector<64x4xf32>
    %c0_204 = arith.constant 0 : index
    %c140 = arith.constant 140 : index
    %115 = vector.load %arg10[%c0_204, %c140] : memref<64x144xf32, #tpu.memory_space<vmem>>, vector<64x4xf32>
    tpu.vector_store %arg10[%c0_204, %c140], %114 {strides = array<i32>} : memref<64x144xf32, #tpu.memory_space<vmem>>, vector<64x4xf32>,
    %c0_205 = arith.constant 0 : index
    %c0_206 = arith.constant 0 : index
    %116 = vector.load %arg10[%c0_205, %c0_206] : memref<64x144xf32, #tpu.memory_space<vmem>>, vector<64x144xf32>
    %117 = arith.truncf %116 : vector<64x144xf32> to vector<64x144xbf16>
    %c0_207 = arith.constant 0 : index
    %c0_208 = arith.constant 0 : index
    %118 = vector.load %arg4[%c0_207, %c0_208] : memref<144x8xbf16, #tpu.memory_space<vmem>>, vector<144x8xbf16>
    %cst_209 = arith.constant dense<0.000000e+00> : vector<64x8xf32>
    %119 = tpu.matmul %117, %118, %cst_209 {dimension_numbers = #tpu.dot_dimension_numbers<[1], [0], [0], [1], [0, 0, 1, 1], [], []>} : vector<64x144xbf16>, vector<144x8xbf16>, vector<64x8xf32> -> vector<64x8xf32>
    %c0_210 = arith.constant 0 : index
    %c0_211 = arith.constant 0 : index
    %120 = vector.load %arg5[%c0_210, %c0_211] : memref<1x8xf32, #tpu.memory_space<vmem>>, vector<1x8xf32>
    %121 = vector.broadcast %120 : vector<1x8xf32> to vector<64x8xf32>
    %122 = arith.addf %119, %121 : vector<64x8xf32>
    %123 = vector.shape_cast %122 : vector<64x8xf32> to vector<1x8x8x8xf32>
    %c0_212 = arith.constant 0 : index
    %c0_213 = arith.constant 0 : index
    %c0_214 = arith.constant 0 : index
    %c0_215 = arith.constant 0 : index
    %124 = vector.load %arg6[%c0_212, %c0_213, %c0_214, %c0_215] : memref<1x8x8x8xf32, #tpu.memory_space<vmem>>, vector<1x8x8x8xf32>
    tpu.vector_store %arg6[%c0_212, %c0_213, %c0_214, %c0_215], %123 {strides = array<i32>} : memref<1x8x8x8xf32, #tpu.memory_space<vmem>>, vector<1x8x8x8xf32>,
    return
  }
  func.func @transform_0(%arg0: i32) -> (i32, i32, i32, i32) {
    %c0_i32 = arith.constant 0 : i32
    %c0_i32_0 = arith.constant 0 : i32
    %c0_i32_1 = arith.constant 0 : i32
    %c0_i32_2 = arith.constant 0 : i32
    return %arg0, %c0_i32, %c0_i32_0, %c0_i32_1 : i32, i32, i32, i32
  }
  func.func @transform_1(%arg0: i32) -> (i32, i32) {
    %c0_i32 = arith.constant 0 : i32
    %c0_i32_0 = arith.constant 0 : i32
    %c0_i32_1 = arith.constant 0 : i32
    return %c0_i32, %c0_i32_0 : i32, i32
  }
  func.func @transform_2(%arg0: i32) -> (i32, i32) {
    %c0_i32 = arith.constant 0 : i32
    %c0_i32_0 = arith.constant 0 : i32
    %c0_i32_1 = arith.constant 0 : i32
    return %c0_i32, %c0_i32_0 : i32, i32
  }
  func.func @transform_3(%arg0: i32) -> (i32, i32) {
    %c0_i32 = arith.constant 0 : i32
    %c0_i32_0 = arith.constant 0 : i32
    %c0_i32_1 = arith.constant 0 : i32
    return %c0_i32, %c0_i32_0 : i32, i32
  }
  func.func @transform_4(%arg0: i32) -> (i32, i32) {
    %c0_i32 = arith.constant 0 : i32
    %c0_i32_0 = arith.constant 0 : i32
    %c0_i32_1 = arith.constant 0 : i32
    return %c0_i32, %c0_i32_0 : i32, i32
  }
  func.func @transform_5(%arg0: i32) -> (i32, i32, i32, i32) {
    %c0_i32 = arith.constant 0 : i32
    %c0_i32_0 = arith.constant 0 : i32
    %c0_i32_1 = arith.constant 0 : i32
    %c0_i32_2 = arith.constant 0 : i32
    return %arg0, %c0_i32, %c0_i32_0, %c0_i32_1 : i32, i32, i32, i32
  }
}

</mosaic_0001>

<bundles_post_ra>
// kernel: tpu_custom_call.1
= control target key start
LH: loop header
LB: loop body
LE: loop exit
PB: predicated region body
PF: predicated region fallthrough
CT: control target
= control target key end

     0   :  { %10 = vsyncpa [#allocation7], 0  ;;  %s5696_s0 = inlined_call_operand.vmem [shape: f32[2,16,16,4], index: 0, kind: input, shape index: {}]   ;;  %s5697_s1 = inlined_call_operand.vmem [shape: bf16[36,8], index: 1, kind: input, shape index: {}]   ;;  %s5698_s2 = inlined_call_operand.vmem [shape: f32[1,8], index: 2, kind: input, shape index: {}]   ;;  %s5699_s3 = inlined_call_operand.vmem [shape: bf16[144,8], index: 3, kind: input, shape index: {}]   ;;  %s5700_s4 = inlined_call_operand.vmem [shape: f32[1,8], index: 4, kind: input, shape index: {}]   ;;  %s5701_s5 = inlined_call_operand.hbm [shape: f32[2,8,8,8], index: 5, kind: output, shape index: {}]  }
   0x1   :  { %12 = vsyncpa [#allocation7 + $0x1], 0  ;;  %s3984_s18 = smov 0   ;;  %s3986_s19 = smov 0  }
   0x2   :  { %s3988_s20 = smov 0   ;;  %s3990_s21 = smov 0  }
   0x3 LB: > { %s4005_s22 = sadd.s32 4294967295, %s3931_s21   ;;  %s3712_s23 = sadd.s32 4294967294, %s3931_s21   ;;  %s3931_s21 = sphi %s3990_s21, %s5794_s21   ;;  %s3927_s20 = sphi %s3988_s20, %s5793_s20   ;;  %s3923_s19 = sphi %s3986_s19, %s5792_s19   ;;  %s3919_s18 = sphi %s3984_s18, %s5791_s18  }
   0x4   : > { %s4009_s24 = sadd.s32 1, %s3931_s21   ;;  %s135_s25 = sadd.s32 1, %s3927_s20 }
   0x5   : > { %s132_s26 = ssub.s32 %s3931_s21, %s4009_s24  ;;  %p145_p0 = scmp.ne.s32.totalorder %s3927_s20, %s3923_s19 }
   0x6   : > { %p133_p1 = scmp.eq.s32.totalorder %s132_s26, 0  ;;  %p146_p2 = scmp.eq.s32.totalorder %s4005_s22, 1 }
   0x7   : > { %p151_p3 = scmp.ne.s32.totalorder %s3923_s19, %s3919_s18  ;;  %p152_p4 = scmp.eq.s32.totalorder %s3712_s23, 1 }
   0x8   : > { %s4020_s27 = scalar_select %p133_p1, %s3927_s20, %s135_s25  }
   0x9   : > { %p4022_p5 = por %p146_p2, %p145_p0  ;;  %p4026_p6 = por %p152_p4, %p151_p3 }
   0xa   : > { %p3715_p7 = scmp.ge.s32.totalorder %s3931_s21, 1  ;;  %p190_p8 = scmp.lt.s32.totalorder %s3931_s21, 3 }
   0xc   : > { %p191_p9 = pnand %p3715_p7, %p190_p8 }
   0xe   : > { %194 = sbr.rel (%p191_p9) target bundleno = 1616 (0x650), region = 40 }
  0x13   : > { %vm224_vm0 = vcmask 31744   ;;  %p218_p10 = scmp.lt.s32.totalorder %s4005_s22, 1  ;;  %v5702_v0 = vmov 0.0   ;;  %vm227_vm1 = vcmask 25600   ;;  %s3934_s10 = smov 4   ;;  %vm234_vm2 = vcmask 24576  }
  0x14   : > { %225 = vst.msk [vmem:[#allocation2] sm:$0xff] %vm224_vm0, %v5702_v0  ;;  %s3935_s11 = smov 8   ;;  %vm555_vm3 = vcmask 64544   ;;  %s3936_s12 = smov 12   ;;  %vm748_vm4 = vcmask 97344   ;;  %vm941_vm5 = vcmask 130144  }
  0x15   : > { %226 = vst.msk [vmem:[#allocation2 + $0x8] sm:$0xff] %vm224_vm0, %v5702_v0  ;;  %s219_s30 = scalar_select %p218_p10, %s4005_s22, 1  ;;  %vm1134_vm6 = vcmask 162944   ;;  %vm1327_vm7 = vcmask 195744   ;;  %vm1521_vm8 = vcmask 228544   ;;  %vm1714_vm9 = vcmask 261344  }
  0x16   : > { %230 = vst.msk [vmem:[#allocation2 + $0x198] sm:$0xff] %vm224_vm0, %v5702_v0  ;;  %s3937_s13 = smov 16   ;;  %s3938_s14 = smov 20   ;;  %vm2061_vm10 = vcmask 1041408   ;;  %vm1907_vm11 = vcmask 294144   ;;  %vm2012_vm12 = vcmask 293888  }
  0x17   : > { %231 = vst.msk [vmem:[#allocation2 + $0x1a0] sm:$0xff] %vm224_vm0, %v5702_v0  ;;  %s3788_s6 = sshll.u32 %s219_s30, 8  ;;  %s3939_s15 = smov 24   ;;  %vm2186_vm13 = vcmask 64512   ;;  %vm2196_vm14 = vcmask 57344   ;;  %vm2189_vm15 = vcmask 58368  }
  0x18   : > { %s4045_s9 = scalar_lea.vmem %s5696_s0, %s3788_s6  ;;  %228 = vst.msk [vmem:[#allocation2 + $0x10] sm:$0x3] %vm227_vm1, %v5702_v0  ;;  %s3940_s16 = smov 28  }
  0x19   : > { %v267_v1 = vld [vmem:[%s4045_s9] sm:$0xff]  ;;  %232 = vst.msk [vmem:[#allocation2 + $0x1a8] sm:$0x3] %vm227_vm1, %v5702_v0  ;;  %v268_v2 = vld [vmem:[%s4045_s9 + $0x8] sm:$0xff]  ;;  %v274_v5 = vld [vmem:[%s4045_s9 + $0x38] sm:$0xff]  ;;  %s3941_s17 = smov 32  }
  0x1a   : > { %v271_v3 = vld [vmem:[%s4045_s9 + $0x20] sm:$0xff]  ;;  %299 = vst.msk [vmem:[#allocation2 + $0x19] sm:$0xff] %vm224_vm0, %v267_v1  ;;  %v272_v4 = vld [vmem:[%s4045_s9 + $0x28] sm:$0xff]  ;;  %v277_v8 = vld [vmem:[%s4045_s9 + $0x50] sm:$0xff]  ;;  %vm2332_vm1 = vcmask 130112   ;;  %s3947_s23 = smov 80  }
  0x1b   : > { %300 = vst.msk [vmem:[#allocation2 + $0x21] sm:$0xff] %vm224_vm0, %v268_v2  ;;  %v275_v7 = vld [vmem:[%s4045_s9 + $0x40] sm:$0xff]  ;;  %v269_v9 = vld [vmem:[%s4045_s9 + $0x10] sm:$0xff]  ;;  %v278_v10 = vld [vmem:[%s4045_s9 + $0x58] sm:$0xff]  ;;  %s3948_s25 = smov 96   ;;  %s3949_s26 = smov 112  }
  0x1c   : > { %v395_v6 = vld [vmem:[#allocation2 + $0x1] sm:$0xff]  ;;  %303 = vst.msk [vmem:[#allocation2 + $0x49] sm:$0xff] %vm224_vm0, %v271_v3  ;;  %v270_v13 = vld [vmem:[%s4045_s9 + $0x18] sm:$0xff]  ;;  %v281_v15 = vld [vmem:[%s4045_s9 + $0x70] sm:$0xff]  ;;  %s3950_s30 = smov 88   ;;  %s3951_s6 = smov 120  }
  0x1d   : > { %459 = vrot.lane.b32.xlu0 %v395_v6, %s3934_s10  ;;  %304 = vst.msk [vmem:[#allocation2 + $0x51] sm:$0xff] %vm224_vm0, %v272_v4  ;;  %v280_v11 = vld [vmem:[%s4045_s9 + $0x68] sm:$0xff]  ;;  %v283_v16 = vld [vmem:[%s4045_s9 + $0x80] sm:$0xff]  ;;  %v273_v17 = vld [vmem:[%s4045_s9 + $0x30] sm:$0xff]  ;;  %s3952_s7 = smov 104  }
  0x1e   : > { %306 = vst.msk [vmem:[#allocation2 + $0x69] sm:$0xff] %vm224_vm0, %v274_v5  ;;  %v284_v21 = vld [vmem:[%s4045_s9 + $0x88] sm:$0xff]  ;;  %v286_v22 = vld [vmem:[%s4045_s9 + $0x98] sm:$0xff]  ;;  %v287_v27 = vld [vmem:[%s4045_s9 + $0xa0] sm:$0xff] }
  0x1f   : > { %307 = vst.msk [vmem:[#allocation2 + $0x79] sm:$0xff] %vm224_vm0, %v275_v7  ;;  %v396_v14 = vld [vmem:[#allocation2 + $0x9] sm:$0xff]  ;;  %v279_v29 = vld [vmem:[%s4045_s9 + $0x60] sm:$0xff]  ;;  %v290_v33 = vld [vmem:[%s4045_s9 + $0xb8] sm:$0xff] }
  0x20   : > { %309 = vst.msk [vmem:[#allocation2 + $0x91] sm:$0xff] %vm224_vm0, %v277_v8  ;;  %v276_v23 = vld [vmem:[%s4045_s9 + $0x48] sm:$0xff]  ;;  %v289_v28 = vld [vmem:[%s4045_s9 + $0xb0] sm:$0xff]  ;;  %v282_v35 = vld [vmem:[%s4045_s9 + $0x78] sm:$0xff] }
  0x21   : > { %v4067_v12 = vld [vmem:[#allocation2 + $0x19] sm:$0xff]  ;;  %301 = vst.msk [vmem:[#allocation2 + $0x31] sm:$0xff] %vm224_vm0, %v269_v9  ;;  %v292_v34 = vld [vmem:[%s4045_s9 + $0xc8] sm:$0xff]  ;;  %v293_v39 = vld [vmem:[%s4045_s9 + $0xd0] sm:$0xff] }
  0x22   : > { %463 = vrot.lane.b32.xlu1 %v4067_v12, %s3934_s10  ;;  %310 = vst.msk [vmem:[#allocation2 + $0x99] sm:$0xff] %vm224_vm0, %v278_v10  ;;  %v4082_v18 = vld [vmem:[#allocation2 + $0x21] sm:$0xff]  ;;  %v285_v41 = vld [vmem:[%s4045_s9 + $0x90] sm:$0xff]  ;;  %v294_v63 = vld [vmem:[%s4045_s9 + $0xd8] sm:$0xff] }
  0x23   : > { %312 = vst.msk [vmem:[#allocation2 + $0xb1] sm:$0xff] %vm224_vm0, %v280_v11  ;;  %v4091_v20 = vld [vmem:[#allocation2 + $0x49] sm:$0xff]  ;;  %v295_v40 = vld [vmem:[%s4045_s9 + $0xe0] sm:$0xff] }
  0x24   : > { %302 = vst.msk [vmem:[#allocation2 + $0x39] sm:$0xff] %vm224_vm0, %v270_v13  ;;  %v4103_v25 = vld [vmem:[#allocation2 + $0x51] sm:$0xff]  ;;  %v296_v45 = vld [vmem:[%s4045_s9 + $0xe8] sm:$0xff]  ;;  %v291_v50 = vld [vmem:[%s4045_s9 + $0xc0] sm:$0xff] }
  0x25   : > { %461 = vrot.lane.b32.xlu0 %v396_v14, %s3934_s10  ;;  %313 = vst.msk [vmem:[#allocation2 + $0xc1] sm:$0xff] %vm224_vm0, %v281_v15  ;;  %v4109_v26 = vld [vmem:[#allocation2 + $0x69] sm:$0xff]  ;;  %v4282_v62 = vld [vmem:[#allocation2 + $0x1a] sm:$0xff] }
  0x26   : > { %315 = vst.msk [vmem:[#allocation2 + $0xd9] sm:$0xff] %vm224_vm0, %v283_v16  ;;  %v4121_v31 = vld [vmem:[#allocation2 + $0x79] sm:$0xff]  ;;  %v288_v46 = vld [vmem:[%s4045_s9 + $0xa8] sm:$0xff]  ;;  %v4335_v14 = vld [vmem:[#allocation2 + $0x50] sm:$0xff] }
  0x27   : > { %305 = vst.msk [vmem:[#allocation2 + $0x61] sm:$0xff] %vm224_vm0, %v273_v17  ;;  %v4127_v32 = vld [vmem:[#allocation2 + $0x91] sm:$0xff]  ;;  %v331_v1 = vld [vmem:[#allocation2] sm:$0xff]  ;;  %v332_v4 = vld [vmem:[#allocation2 + $0x8] sm:$0xff] }
  0x28   : > { %v4085_v19 = vld [vmem:[#allocation2 + $0x31] sm:$0xff]  ;;  %316 = vst.msk [vmem:[#allocation2 + $0xe1] sm:$0xff] %vm224_vm0, %v284_v21  ;;  %v4307_v6 = vld [vmem:[#allocation2 + $0x20] sm:$0xff] }
  0x29   : > { %467 = vrot.lane.b32.xlu2 %v4085_v19, %s3934_s10  ;;  %318 = vst.msk [vmem:[#allocation2 + $0xf9] sm:$0xff] %vm224_vm0, %v286_v22  ;;  %v4139_v37 = vld [vmem:[#allocation2 + $0x99] sm:$0xff]  ;;  %v589_v61 = vld [vmem:[#allocation2 + $0xa] sm:$0xff]  ;;  %v588_v21 = vld [vmem:[#allocation2 + $0x2] sm:$0xff] }
  0x2a   : > { %465 = vrot.lane.b32.xlu1 %v4082_v18, %s3934_s10  ;;  %308 = vst.msk [vmem:[#allocation2 + $0x81] sm:$0xff] %vm224_vm0, %v276_v23  ;;  %v4145_v38 = vld [vmem:[#allocation2 + $0xb1] sm:$0xff] }
  0x2b   : > { %v4100_v24 = vld [vmem:[#allocation2 + $0x39] sm:$0xff]  ;;  %319 = vst.msk [vmem:[#allocation2 + $0x109] sm:$0xff] %vm224_vm0, %v287_v27 }
  0x2c   : > { %321 = vst.msk [vmem:[#allocation2 + $0x121] sm:$0xff] %vm224_vm0, %v289_v28  ;;  %v4157_v43 = vld [vmem:[#allocation2 + $0xc1] sm:$0xff]  ;;  %v4293_v2 = vld [vmem:[#allocation2 + $0x32] sm:$0xff] }
  0x2d   : > { %471 = vrot.lane.b32.xlu0 %v4091_v20, %s3934_s10  ;;  %311 = vst.msk [vmem:[#allocation2 + $0xa9] sm:$0xff] %vm224_vm0, %v279_v29  ;;  %v4163_v44 = vld [vmem:[#allocation2 + $0xd9] sm:$0xff] }
  0x2e   : > { %v4118_v30 = vld [vmem:[#allocation2 + $0x61] sm:$0xff]  ;;  %322 = vst.msk [vmem:[#allocation2 + $0x129] sm:$0xff] %vm224_vm0, %v290_v33  ;;  %v4316_v9 = vld [vmem:[#allocation2 + $0x38] sm:$0xff] }
  0x2f   : > { %324 = vst.msk [vmem:[#allocation2 + $0x141] sm:$0xff] %vm224_vm0, %v292_v34  ;;  %v4173_v48 = vld [vmem:[#allocation2 + $0xe1] sm:$0xff] }
  0x30   : > { %314 = vst.msk [vmem:[#allocation2 + $0xc9] sm:$0xff] %vm224_vm0, %v282_v35  ;;  %v4179_v49 = vld [vmem:[#allocation2 + $0xf9] sm:$0xff]  ;;  %v4337_v15 = vld [vmem:[#allocation2 + $0x68] sm:$0xff] }
  0x31   : > { %469 = vrot.lane.b32.xlu2 %v4100_v24, %s3934_s10  ;;  %v4136_v36 = vld [vmem:[#allocation2 + $0x81] sm:$0xff]  ;;  %325 = vst.msk [vmem:[#allocation2 + $0x151] sm:$0xff] %vm224_vm0, %v293_v39 }
  0x32   : > { %473 = vrot.lane.b32.xlu1 %v4103_v25, %s3934_s10  ;;  %327 = vst.msk [vmem:[#allocation2 + $0x169] sm:$0xff] %vm224_vm0, %v295_v40  ;;  %v4187_v52 = vld [vmem:[#allocation2 + $0x109] sm:$0xff]  ;;  %v4351_v22 = vld [vmem:[#allocation2 + $0x7a] sm:$0xff] }
  0x33   : > { %317 = vst.msk [vmem:[#allocation2 + $0xf1] sm:$0xff] %vm224_vm0, %v285_v41  ;;  %v4193_v53 = vld [vmem:[#allocation2 + $0x121] sm:$0xff] }
  0x34   : > { %v4154_v42 = vld [vmem:[#allocation2 + $0xa9] sm:$0xff]  ;;  %328 = vst.msk [vmem:[#allocation2 + $0x171] sm:$0xff] %vm224_vm0, %v296_v45  ;;  %v4363_v29 = vld [vmem:[#allocation2 + $0x80] sm:$0xff]  ;;  %v4384_v45 = vld [vmem:[#allocation2 + $0x98] sm:$0xff] }
  0x35   : > { %477 = vrot.lane.b32.xlu0 %v4109_v26, %s3934_s10  ;;  %320 = vst.msk [vmem:[#allocation2 + $0x111] sm:$0xff] %vm224_vm0, %v288_v46  ;;  %v4207_v55 = vld [vmem:[#allocation2 + $0x129] sm:$0xff] }
  0x36   : > { %323 = vst.msk [vmem:[#allocation2 + $0x139] sm:$0xff] %vm224_vm0, %v291_v50  ;;  %v4219_v56 = vld [vmem:[#allocation2 + $0x141] sm:$0xff]  ;;  %v4386_v46 = vld [vmem:[#allocation2 + $0xb0] sm:$0xff] }
  0x37   : > { %v4171_v47 = vld [vmem:[#allocation2 + $0xc9] sm:$0xff]  ;;  %252 = vst.msk [vmem:[#allocation2 + $0x41] sm:$0x1] %vm234_vm2, %v5702_v0 }
  0x38   : > { %235 = vst.msk [vmem:[#allocation2 + $0x18] sm:$0x1] %vm234_vm2, %v5702_v0  ;;  %v4235_v58 = vld [vmem:[#allocation2 + $0x151] sm:$0xff]  ;;  %v4343_v17 = vld [vmem:[#allocation2 + $0x62] sm:$0xff] }
  0x39   : > { %475 = vrot.lane.b32.xlu2 %v4118_v30, %s3934_s10  ;;  %236 = vst.msk [vmem:[#allocation2 + $0x30] sm:$0x1] %vm234_vm2, %v5702_v0  ;;  %v4247_v59 = vld [vmem:[#allocation2 + $0x169] sm:$0xff] }
  0x3a   : > { %479 = vrot.lane.b32.xlu1 %v4121_v31, %s3934_s10  ;;  %v4185_v51 = vld [vmem:[#allocation2 + $0xf1] sm:$0xff]  ;;  %237 = vst.msk [vmem:[#allocation2 + $0x48] sm:$0x1] %vm234_vm2, %v5702_v0 }
  0x3b   : > { %238 = vst.msk [vmem:[#allocation2 + $0x60] sm:$0x1] %vm234_vm2, %v5702_v0  ;;  %v4261_v60 = vld [vmem:[#allocation2 + $0x171] sm:$0xff] }
  0x3c   : > { %v4203_v54 = vld [vmem:[#allocation2 + $0x111] sm:$0xff]  ;;  %239 = vst.msk [vmem:[#allocation2 + $0x78] sm:$0x1] %vm234_vm2, %v5702_v0 }
  0x3d   : > { %483 = vrot.lane.b32.xlu0 %v4127_v32, %s3934_s10  ;;  %240 = vst.msk [vmem:[#allocation2 + $0x90] sm:$0x1] %vm234_vm2, %v5702_v0  ;;  %v4231_v57 = vld [vmem:[#allocation2 + $0x139] sm:$0xff] }
  0x3e   : > { %241 = vst.msk [vmem:[#allocation2 + $0xa8] sm:$0x1] %vm234_vm2, %v5702_v0  ;;  %v4312_v8 = vld [vmem:[#allocation2 + $0x3a] sm:$0xff] }
  0x3f   : > { %242 = vst.msk [vmem:[#allocation2 + $0xc0] sm:$0x1] %vm234_vm2, %v5702_v0  ;;  %v4297_v3 = vld [vmem:[#allocation2 + $0x18] sm:$0xff] }
  0x40   : > { %243 = vst.msk [vmem:[#allocation2 + $0xd8] sm:$0x1] %vm234_vm2, %v5702_v0  ;;  %v4301_v5 = vld [vmem:[#allocation2 + $0x30] sm:$0xff] }
  0x41   : > { %481 = vrot.lane.b32.xlu2 %v4136_v36, %s3934_s10  ;;  %244 = vst.msk [vmem:[#allocation2 + $0xf0] sm:$0x1] %vm234_vm2, %v5702_v0  ;;  %v4310_v7 = vld [vmem:[#allocation2 + $0x48] sm:$0xff] }
  0x42   : > { %485 = vrot.lane.b32.xlu1 %v4139_v37, %s3934_s10  ;;  %245 = vst.msk [vmem:[#allocation2 + $0x108] sm:$0x1] %vm234_vm2, %v5702_v0  ;;  %v4341_v16 = vld [vmem:[#allocation2 + $0x60] sm:$0xff] }
  0x43   : > { %5734 = vst [vmem:[#allocation9_spill] sm:$0xff] %v4235_v58  ;;  %v4357_v27 = vld [vmem:[#allocation2 + $0x78] sm:$0xff] }
  0x44   : > { %246 = vst.msk [vmem:[#allocation2 + $0x120] sm:$0x1] %vm234_vm2, %v5702_v0  ;;  %v4359_v28 = vld [vmem:[#allocation2 + $0x90] sm:$0xff] }
  0x45   : > { %489 = vrot.lane.b32.xlu0 %v4145_v38, %s3934_s10  ;;  %247 = vst.msk [vmem:[#allocation2 + $0x138] sm:$0x1] %vm234_vm2, %v5702_v0  ;;  %v4390_v50 = vld [vmem:[#allocation2 + $0xa8] sm:$0xff] }
  0x46   : > { %248 = vst.msk [vmem:[#allocation2 + $0x150] sm:$0x1] %vm234_vm2, %v5702_v0 }
  0x47   : > { %249 = vst.msk [vmem:[#allocation2 + $0x168] sm:$0x1] %vm234_vm2, %v5702_v0 }
  0x48   : > { %250 = vst.msk [vmem:[#allocation2 + $0x180] sm:$0x1] %vm234_vm2, %v5702_v0 }
  0x49   : > { %487 = vrot.lane.b32.xlu2 %v4154_v42, %s3934_s10  ;;  %251 = vst.msk [vmem:[#allocation2 + $0x29] sm:$0x1] %vm234_vm2, %v5702_v0 }
  0x4a   : > { %491 = vrot.lane.b32.xlu1 %v4157_v43, %s3934_s10  ;;  %253 = vst.msk [vmem:[#allocation2 + $0x59] sm:$0x1] %vm234_vm2, %v5702_v0 }
  0x4b   : > { %254 = vst.msk [vmem:[#allocation2 + $0x71] sm:$0x1] %vm234_vm2, %v5702_v0 }
  0x4c   : > { %5735 = vst [vmem:[#allocation10_spill] sm:$0xff] %v4261_v60 }
  0x4d   : > { %495 = vrot.lane.b32.xlu0 %v4163_v44, %s3934_s10  ;;  %255 = vst.msk [vmem:[#allocation2 + $0x89] sm:$0x1] %vm234_vm2, %v5702_v0 }
  0x4e   : > { %256 = vst.msk [vmem:[#allocation2 + $0xa1] sm:$0x1] %vm234_vm2, %v5702_v0 }
  0x4f   : > { %257 = vst.msk [vmem:[#allocation2 + $0xb9] sm:$0x1] %vm234_vm2, %v5702_v0 }
  0x50   : > { %258 = vst.msk [vmem:[#allocation2 + $0xd1] sm:$0x1] %vm234_vm2, %v5702_v0  ;;  %v4370_v35 = vld [vmem:[#allocation2 + $0x22] sm:$0xff] }
  0x51   : > { %493 = vrot.lane.b32.xlu2 %v4171_v47, %s3934_s10  ;;  %259 = vst.msk [vmem:[#allocation2 + $0xe9] sm:$0x1] %vm234_vm2, %v5702_v0  ;;  %v4324_v10 = vld [vmem:[#allocation2 + $0x52] sm:$0xff] }
  0x52   : > { %497 = vrot.lane.b32.xlu1 %v4173_v48, %s3934_s10  ;;  %260 = vst.msk [vmem:[#allocation2 + $0x101] sm:$0x1] %vm234_vm2, %v5702_v0 }
  0x53   : > { %261 = vst.msk [vmem:[#allocation2 + $0x119] sm:$0x1] %vm234_vm2, %v5702_v0 }
  0x54   : > { %262 = vst.msk [vmem:[#allocation2 + $0x131] sm:$0x1] %vm234_vm2, %v5702_v0  ;;  %v4365_v34 = vld [vmem:[#allocation2 + $0x82] sm:$0xff] }
  0x55   : > { %501 = vrot.lane.b32.xlu0 %v4179_v49, %s3934_s10  ;;  %5736 = vst [vmem:[#allocation11_spill] sm:$0xff] %v4282_v62  ;;  %v4376_v39 = vld [vmem:[#allocation2 + $0x9a] sm:$0xff] }
  0x56   : > { %263 = vst.msk [vmem:[#allocation2 + $0x149] sm:$0x1] %vm234_vm2, %v5702_v0 }
  0x57   : > { %264 = vst.msk [vmem:[#allocation2 + $0x161] sm:$0x1] %vm234_vm2, %v5702_v0 }
  0x58   : > { %265 = vst.msk [vmem:[#allocation2 + $0x179] sm:$0x1] %vm234_vm2, %v5702_v0 }
  0x59   : > { %499 = vrot.lane.b32.xlu2 %v4185_v51, %s3934_s10  ;;  %5737 = vst [vmem:[#allocation12_spill] sm:$0xff] %v4293_v2 }
  0x5a   : > { %503 = vrot.lane.b32.xlu1 %v4187_v52, %s3934_s10  ;;  %266 = vst.msk [vmem:[#allocation2 + $0x191] sm:$0x1] %vm234_vm2, %v5702_v0  ;;  %vm2389_vm2 = vcmask 195712  }
  0x5b   : > { %326 = vst.msk [vmem:[#allocation2 + $0x159] sm:$0xff] %vm224_vm0, %v294_v63  ;;  %v4392_v63 = vld [vmem:[#allocation2 + $0xaa] sm:$0xff] }
  0x5c   : > { %363 = vst.msk [vmem:[#allocation4] sm:$0xff] %vm224_vm0, %v331_v1  ;;  %v4397_v1 = vld [vmem:[#allocation2 + $0x4a] sm:$0xff] }
  0x5d   : > { %507 = vrot.lane.b32.xlu0 %v4193_v53, %s3934_s10  ;;  %365 = vst.msk [vmem:[#allocation4 + $0x10] sm:$0xff] %vm224_vm0, %v4297_v3 }
  0x5e   : > { %364 = vst.msk [vmem:[#allocation4 + $0x8] sm:$0xff] %vm224_vm0, %v332_v4  ;;  %v4403_v4 = vld [vmem:[#allocation2 + $0xc2] sm:$0xff] }
  0x5f   : > { %5738 = vst [vmem:[#allocation13_spill] sm:$0xff] %v4312_v8 }
  0x60   : > { %367 = vst.msk [vmem:[#allocation4 + $0x20] sm:$0xff] %vm224_vm0, %v4301_v5 }
  0x61   : > { %505 = vrot.lane.b32.xlu2 %v4203_v54, %s3934_s10  ;;  %366 = vst.msk [vmem:[#allocation4 + $0x18] sm:$0xff] %vm224_vm0, %v4307_v6 }
  0x62   : > { %509 = vrot.lane.b32.xlu1 %v4207_v55, %s3934_s10  ;;  %369 = vst.msk [vmem:[#allocation4 + $0x30] sm:$0xff] %vm224_vm0, %v4310_v7  ;;  %v4326_v11 = vld [vmem:[#allocation2 + $0x159] sm:$0xff] }
  0x63   : > { %5739 = vst [vmem:[#allocation14_spill] sm:$0xff] %v4324_v10 }
  0x64   : > { %368 = vst.msk [vmem:[#allocation4 + $0x28] sm:$0xff] %vm224_vm0, %v4316_v9 }
  0x65   : > { %513 = vrot.lane.b32.xlu0 %v4219_v56, %s3934_s10  ;;  %370 = vst.msk [vmem:[#allocation4 + $0x38] sm:$0xff] %vm224_vm0, %v4335_v14 }
  0x66   : > { %5740 = vst [vmem:[#allocation15_spill] sm:$0xff] %v4343_v17 }
  0x67   : > { %372 = vst.msk [vmem:[#allocation4 + $0x48] sm:$0xff] %vm224_vm0, %v4337_v15 }
  0x68   : > { %371 = vst.msk [vmem:[#allocation4 + $0x40] sm:$0xff] %vm224_vm0, %v4341_v16 }
  0x69   : > { %511 = vrot.lane.b32.xlu2 %v4231_v57, %s3934_s10  ;;  %5741 = vst [vmem:[#allocation16_spill] sm:$0xff] %v4351_v22 }
  0x6a   : > { %515 = vrot.lane.b32.xlu1 %v4235_v58, %s3934_s10  ;;  %373 = vst.msk [vmem:[#allocation4 + $0x50] sm:$0xff] %vm224_vm0, %v4357_v27 }
  0x6b   : > { %5742 = vst [vmem:[#allocation17_spill] sm:$0xff] %v4365_v34 }
  0x6c   : > { %375 = vst.msk [vmem:[#allocation4 + $0x60] sm:$0xff] %vm224_vm0, %v4359_v28 }
  0x6d   : > { %519 = vrot.lane.b32.xlu0 %v4247_v59, %s3934_s10  ;;  %5743 = vst [vmem:[#allocation18_spill] sm:$0xff] %v4370_v35 }
  0x6e   : > { %374 = vst.msk [vmem:[#allocation4 + $0x58] sm:$0xff] %vm224_vm0, %v4363_v29 }
  0x6f   : > { %5744 = vst [vmem:[#allocation19_spill] sm:$0xff] %v4376_v39 }
  0x70   : > { %376 = vst.msk [vmem:[#allocation4 + $0x68] sm:$0xff] %vm224_vm0, %v4384_v45 }
  0x71   : > { %517 = vrot.lane.b32.xlu2 %v4326_v11, %s3934_s10  ;;  %5745 = vst [vmem:[#allocation20_spill] sm:$0xff] %v4392_v63 }
  0x72   : > { %521 = vrot.lane.b32.xlu1 %v4261_v60, %s3934_s10  ;;  %378 = vst.msk [vmem:[#allocation4 + $0x78] sm:$0xff] %vm224_vm0, %v4386_v46 }
  0x73   : > { %5746 = vst [vmem:[#allocation21_spill] sm:$0xff] %v4397_v1 }
  0x74   : > { %377 = vst.msk [vmem:[#allocation4 + $0x70] sm:$0xff] %vm224_vm0, %v4390_v50 }
  0x75   : > { %654 = vrot.lane.b32.xlu0 %v589_v61, %s3935_s11  ;;  %5747 = vst [vmem:[#allocation22_spill] sm:$0xff] %v4403_v4 }
  0x79   : > { %652 = vrot.lane.b32.xlu2 %v588_v21, %s3935_s11 }
  0x7a   : > { %656 = vrot.lane.b32.xlu1 %v4282_v62, %s3935_s11 }
  0x7d   : > { %660 = vrot.lane.b32.xlu0 %v4293_v2, %s3935_s11 }
  0x81   : > { %658 = vrot.lane.b32.xlu2 %v4370_v35, %s3935_s11  ;;  %v4551_v35 = vld [vmem:[#allocation2 + $0x122] sm:$0xff] }
  0x82   : > { %662 = vrot.lane.b32.xlu1 %v4312_v8, %s3935_s11 }
  0x83   : > { %v468_v13 = vpop.permute.xlu2 %467 }
  0x84   : > { %560 = vst.msk [vmem:[#allocation4 + $0x20] sm:$0xff] %vm555_vm3, %v468_v13 }
  0x85   : > { %666 = vrot.lane.b32.xlu0 %v4324_v10, %s3935_s11 }
  0x89   : > { %664 = vrot.lane.b32.xlu2 %v4397_v1, %s3935_s11  ;;  %v4521_v1 = vld [vmem:[#allocation2 + $0x168] sm:$0xff] }
  0x8a   : > { %668 = vrot.lane.b32.xlu1 %v4343_v17, %s3935_s11  ;;  %393 = vst.msk [vmem:[#allocation4 + $0xf0] sm:$0xff] %vm224_vm0, %v4521_v1 }
  0x8b   : > { %v470_v23 = vpop.permute.xlu2 %469 }
  0x8c   : > { %561 = vst.msk [vmem:[#allocation4 + $0x28] sm:$0xff] %vm555_vm3, %v470_v23  ;;  %v4411_v23 = vld [vmem:[#allocation2 + $0xc0] sm:$0xff] }
  0x8d   : > { %672 = vrot.lane.b32.xlu0 %v4351_v22, %s3935_s11  ;;  %379 = vst.msk [vmem:[#allocation4 + $0x80] sm:$0xff] %vm224_vm0, %v4411_v23 }
  0x8f   : > { %v460_v33 = vpop.permute.xlu0 %459 }
  0x90   : > { %556 = vst.msk [vmem:[#allocation4] sm:$0xff] %vm555_vm3, %v460_v33  ;;  %v4413_v33 = vld [vmem:[#allocation2 + $0xd8] sm:$0xff] }
  0x91   : > { %381 = vst.msk [vmem:[#allocation4 + $0x90] sm:$0xff] %vm224_vm0, %v4413_v33 }
  0x92   : > { %674 = vrot.lane.b32.xlu1 %v4365_v34, %s3935_s11  ;;  %v4440_v34 = vld [vmem:[#allocation2 + $0xf8] sm:$0xff] }
  0x93   : > { %v476_v40 = vpop.permute.xlu2 %475  ;;  %384 = vst.msk [vmem:[#allocation4 + $0xa8] sm:$0xff] %vm224_vm0, %v4440_v34 }
  0x94   : > { %v464_v41 = vpop.permute.xlu1 %463  ;;  %564 = vst.msk [vmem:[#allocation4 + $0x40] sm:$0xff] %vm555_vm3, %v476_v40  ;;  %v4417_v40 = vld [vmem:[#allocation2 + $0xc8] sm:$0xff] }
  0x95   : > { %678 = vrot.lane.b32.xlu0 %v4376_v39, %s3935_s11  ;;  %558 = vst.msk [vmem:[#allocation4 + $0x10] sm:$0xff] %vm555_vm3, %v464_v41  ;;  %v4467_v39 = vld [vmem:[#allocation2 + $0x120] sm:$0xff] }
  0x96   : > { %380 = vst.msk [vmem:[#allocation4 + $0x88] sm:$0xff] %vm224_vm0, %v4417_v40 }
  0x97   : > { %v462_v61 = vpop.permute.xlu0 %461  ;;  %387 = vst.msk [vmem:[#allocation4 + $0xc0] sm:$0xff] %vm224_vm0, %v4467_v39 }
  0x98   : > { %557 = vst.msk [vmem:[#allocation4 + $0x8] sm:$0xff] %vm555_vm3, %v462_v61  ;;  %v4419_v61 = vld [vmem:[#allocation2 + $0xca] sm:$0xff] }
  0x99   : > { %5748 = vst [vmem:[#allocation23_spill] sm:$0xff] %v4419_v61 }
  0x9a   : > { %680 = vrot.lane.b32.xlu1 %v4392_v63, %s3935_s11 }
  0x9b   : > { %v482_v13 = vpop.permute.xlu2 %481 }
  0x9c   : > { %v466_v21 = vpop.permute.xlu1 %465  ;;  %567 = vst.msk [vmem:[#allocation4 + $0x58] sm:$0xff] %vm555_vm3, %v482_v13  ;;  %v4424_v13 = vld [vmem:[#allocation2 + $0x6a] sm:$0xff] }
  0x9d   : > { %684 = vrot.lane.b32.xlu0 %v4403_v4, %s3935_s11  ;;  %559 = vst.msk [vmem:[#allocation4 + $0x18] sm:$0xff] %vm555_vm3, %v466_v21  ;;  %v4430_v21 = vld [vmem:[#allocation2 + $0xe2] sm:$0xff]  ;;  %670 = vrot.lane.b32.xlu2 %v4424_v13, %s3935_s11  ;;  %v4446_v4 = vld [vmem:[#allocation2 + $0xf2] sm:$0xff] }
  0x9e   : > { %5749 = vst [vmem:[#allocation24_spill] sm:$0xff] %v4424_v13  ;;  %v4494_v13 = vld [vmem:[#allocation2 + $0x140] sm:$0xff] }
  0x9f   : > { %v472_v41 = vpop.permute.xlu0 %471  ;;  %5750 = vst [vmem:[#allocation25_spill] sm:$0xff] %v4430_v21 }
  0xa0   : > { %562 = vst.msk [vmem:[#allocation4 + $0x30] sm:$0xff] %vm555_vm3, %v472_v41  ;;  %v4438_v41 = vld [vmem:[#allocation2 + $0xe0] sm:$0xff] }
  0xa1   : > { %382 = vst.msk [vmem:[#allocation4 + $0x98] sm:$0xff] %vm224_vm0, %v4438_v41 }
  0xa2   : > { %686 = vrot.lane.b32.xlu1 %v4419_v61, %s3935_s11  ;;  %v4444_v61 = vld [vmem:[#allocation2 + $0xf0] sm:$0xff]  ;;  %5751 = vst [vmem:[#allocation26_spill] sm:$0xff] %v4446_v4 }
  0xa3   : > { %v488_v0 = vpop.permute.xlu2 %487  ;;  %383 = vst.msk [vmem:[#allocation4 + $0xa0] sm:$0xff] %vm224_vm0, %v4444_v61 }
  0xa4   : > { %v474_v63 = vpop.permute.xlu1 %473  ;;  %570 = vst.msk [vmem:[#allocation4 + $0x70] sm:$0xff] %vm555_vm3, %v488_v0  ;;  %v4451_v0 = vld [vmem:[#allocation2 + $0x92] sm:$0xff] }
  0xa5   : > { %690 = vrot.lane.b32.xlu0 %v4430_v21, %s3935_s11  ;;  %563 = vst.msk [vmem:[#allocation4 + $0x38] sm:$0xff] %vm555_vm3, %v474_v63  ;;  %v4457_v63 = vld [vmem:[#allocation2 + $0x10a] sm:$0xff]  ;;  %676 = vrot.lane.b32.xlu2 %v4451_v0, %s3935_s11 }
  0xa6   : > { %5752 = vst [vmem:[#allocation27_spill] sm:$0xff] %v4451_v0  ;;  %v4473_v0 = vld [vmem:[#allocation2 + $0x112] sm:$0xff] }
  0xa7   : > { %v478_v17 = vpop.permute.xlu0 %477  ;;  %5753 = vst [vmem:[#allocation28_spill] sm:$0xff] %v4457_v63 }
  0xa8   : > { %565 = vst.msk [vmem:[#allocation4 + $0x48] sm:$0xff] %vm555_vm3, %v478_v17  ;;  %v4465_v17 = vld [vmem:[#allocation2 + $0x108] sm:$0xff] }
  0xa9   : > { %385 = vst.msk [vmem:[#allocation4 + $0xb0] sm:$0xff] %vm224_vm0, %v4465_v17 }
  0xaa   : > { %692 = vrot.lane.b32.xlu1 %v4446_v4, %s3935_s11  ;;  %v4471_v4 = vld [vmem:[#allocation2 + $0x110] sm:$0xff]  ;;  %5754 = vst [vmem:[#allocation29_spill] sm:$0xff] %v4473_v0 }
  0xab   : > { %v494_v21 = vpop.permute.xlu2 %493  ;;  %386 = vst.msk [vmem:[#allocation4 + $0xb8] sm:$0xff] %vm224_vm0, %v4471_v4 }
  0xac   : > { %v480_v8 = vpop.permute.xlu1 %479  ;;  %573 = vst.msk [vmem:[#allocation4 + $0x88] sm:$0xff] %vm555_vm3, %v494_v21  ;;  %v4478_v21 = vld [vmem:[#allocation2 + $0xb2] sm:$0xff] }
  0xad   : > { %696 = vrot.lane.b32.xlu0 %v4457_v63, %s3935_s11  ;;  %566 = vst.msk [vmem:[#allocation4 + $0x50] sm:$0xff] %vm555_vm3, %v480_v8  ;;  %v4484_v8 = vld [vmem:[#allocation2 + $0x12a] sm:$0xff]  ;;  %682 = vrot.lane.b32.xlu2 %v4478_v21, %s3935_s11 }
  0xae   : > { %5755 = vst [vmem:[#allocation30_spill] sm:$0xff] %v4478_v21  ;;  %v4500_v21 = vld [vmem:[#allocation2 + $0x13a] sm:$0xff] }
  0xaf   : > { %v484_v62 = vpop.permute.xlu0 %483  ;;  %5756 = vst [vmem:[#allocation31_spill] sm:$0xff] %v4484_v8 }
  0xb0   : > { %568 = vst.msk [vmem:[#allocation4 + $0x60] sm:$0xff] %vm555_vm3, %v484_v62  ;;  %v4492_v62 = vld [vmem:[#allocation2 + $0x128] sm:$0xff] }
  0xb1   : > { %388 = vst.msk [vmem:[#allocation4 + $0xc8] sm:$0xff] %vm224_vm0, %v4492_v62 }
  0xb2   : > { %698 = vrot.lane.b32.xlu1 %v4473_v0, %s3935_s11  ;;  %v4498_v0 = vld [vmem:[#allocation2 + $0x138] sm:$0xff]  ;;  %5757 = vst [vmem:[#allocation32_spill] sm:$0xff] %v4500_v21 }
  0xb3   : > { %v500_v63 = vpop.permute.xlu2 %499  ;;  %390 = vst.msk [vmem:[#allocation4 + $0xd8] sm:$0xff] %vm224_vm0, %v4494_v13 }
  0xb4   : > { %v486_v22 = vpop.permute.xlu1 %485  ;;  %576 = vst.msk [vmem:[#allocation4 + $0xa0] sm:$0xff] %vm555_vm3, %v500_v63  ;;  %v4505_v63 = vld [vmem:[#allocation2 + $0xda] sm:$0xff] }
  0xb5   : > { %702 = vrot.lane.b32.xlu0 %v4484_v8, %s3935_s11  ;;  %569 = vst.msk [vmem:[#allocation4 + $0x68] sm:$0xff] %vm555_vm3, %v486_v22  ;;  %v4511_v22 = vld [vmem:[#allocation2 + $0x152] sm:$0xff]  ;;  %688 = vrot.lane.b32.xlu2 %v4505_v63, %s3935_s11 }
  0xb6   : > { %5758 = vst [vmem:[#allocation33_spill] sm:$0xff] %v4505_v63  ;;  %v4527_v63 = vld [vmem:[#allocation2 + $0x15a] sm:$0xff] }
  0xb7   : > { %v490_v60 = vpop.permute.xlu0 %489  ;;  %389 = vst.msk [vmem:[#allocation4 + $0xd0] sm:$0xff] %vm224_vm0, %v4498_v0 }
  0xb8   : > { %571 = vst.msk [vmem:[#allocation4 + $0x78] sm:$0xff] %vm555_vm3, %v490_v60  ;;  %v4519_v60 = vld [vmem:[#allocation2 + $0x150] sm:$0xff] }
  0xb9   : > { %5759 = vst [vmem:[#allocation34_spill] sm:$0xff] %v4511_v22 }
  0xba   : > { %704 = vrot.lane.b32.xlu1 %v4500_v21, %s3935_s11  ;;  %391 = vst.msk [vmem:[#allocation4 + $0xe0] sm:$0xff] %vm224_vm0, %v4519_v60  ;;  %v4525_v21 = vld [vmem:[#allocation2 + $0x158] sm:$0xff] }
  0xbb   : > { %v506_v8 = vpop.permute.xlu2 %505  ;;  %5760 = vst [vmem:[#allocation35_spill] sm:$0xff] %v4527_v63 }
  0xbc   : > { %v492_v10 = vpop.permute.xlu1 %491  ;;  %579 = vst.msk [vmem:[#allocation4 + $0xb8] sm:$0xff] %vm555_vm3, %v506_v8  ;;  %v4532_v8 = vld [vmem:[#allocation2 + $0xfa] sm:$0xff] }
  0xbd   : > { %708 = vrot.lane.b32.xlu0 %v4511_v22, %s3935_s11  ;;  %572 = vst.msk [vmem:[#allocation4 + $0x80] sm:$0xff] %vm555_vm3, %v492_v10  ;;  %v4538_v10 = vld [vmem:[#allocation2 + $0x172] sm:$0xff]  ;;  %694 = vrot.lane.b32.xlu2 %v4532_v8, %s3935_s11 }
  0xbe   : > { %392 = vst.msk [vmem:[#allocation4 + $0xe8] sm:$0xff] %vm224_vm0, %v4525_v21 }
  0xbf   : > { %v496_v58 = vpop.permute.xlu0 %495  ;;  %5761 = vst [vmem:[#allocation36_spill] sm:$0xff] %v4538_v10 }
  0xc0   : > { %574 = vst.msk [vmem:[#allocation4 + $0x90] sm:$0xff] %vm555_vm3, %v496_v58  ;;  %v4546_v58 = vld [vmem:[#allocation2 + $0x170] sm:$0xff] }
  0xc1   : > { %394 = vst.msk [vmem:[#allocation4 + $0xf8] sm:$0xff] %vm224_vm0, %v4546_v58 }
  0xc2   : > { %710 = vrot.lane.b32.xlu1 %v4527_v63, %s3935_s11 }
  0xc3   : > { %v512_v22 = vpop.permute.xlu2 %511 }
  0xc4   : > { %v498_v2 = vpop.permute.xlu1 %497  ;;  %582 = vst.msk [vmem:[#allocation4 + $0xd0] sm:$0xff] %vm555_vm3, %v512_v22 }
  0xc5   : > { %714 = vrot.lane.b32.xlu0 %v4538_v10, %s3935_s11  ;;  %575 = vst.msk [vmem:[#allocation4 + $0x98] sm:$0xff] %vm555_vm3, %v498_v2  ;;  %700 = vrot.lane.b32.xlu2 %v4551_v35, %s3935_s11  ;;  %v4561_v10 = vld [vmem:[#allocation2 + $0x142] sm:$0xff] }
  0xc7   : > { %v502_v63 = vpop.permute.xlu0 %501 }
  0xc8   : > { %577 = vst.msk [vmem:[#allocation4 + $0xa8] sm:$0xff] %vm555_vm3, %v502_v63  ;;  %v4571_v63 = vld [vmem:[#allocation2 + $0x16a] sm:$0xff] }
  0xca   : > { %845 = vrot.lane.b32.xlu1 %v4297_v3, %s3936_s12 }
  0xcc   : > { %v504_v22 = vpop.permute.xlu1 %503 }
  0xcd   : > { %849 = vrot.lane.b32.xlu0 %v4301_v5, %s3936_s12  ;;  %578 = vst.msk [vmem:[#allocation4 + $0xb0] sm:$0xff] %vm555_vm3, %v504_v22  ;;  %706 = vrot.lane.b32.xlu2 %v4561_v10, %s3935_s11  ;;  %v518_v22 = vpop.permute.xlu2 %517 }
  0xce   : > { %585 = vst.msk [vmem:[#allocation4 + $0xe8] sm:$0xff] %vm555_vm3, %v518_v22  ;;  %v297_v22 = vld [vmem:[%s4045_s9 + $0xf0] sm:$0xff] }
  0xcf   : > { %v508_v2 = vpop.permute.xlu0 %507  ;;  %329 = vst.msk [vmem:[#allocation2 + $0x181] sm:$0xff] %vm224_vm0, %v297_v22 }
  0xd0   : > { %580 = vst.msk [vmem:[#allocation4 + $0xc0] sm:$0xff] %vm555_vm3, %v508_v2 }
  0xd2   : > { %851 = vrot.lane.b32.xlu1 %v4316_v9, %s3936_s12 }
  0xd4   : > { %v510_v3 = vpop.permute.xlu1 %509 }
  0xd5   : > { %855 = vrot.lane.b32.xlu0 %v4335_v14, %s3936_s12  ;;  %581 = vst.msk [vmem:[#allocation4 + $0xc8] sm:$0xff] %vm555_vm3, %v510_v3  ;;  %712 = vrot.lane.b32.xlu2 %v4571_v63, %s3935_s11  ;;  %v653_v3 = vpop.permute.xlu2 %652 }
  0xd6   : > { %749 = vst.msk [vmem:[#allocation4] sm:$0xff] %vm748_vm4, %v653_v3 }
  0xd7   : > { %v514_v5 = vpop.permute.xlu0 %513 }
  0xd8   : > { %583 = vst.msk [vmem:[#allocation4 + $0xd8] sm:$0xff] %vm555_vm3, %v514_v5 }
  0xda   : > { %857 = vrot.lane.b32.xlu1 %v4341_v16, %s3936_s12 }
  0xdc   : > { %v516_v9 = vpop.permute.xlu1 %515 }
  0xdd   : > { %861 = vrot.lane.b32.xlu0 %v4357_v27, %s3936_s12  ;;  %584 = vst.msk [vmem:[#allocation4 + $0xe0] sm:$0xff] %vm555_vm3, %v516_v9  ;;  %847 = vrot.lane.b32.xlu2 %v4307_v6, %s3936_s12 }
  0xdf   : > { %v520_v2 = vpop.permute.xlu0 %519 }
  0xe0   : > { %586 = vst.msk [vmem:[#allocation4 + $0xf0] sm:$0xff] %vm555_vm3, %v520_v2 }
  0xe2   : > { %863 = vrot.lane.b32.xlu1 %v4363_v29, %s3936_s12  ;;  %v659_v29 = vpop.permute.xlu2 %658 }
  0xe3   : > { %752 = vst.msk [vmem:[#allocation4 + $0x18] sm:$0xff] %vm748_vm4, %v659_v29  ;;  %v298_v29 = vld [vmem:[%s4045_s9 + $0xf8] sm:$0xff] }
  0xe4   : > { %v522_v16 = vpop.permute.xlu1 %521  ;;  %330 = vst.msk [vmem:[#allocation2 + $0x189] sm:$0xff] %vm224_vm0, %v298_v29 }
  0xe5   : > { %867 = vrot.lane.b32.xlu0 %v4384_v45, %s3936_s12  ;;  %587 = vst.msk [vmem:[#allocation4 + $0xf8] sm:$0xff] %vm555_vm3, %v522_v16  ;;  %853 = vrot.lane.b32.xlu2 %v4310_v7, %s3936_s12 }
  0xe7   : > { %v655_v5 = vpop.permute.xlu0 %654 }
  0xe8   : > { %750 = vst.msk [vmem:[#allocation4 + $0x8] sm:$0xff] %vm748_vm4, %v655_v5 }
  0xea   : > { %869 = vrot.lane.b32.xlu1 %v4390_v50, %s3936_s12  ;;  %v665_v50 = vpop.permute.xlu2 %664 }
  0xeb   : > { %755 = vst.msk [vmem:[#allocation4 + $0x30] sm:$0xff] %vm748_vm4, %v665_v50  ;;  %v4678_v29 = vld [vmem:[#allocation2 + $0x188] sm:$0xff] }
  0xec   : > { %v657_v6 = vpop.permute.xlu1 %656 }
  0xed   : > { %873 = vrot.lane.b32.xlu0 %v4411_v23, %s3936_s12  ;;  %751 = vst.msk [vmem:[#allocation4 + $0x10] sm:$0xff] %vm748_vm4, %v657_v6  ;;  %859 = vrot.lane.b32.xlu2 %v4337_v15, %s3936_s12 }
  0xef   : > { %v661_v9 = vpop.permute.xlu0 %660 }
  0xf0   : > { %753 = vst.msk [vmem:[#allocation4 + $0x20] sm:$0xff] %vm748_vm4, %v661_v9 }
  0xf2   : > { %875 = vrot.lane.b32.xlu1 %v4417_v40, %s3936_s12 }
  0xf4   : > { %v663_v7 = vpop.permute.xlu1 %662 }
  0xf5   : > { %879 = vrot.lane.b32.xlu0 %v4438_v41, %s3936_s12  ;;  %754 = vst.msk [vmem:[#allocation4 + $0x28] sm:$0xff] %vm748_vm4, %v663_v7  ;;  %865 = vrot.lane.b32.xlu2 %v4359_v28, %s3936_s12 }
  0xf7   : > { %v667_v2 = vpop.permute.xlu0 %666  ;;  %v671_v16 = vpop.permute.xlu2 %670 }
  0xf8   : > { %756 = vst.msk [vmem:[#allocation4 + $0x38] sm:$0xff] %vm748_vm4, %v667_v2 }
  0xf9   : > { %758 = vst.msk [vmem:[#allocation4 + $0x48] sm:$0xff] %vm748_vm4, %v671_v16 }
  0xfa   : > { %881 = vrot.lane.b32.xlu1 %v4444_v61, %s3936_s12 }
  0xfc   : > { %v669_v40 = vpop.permute.xlu1 %668 }
  0xfd   : > { %885 = vrot.lane.b32.xlu0 %v4465_v17, %s3936_s12  ;;  %757 = vst.msk [vmem:[#allocation4 + $0x40] sm:$0xff] %vm748_vm4, %v669_v40  ;;  %871 = vrot.lane.b32.xlu2 %v4386_v46, %s3936_s12  ;;  %v4648_v40 = vld [vmem:[#allocation2 + $0x180] sm:$0xff] }
  0xff   : > { %v673_v3 = vpop.permute.xlu0 %672  ;;  %v677_v5 = vpop.permute.xlu2 %676 }
 0x100   : > { %759 = vst.msk [vmem:[#allocation4 + $0x50] sm:$0xff] %vm748_vm4, %v673_v3 }
 0x101   : > { %761 = vst.msk [vmem:[#allocation4 + $0x60] sm:$0xff] %vm748_vm4, %v677_v5 }
 0x102   : > { %887 = vrot.lane.b32.xlu1 %v4471_v4, %s3936_s12 }
 0x104   : > { %v675_v61 = vpop.permute.xlu1 %674 }
 0x105   : > { %891 = vrot.lane.b32.xlu0 %v4492_v62, %s3936_s12  ;;  %760 = vst.msk [vmem:[#allocation4 + $0x58] sm:$0xff] %vm748_vm4, %v675_v61  ;;  %877 = vrot.lane.b32.xlu2 %v4413_v33, %s3936_s12 }
 0x107   : > { %v679_v6 = vpop.permute.xlu0 %678  ;;  %v683_v9 = vpop.permute.xlu2 %682 }
 0x108   : > { %762 = vst.msk [vmem:[#allocation4 + $0x68] sm:$0xff] %vm748_vm4, %v679_v6 }
 0x109   : > { %764 = vst.msk [vmem:[#allocation4 + $0x78] sm:$0xff] %vm748_vm4, %v683_v9 }
 0x10a   : > { %893 = vrot.lane.b32.xlu1 %v4498_v0, %s3936_s12 }
 0x10c   : > { %v681_v4 = vpop.permute.xlu1 %680 }
 0x10d   : > { %897 = vrot.lane.b32.xlu0 %v4519_v60, %s3936_s12  ;;  %763 = vst.msk [vmem:[#allocation4 + $0x70] sm:$0xff] %vm748_vm4, %v681_v4  ;;  %883 = vrot.lane.b32.xlu2 %v4440_v34, %s3936_s12 }
 0x10f   : > { %v685_v22 = vpop.permute.xlu0 %684  ;;  %v689_v50 = vpop.permute.xlu2 %688 }
 0x110   : > { %765 = vst.msk [vmem:[#allocation4 + $0x80] sm:$0xff] %vm748_vm4, %v685_v22 }
 0x111   : > { %767 = vst.msk [vmem:[#allocation4 + $0x90] sm:$0xff] %vm748_vm4, %v689_v50  ;;  %v4753_v50 = vld [vmem:[#allocation2 + $0x189] sm:$0xff] }
 0x112   : > { %899 = vrot.lane.b32.xlu1 %v4525_v21, %s3936_s12 }
 0x114   : > { %v687_v7 = vpop.permute.xlu1 %686 }
 0x115   : > { %903 = vrot.lane.b32.xlu0 %v4546_v58, %s3936_s12  ;;  %766 = vst.msk [vmem:[#allocation4 + $0x88] sm:$0xff] %vm748_vm4, %v687_v7  ;;  %889 = vrot.lane.b32.xlu2 %v4467_v39, %s3936_s12  ;;  %v4745_v7 = vld [vmem:[#allocation2 + $0x181] sm:$0xff] }
 0x117   : > { %v691_v2 = vpop.permute.xlu0 %690  ;;  %v695_v3 = vpop.permute.xlu2 %694 }
 0x118   : > { %768 = vst.msk [vmem:[#allocation4 + $0x98] sm:$0xff] %vm748_vm4, %v691_v2 }
 0x119   : > { %770 = vst.msk [vmem:[#allocation4 + $0xa8] sm:$0xff] %vm748_vm4, %v695_v3  ;;  %v5763_v3 = vld [vmem:[#allocation12_spill] sm:$0xff] }
 0x11a   : > { %905 = vrot.lane.b32.xlu1 %v4648_v40, %s3936_s12 }
 0x11c   : > { %v693_v16 = vpop.permute.xlu1 %692 }
 0x11d   : > { %1038 = vrot.lane.b32.xlu0 %v4067_v12, %s3937_s13  ;;  %769 = vst.msk [vmem:[#allocation4 + $0xa0] sm:$0xff] %vm748_vm4, %v693_v16  ;;  %895 = vrot.lane.b32.xlu2 %v4494_v13, %s3936_s12 }
 0x11f   : > { %v697_v61 = vpop.permute.xlu0 %696  ;;  %v701_v12 = vpop.permute.xlu2 %700 }
 0x120   : > { %771 = vst.msk [vmem:[#allocation4 + $0xb0] sm:$0xff] %vm748_vm4, %v697_v61  ;;  %v5764_v61 = vld [vmem:[#allocation9_spill] sm:$0xff] }
 0x121   : > { %773 = vst.msk [vmem:[#allocation4 + $0xc0] sm:$0xff] %vm748_vm4, %v701_v12 }
 0x122   : > { %1040 = vrot.lane.b32.xlu1 %v4082_v18, %s3937_s13 }
 0x124   : > { %v699_v5 = vpop.permute.xlu1 %698 }
 0x125   : > { %1044 = vrot.lane.b32.xlu0 %v4100_v24, %s3937_s13  ;;  %772 = vst.msk [vmem:[#allocation4 + $0xb8] sm:$0xff] %vm748_vm4, %v699_v5  ;;  %901 = vrot.lane.b32.xlu2 %v4521_v1, %s3936_s12  ;;  %v5765_v5 = vld [vmem:[#allocation21_spill] sm:$0xff] }
 0x127   : > { %v703_v6 = vpop.permute.xlu0 %702  ;;  %v707_v24 = vpop.permute.xlu2 %706 }
 0x128   : > { %774 = vst.msk [vmem:[#allocation4 + $0xc8] sm:$0xff] %vm748_vm4, %v703_v6 }
 0x129   : > { %776 = vst.msk [vmem:[#allocation4 + $0xd8] sm:$0xff] %vm748_vm4, %v707_v24  ;;  %v5767_v24 = vld [vmem:[#allocation10_spill] sm:$0xff] }
 0x12a   : > { %1046 = vrot.lane.b32.xlu1 %v4091_v20, %s3937_s13 }
 0x12c   : > { %v705_v18 = vpop.permute.xlu1 %704 }
 0x12d   : > { %1050 = vrot.lane.b32.xlu0 %v4118_v30, %s3937_s13  ;;  %775 = vst.msk [vmem:[#allocation4 + $0xd0] sm:$0xff] %vm748_vm4, %v705_v18  ;;  %907 = vrot.lane.b32.xlu2 %v4678_v29, %s3936_s12  ;;  %v5766_v18 = vld [vmem:[#allocation14_spill] sm:$0xff] }
 0x12f   : > { %v709_v4 = vpop.permute.xlu0 %708  ;;  %v713_v30 = vpop.permute.xlu2 %712 }
 0x130   : > { %777 = vst.msk [vmem:[#allocation4 + $0xe0] sm:$0xff] %vm748_vm4, %v709_v4 }
 0x131   : > { %779 = vst.msk [vmem:[#allocation4 + $0xf0] sm:$0xff] %vm748_vm4, %v713_v30 }
 0x132   : > { %1052 = vrot.lane.b32.xlu1 %v4109_v26, %s3937_s13 }
 0x134   : > { %v711_v20 = vpop.permute.xlu1 %710 }
 0x135   : > { %1056 = vrot.lane.b32.xlu0 %v4136_v36, %s3937_s13  ;;  %778 = vst.msk [vmem:[#allocation4 + $0xe8] sm:$0xff] %vm748_vm4, %v711_v20  ;;  %1042 = vrot.lane.b32.xlu2 %v4085_v19, %s3937_s13  ;;  %v5768_v20 = vld [vmem:[#allocation24_spill] sm:$0xff] }
 0x137   : > { %v715_v9 = vpop.permute.xlu0 %714  ;;  %v848_v36 = vpop.permute.xlu2 %847 }
 0x138   : > { %780 = vst.msk [vmem:[#allocation4 + $0xf8] sm:$0xff] %vm748_vm4, %v715_v9 }
 0x139   : > { %943 = vst.msk [vmem:[#allocation4 + $0x8] sm:$0xff] %vm941_vm5, %v848_v36  ;;  %v5770_v36 = vld [vmem:[#allocation11_spill] sm:$0xff] }
 0x13a   : > { %1058 = vrot.lane.b32.xlu1 %v4127_v32, %s3937_s13 }
 0x13c   : > { %v846_v26 = vpop.permute.xlu1 %845 }
 0x13d   : > { %1062 = vrot.lane.b32.xlu0 %v4154_v42, %s3937_s13  ;;  %942 = vst.msk [vmem:[#allocation4] sm:$0xff] %vm941_vm5, %v846_v26  ;;  %1048 = vrot.lane.b32.xlu2 %v4103_v25, %s3937_s13  ;;  %v5769_v26 = vld [vmem:[#allocation16_spill] sm:$0xff] }
 0x13f   : > { %v850_v22 = vpop.permute.xlu0 %849  ;;  %v854_v32 = vpop.permute.xlu2 %853 }
 0x140   : > { %944 = vst.msk [vmem:[#allocation4 + $0x10] sm:$0xff] %vm941_vm5, %v850_v22 }
 0x141   : > { %946 = vst.msk [vmem:[#allocation4 + $0x20] sm:$0xff] %vm941_vm5, %v854_v32 }
 0x142   : > { %1064 = vrot.lane.b32.xlu1 %v4145_v38, %s3937_s13 }
 0x144   : > { %v852_v19 = vpop.permute.xlu1 %851 }
 0x145   : > { %1068 = vrot.lane.b32.xlu0 %v4171_v47, %s3937_s13  ;;  %945 = vst.msk [vmem:[#allocation4 + $0x18] sm:$0xff] %vm941_vm5, %v852_v19  ;;  %1054 = vrot.lane.b32.xlu2 %v4121_v31, %s3937_s13  ;;  %v5771_v19 = vld [vmem:[#allocation27_spill] sm:$0xff] }
 0x147   : > { %v856_v42 = vpop.permute.xlu0 %855  ;;  %v860_v25 = vpop.permute.xlu2 %859 }
 0x148   : > { %947 = vst.msk [vmem:[#allocation4 + $0x28] sm:$0xff] %vm941_vm5, %v856_v42 }
 0x149   : > { %949 = vst.msk [vmem:[#allocation4 + $0x38] sm:$0xff] %vm941_vm5, %v860_v25  ;;  %v5773_v25 = vld [vmem:[#allocation13_spill] sm:$0xff] }
 0x14a   : > { %1070 = vrot.lane.b32.xlu1 %v4163_v44, %s3937_s13 }
 0x14c   : > { %v858_v38 = vpop.permute.xlu1 %857 }
 0x14d   : > { %1074 = vrot.lane.b32.xlu0 %v4185_v51, %s3937_s13  ;;  %948 = vst.msk [vmem:[#allocation4 + $0x30] sm:$0xff] %vm941_vm5, %v858_v38  ;;  %1060 = vrot.lane.b32.xlu2 %v4139_v37, %s3937_s13  ;;  %v5772_v38 = vld [vmem:[#allocation19_spill] sm:$0xff] }
 0x14f   : > { %v862_v47 = vpop.permute.xlu0 %861  ;;  %v866_v31 = vpop.permute.xlu2 %865 }
 0x150   : > { %950 = vst.msk [vmem:[#allocation4 + $0x40] sm:$0xff] %vm941_vm5, %v862_v47 }
 0x151   : > { %952 = vst.msk [vmem:[#allocation4 + $0x50] sm:$0xff] %vm941_vm5, %v866_v31 }
 0x152   : > { %1076 = vrot.lane.b32.xlu1 %v4179_v49, %s3937_s13 }
 0x154   : > { %v864_v44 = vpop.permute.xlu1 %863 }
 0x155   : > { %1080 = vrot.lane.b32.xlu0 %v4203_v54, %s3937_s13  ;;  %951 = vst.msk [vmem:[#allocation4 + $0x48] sm:$0xff] %vm941_vm5, %v864_v44  ;;  %1066 = vrot.lane.b32.xlu2 %v4157_v43, %s3937_s13  ;;  %v5774_v44 = vld [vmem:[#allocation30_spill] sm:$0xff] }
 0x157   : > { %v868_v51 = vpop.permute.xlu0 %867  ;;  %v872_v37 = vpop.permute.xlu2 %871 }
 0x158   : > { %953 = vst.msk [vmem:[#allocation4 + $0x58] sm:$0xff] %vm941_vm5, %v868_v51 }
 0x159   : > { %955 = vst.msk [vmem:[#allocation4 + $0x68] sm:$0xff] %vm941_vm5, %v872_v37  ;;  %v5776_v37 = vld [vmem:[#allocation15_spill] sm:$0xff] }
 0x15a   : > { %1082 = vrot.lane.b32.xlu1 %v4193_v53, %s3937_s13 }
 0x15c   : > { %v870_v49 = vpop.permute.xlu1 %869 }
 0x15d   : > { %1086 = vrot.lane.b32.xlu0 %v4231_v57, %s3937_s13  ;;  %954 = vst.msk [vmem:[#allocation4 + $0x60] sm:$0xff] %vm941_vm5, %v870_v49  ;;  %1072 = vrot.lane.b32.xlu2 %v4173_v48, %s3937_s13  ;;  %v5775_v49 = vld [vmem:[#allocation22_spill] sm:$0xff] }
 0x15f   : > { %v874_v54 = vpop.permute.xlu0 %873  ;;  %v878_v43 = vpop.permute.xlu2 %877 }
 0x160   : > { %956 = vst.msk [vmem:[#allocation4 + $0x70] sm:$0xff] %vm941_vm5, %v874_v54 }
 0x161   : > { %958 = vst.msk [vmem:[#allocation4 + $0x80] sm:$0xff] %vm941_vm5, %v878_v43 }
 0x162   : > { %1088 = vrot.lane.b32.xlu1 %v4219_v56, %s3937_s13 }
 0x164   : > { %v876_v53 = vpop.permute.xlu1 %875 }
 0x165   : > { %1092 = vrot.lane.b32.xlu0 %v4326_v11, %s3937_s13  ;;  %957 = vst.msk [vmem:[#allocation4 + $0x78] sm:$0xff] %vm941_vm5, %v876_v53  ;;  %1078 = vrot.lane.b32.xlu2 %v4187_v52, %s3937_s13  ;;  %v5777_v53 = vld [vmem:[#allocation33_spill] sm:$0xff] }
 0x167   : > { %v880_v57 = vpop.permute.xlu0 %879  ;;  %v884_v56 = vpop.permute.xlu2 %883 }
 0x168   : > { %959 = vst.msk [vmem:[#allocation4 + $0x88] sm:$0xff] %vm941_vm5, %v880_v57 }
 0x169   : > { %961 = vst.msk [vmem:[#allocation4 + $0x98] sm:$0xff] %vm941_vm5, %v884_v56  ;;  %v5779_v56 = vld [vmem:[#allocation17_spill] sm:$0xff] }
 0x16a   : > { %1094 = vrot.lane.b32.xlu1 %v4247_v59, %s3937_s13  ;;  %v5762_v59 = vld [vmem:[#allocation18_spill] sm:$0xff] }
 0x16c   : > { %v882_v48 = vpop.permute.xlu1 %881 }
 0x16d   : > { %1098 = vrot.lane.b32.xlu0 %v4745_v7, %s3937_s13  ;;  %960 = vst.msk [vmem:[#allocation4 + $0x90] sm:$0xff] %vm941_vm5, %v882_v48  ;;  %1084 = vrot.lane.b32.xlu2 %v4207_v55, %s3937_s13  ;;  %v5778_v48 = vld [vmem:[#allocation25_spill] sm:$0xff] }
 0x16f   : > { %v886_v11 = vpop.permute.xlu0 %885  ;;  %v890_v2 = vpop.permute.xlu2 %889 }
 0x170   : > { %962 = vst.msk [vmem:[#allocation4 + $0xa0] sm:$0xff] %vm941_vm5, %v886_v11 }
 0x171   : > { %964 = vst.msk [vmem:[#allocation4 + $0xb0] sm:$0xff] %vm941_vm5, %v890_v2  ;;  %v5780_v2 = vld [vmem:[#allocation28_spill] sm:$0xff] }
 0x172   : > { %1100 = vrot.lane.b32.xlu1 %v4753_v50, %s3937_s13 }
 0x174   : > { %v888_v52 = vpop.permute.xlu1 %887 }
 0x175   : > { %1233 = vrot.lane.b32.xlu0 %v5762_v59, %s3938_s14  ;;  %963 = vst.msk [vmem:[#allocation4 + $0xa8] sm:$0xff] %vm941_vm5, %v888_v52  ;;  %1090 = vrot.lane.b32.xlu2 %v5764_v61, %s3937_s13 }
 0x177   : > { %v892_v16 = vpop.permute.xlu0 %891  ;;  %v896_v12 = vpop.permute.xlu2 %895 }
 0x178   : > { %965 = vst.msk [vmem:[#allocation4 + $0xb8] sm:$0xff] %vm941_vm5, %v892_v16  ;;  %v5781_v16 = vld [vmem:[#allocation20_spill] sm:$0xff] }
 0x179   : > { %967 = vst.msk [vmem:[#allocation4 + $0xc8] sm:$0xff] %vm941_vm5, %v896_v12 }
 0x17a   : > { %1235 = vrot.lane.b32.xlu1 %v5763_v3, %s3938_s14 }
 0x17c   : > { %v894_v55 = vpop.permute.xlu1 %893 }
 0x17d   : > { %1239 = vrot.lane.b32.xlu0 %v5765_v5, %s3938_s14  ;;  %966 = vst.msk [vmem:[#allocation4 + $0xc0] sm:$0xff] %vm941_vm5, %v894_v55  ;;  %1096 = vrot.lane.b32.xlu2 %v5767_v24, %s3937_s13  ;;  %v5782_v55 = vld [vmem:[#allocation31_spill] sm:$0xff]  ;;  %v5785_v24 = vld [vmem:[#allocation26_spill] sm:$0xff] }
 0x17e   : > { %v5783_v5 = vld [vmem:[#allocation23_spill] sm:$0xff] }
 0x17f   : > { %v898_v6 = vpop.permute.xlu0 %897  ;;  %v902_v30 = vpop.permute.xlu2 %901 }
 0x180   : > { %968 = vst.msk [vmem:[#allocation4 + $0xd0] sm:$0xff] %vm941_vm5, %v898_v6 }
 0x181   : > { %970 = vst.msk [vmem:[#allocation4 + $0xe0] sm:$0xff] %vm941_vm5, %v902_v30  ;;  %v5786_v30 = vld [vmem:[#allocation36_spill] sm:$0xff] }
 0x182   : > { %1241 = vrot.lane.b32.xlu1 %v5766_v18, %s3938_s14  ;;  %v5784_v18 = vld [vmem:[#allocation34_spill] sm:$0xff] }
 0x184   : > { %v900_v4 = vpop.permute.xlu1 %899 }
 0x185   : > { %1245 = vrot.lane.b32.xlu0 %v5768_v20, %s3938_s14  ;;  %969 = vst.msk [vmem:[#allocation4 + $0xd8] sm:$0xff] %vm941_vm5, %v900_v4  ;;  %1231 = vrot.lane.b32.xlu2 %v5770_v36, %s3938_s14 }
 0x187   : > { %v904_v9 = vpop.permute.xlu0 %903  ;;  %v908_v32 = vpop.permute.xlu2 %907 }
 0x188   : > { %971 = vst.msk [vmem:[#allocation4 + $0xe8] sm:$0xff] %vm941_vm5, %v904_v9  ;;  %v4848_v9 = vld [vmem:[#allocation2 + $0x18a] sm:$0xff] }
 0x189   : > { %973 = vst.msk [vmem:[#allocation4 + $0xf8] sm:$0xff] %vm941_vm5, %v908_v32  ;;  %v1363_v32 = vld [vmem:[#allocation2 + $0x48] sm:$0xff] }
 0x18a   : > { %1247 = vrot.lane.b32.xlu1 %v5769_v26, %s3938_s14  ;;  %v5787_v26 = vld [vmem:[#allocation29_spill] sm:$0xff] }
 0x18c   : > { %v906_v22 = vpop.permute.xlu1 %905 }
 0x18d   : > { %1251 = vrot.lane.b32.xlu0 %v5771_v19, %s3938_s14  ;;  %972 = vst.msk [vmem:[#allocation4 + $0xf0] sm:$0xff] %vm941_vm5, %v906_v22  ;;  %1237 = vrot.lane.b32.xlu2 %v5773_v25, %s3938_s14  ;;  %v1361_v19 = vld [vmem:[#allocation2 + $0x30] sm:$0xff] }
 0x18f   : > { %v1039_v42 = vpop.permute.xlu0 %1038  ;;  %v1043_v31 = vpop.permute.xlu2 %1042 }
 0x190   : > { %1135 = vst.msk [vmem:[#allocation4] sm:$0xff] %vm1134_vm6, %v1039_v42  ;;  %v5788_v42 = vld [vmem:[#allocation32_spill] sm:$0xff] }
 0x191   : > { %1137 = vst.msk [vmem:[#allocation4 + $0x10] sm:$0xff] %vm1134_vm6, %v1043_v31 }
 0x192   : > { %1253 = vrot.lane.b32.xlu1 %v5772_v38, %s3938_s14 }
 0x194   : > { %v1041_v47 = vpop.permute.xlu1 %1040 }
 0x195   : > { %1257 = vrot.lane.b32.xlu0 %v5774_v44, %s3938_s14  ;;  %1136 = vst.msk [vmem:[#allocation4 + $0x8] sm:$0xff] %vm1134_vm6, %v1041_v47  ;;  %1243 = vrot.lane.b32.xlu2 %v5776_v37, %s3938_s14  ;;  %v5789_v44 = vld [vmem:[#allocation35_spill] sm:$0xff]  ;;  %v4873_v37 = vld [vmem:[#allocation2 + $0x182] sm:$0xff] }
 0x197   : > { %v1045_v51 = vpop.permute.xlu0 %1044  ;;  %v1049_v43 = vpop.permute.xlu2 %1048 }
 0x198   : > { %1138 = vst.msk [vmem:[#allocation4 + $0x18] sm:$0xff] %vm1134_vm6, %v1045_v51 }
 0x199   : > { %1140 = vst.msk [vmem:[#allocation4 + $0x28] sm:$0xff] %vm1134_vm6, %v1049_v43 }
 0x19a   : > { %1259 = vrot.lane.b32.xlu1 %v5775_v49, %s3938_s14 }
 0x19c   : > { %v1047_v54 = vpop.permute.xlu1 %1046 }
 0x19d   : > { %1263 = vrot.lane.b32.xlu0 %v5777_v53, %s3938_s14  ;;  %1139 = vst.msk [vmem:[#allocation4 + $0x20] sm:$0xff] %vm1134_vm6, %v1047_v54  ;;  %1249 = vrot.lane.b32.xlu2 %v5779_v56, %s3938_s14  ;;  %v1362_v53 = vld [vmem:[#allocation2 + $0x38] sm:$0xff]  ;;  %v1368_v56 = vld [vmem:[#allocation2 + $0x80] sm:$0xff] }
 0x19f   : > { %v1051_v57 = vpop.permute.xlu0 %1050  ;;  %v1055_v52 = vpop.permute.xlu2 %1054 }
 0x1a0   : > { %1141 = vst.msk [vmem:[#allocation4 + $0x30] sm:$0xff] %vm1134_vm6, %v1051_v57  ;;  %v1365_v57 = vld [vmem:[#allocation2 + $0x60] sm:$0xff] }
 0x1a1   : > { %1143 = vst.msk [vmem:[#allocation4 + $0x40] sm:$0xff] %vm1134_vm6, %v1055_v52  ;;  %v1371_v52 = vld [vmem:[#allocation2 + $0xa8] sm:$0xff] }
 0x1a2   : > { %1265 = vrot.lane.b32.xlu1 %v5778_v48, %s3938_s14 }
 0x1a4   : > { %v1053_v11 = vpop.permute.xlu1 %1052 }
 0x1a5   : > { %1269 = vrot.lane.b32.xlu0 %v4532_v8, %s3938_s14  ;;  %1142 = vst.msk [vmem:[#allocation4 + $0x38] sm:$0xff] %vm1134_vm6, %v1053_v11  ;;  %1255 = vrot.lane.b32.xlu2 %v5781_v16, %s3938_s14 }
 0x1a7   : > { %v1057_v59 = vpop.permute.xlu0 %1056  ;;  %v1061_v8 = vpop.permute.xlu2 %1060 }
 0x1a8   : > { %1144 = vst.msk [vmem:[#allocation4 + $0x48] sm:$0xff] %vm1134_vm6, %v1057_v59 }
 0x1a9   : > { %1146 = vst.msk [vmem:[#allocation4 + $0x58] sm:$0xff] %vm1134_vm6, %v1061_v8 }
 0x1aa   : > { %1271 = vrot.lane.b32.xlu1 %v5780_v2, %s3938_s14  ;;  %v1374_v2 = vld [vmem:[#allocation2 + $0xc8] sm:$0xff] }
 0x1ac   : > { %v1059_v3 = vpop.permute.xlu1 %1058 }
 0x1ad   : > { %1275 = vrot.lane.b32.xlu0 %v4551_v35, %s3938_s14  ;;  %1145 = vst.msk [vmem:[#allocation4 + $0x50] sm:$0xff] %vm1134_vm6, %v1059_v3  ;;  %1261 = vrot.lane.b32.xlu2 %v5783_v5, %s3938_s14  ;;  %v1377_v3 = vld [vmem:[#allocation2 + $0xf0] sm:$0xff]  ;;  %v1391_v5 = vld [vmem:[#allocation2 + $0x198] sm:$0xff] }
 0x1af   : > { %v1063_v61 = vpop.permute.xlu0 %1062  ;;  %v1067_v35 = vpop.permute.xlu2 %1066 }
 0x1b0   : > { %1147 = vst.msk [vmem:[#allocation4 + $0x60] sm:$0xff] %vm1134_vm6, %v1063_v61  ;;  %v1380_v61 = vld [vmem:[#allocation2 + $0x110] sm:$0xff] }
 0x1b1   : > { %1149 = vst.msk [vmem:[#allocation4 + $0x70] sm:$0xff] %vm1134_vm6, %v1067_v35 }
 0x1b2   : > { %1277 = vrot.lane.b32.xlu1 %v5782_v55, %s3938_s14 }
 0x1b4   : > { %v1065_v12 = vpop.permute.xlu1 %1064 }
 0x1b5   : > { %1281 = vrot.lane.b32.xlu0 %v4561_v10, %s3938_s14  ;;  %1148 = vst.msk [vmem:[#allocation4 + $0x68] sm:$0xff] %vm1134_vm6, %v1065_v12  ;;  %1267 = vrot.lane.b32.xlu2 %v5785_v24, %s3938_s14  ;;  %v1554_v12 = vld [vmem:[#allocation2 + $0x31] sm:$0xff] }
 0x1b7   : > { %v1069_v6 = vpop.permute.xlu0 %1068  ;;  %v1073_v10 = vpop.permute.xlu2 %1072 }
 0x1b8   : > { %1150 = vst.msk [vmem:[#allocation4 + $0x78] sm:$0xff] %vm1134_vm6, %v1069_v6  ;;  %v1555_v6 = vld [vmem:[#allocation2 + $0x39] sm:$0xff] }
 0x1b9   : > { %1152 = vst.msk [vmem:[#allocation4 + $0x88] sm:$0xff] %vm1134_vm6, %v1073_v10  ;;  %v1558_v10 = vld [vmem:[#allocation2 + $0x61] sm:$0xff] }
 0x1ba   : > { %1283 = vrot.lane.b32.xlu1 %v5784_v18, %s3938_s14  ;;  %v1557_v18 = vld [vmem:[#allocation2 + $0x51] sm:$0xff] }
 0x1bc   : > { %v1071_v4 = vpop.permute.xlu1 %1070 }
 0x1bd   : > { %1287 = vrot.lane.b32.xlu0 %v4571_v63, %s3938_s14  ;;  %1151 = vst.msk [vmem:[#allocation4 + $0x80] sm:$0xff] %vm1134_vm6, %v1071_v4  ;;  %1273 = vrot.lane.b32.xlu2 %v5787_v26, %s3938_s14 }
 0x1bf   : > { %v1075_v20 = vpop.permute.xlu0 %1074  ;;  %v1079_v63 = vpop.permute.xlu2 %1078 }
 0x1c0   : > { %1153 = vst.msk [vmem:[#allocation4 + $0x90] sm:$0xff] %vm1134_vm6, %v1075_v20  ;;  %v1560_v20 = vld [vmem:[#allocation2 + $0x79] sm:$0xff] }
 0x1c1   : > { %1155 = vst.msk [vmem:[#allocation4 + $0xa0] sm:$0xff] %vm1134_vm6, %v1079_v63  ;;  %v1392_v63 = vld [vmem:[#allocation2 + $0x1a0] sm:$0xff] }
 0x1c2   : > { %1289 = vrot.lane.b32.xlu1 %v5786_v30, %s3938_s14 }
 0x1c4   : > { %v1077_v36 = vpop.permute.xlu1 %1076 }
 0x1c5   : > { %1293 = vrot.lane.b32.xlu0 %v4848_v9, %s3938_s14  ;;  %1154 = vst.msk [vmem:[#allocation4 + $0x98] sm:$0xff] %vm1134_vm6, %v1077_v36  ;;  %1279 = vrot.lane.b32.xlu2 %v5788_v42, %s3938_s14  ;;  %v1561_v36 = vld [vmem:[#allocation2 + $0x81] sm:$0xff]  ;;  %v1564_v42 = vld [vmem:[#allocation2 + $0xa9] sm:$0xff] }
 0x1c7   : > { %v1081_v22 = vpop.permute.xlu0 %1080  ;;  %v1085_v25 = vpop.permute.xlu2 %1084 }
 0x1c8   : > { %1156 = vst.msk [vmem:[#allocation4 + $0xa8] sm:$0xff] %vm1134_vm6, %v1081_v22  ;;  %v1563_v22 = vld [vmem:[#allocation2 + $0x99] sm:$0xff] }
 0x1c9   : > { %1158 = vst.msk [vmem:[#allocation4 + $0xb8] sm:$0xff] %vm1134_vm6, %v1085_v25  ;;  %v1566_v25 = vld [vmem:[#allocation2 + $0xc1] sm:$0xff] }
 0x1ca   : > { %1425 = vrot.lane.b32.xlu1 %v1361_v19, %s3939_s15 }
 0x1cc   : > { %v1083_v38 = vpop.permute.xlu1 %1082 }
 0x1cd   : > { %1429 = vrot.lane.b32.xlu0 %v1363_v32, %s3939_s15  ;;  %1157 = vst.msk [vmem:[#allocation4 + $0xb0] sm:$0xff] %vm1134_vm6, %v1083_v38  ;;  %1285 = vrot.lane.b32.xlu2 %v5789_v44, %s3938_s14  ;;  %v1556_v38 = vld [vmem:[#allocation2 + $0x49] sm:$0xff] }
 0x1cf   : > { %v1087_v47 = vpop.permute.xlu0 %1086  ;;  %v1091_v51 = vpop.permute.xlu2 %1090 }
 0x1d0   : > { %1159 = vst.msk [vmem:[#allocation4 + $0xc0] sm:$0xff] %vm1134_vm6, %v1087_v47 }
 0x1d1   : > { %1161 = vst.msk [vmem:[#allocation4 + $0xd0] sm:$0xff] %vm1134_vm6, %v1091_v51  ;;  %v1567_v51 = vld [vmem:[#allocation2 + $0xc9] sm:$0xff] }
 0x1d2   : > { %1431 = vrot.lane.b32.xlu1 %v4335_v14, %s3939_s15 }
 0x1d4   : > { %v1089_v31 = vpop.permute.xlu1 %1088 }
 0x1d5   : > { %1435 = vrot.lane.b32.xlu0 %v4337_v15, %s3939_s15  ;;  %1160 = vst.msk [vmem:[#allocation4 + $0xc8] sm:$0xff] %vm1134_vm6, %v1089_v31  ;;  %1291 = vrot.lane.b32.xlu2 %v4873_v37, %s3938_s14  ;;  %s3943_s14 = smov 48  }
 0x1d7   : > { %v1093_v49 = vpop.permute.xlu0 %1092  ;;  %v1097_v15 = vpop.permute.xlu2 %1096 }
 0x1d8   : > { %1162 = vst.msk [vmem:[#allocation4 + $0xd8] sm:$0xff] %vm1134_vm6, %v1093_v49  ;;  %v1559_v49 = vld [vmem:[#allocation2 + $0x69] sm:$0xff] }
 0x1d9   : > { %1164 = vst.msk [vmem:[#allocation4 + $0xe8] sm:$0xff] %vm1134_vm6, %v1097_v15 }
 0x1da   : > { %1437 = vrot.lane.b32.xlu1 %v4357_v27, %s3939_s15 }
 0x1dc   : > { %v1095_v14 = vpop.permute.xlu1 %1094 }
 0x1dd   : > { %1441 = vrot.lane.b32.xlu0 %v4359_v28, %s3939_s15  ;;  %1163 = vst.msk [vmem:[#allocation4 + $0xe0] sm:$0xff] %vm1134_vm6, %v1095_v14  ;;  %1427 = vrot.lane.b32.xlu2 %v1362_v53, %s3939_s15  ;;  %v1569_v14 = vld [vmem:[#allocation2 + $0xe1] sm:$0xff] }
 0x1df   : > { %v1099_v54 = vpop.permute.xlu0 %1098  ;;  %v1232_v28 = vpop.permute.xlu2 %1231 }
 0x1e0   : > { %1165 = vst.msk [vmem:[#allocation4 + $0xf0] sm:$0xff] %vm1134_vm6, %v1099_v54 }
 0x1e1   : > { %1328 = vst.msk [vmem:[#allocation4] sm:$0xff] %vm1327_vm7, %v1232_v28  ;;  %v1562_v28 = vld [vmem:[#allocation2 + $0x91] sm:$0xff] }
 0x1e2   : > { %1443 = vrot.lane.b32.xlu1 %v4384_v45, %s3939_s15 }
 0x1e4   : > { %v1101_v27 = vpop.permute.xlu1 %1100 }
 0x1e5   : > { %1447 = vrot.lane.b32.xlu0 %v4386_v46, %s3939_s15  ;;  %1166 = vst.msk [vmem:[#allocation4 + $0xf8] sm:$0xff] %vm1134_vm6, %v1101_v27  ;;  %1433 = vrot.lane.b32.xlu2 %v1365_v57, %s3939_s15  ;;  %v1570_v27 = vld [vmem:[#allocation2 + $0xf1] sm:$0xff]  ;;  %vm2446_vm6 = vcmask 261312  }
 0x1e7   : > { %v1234_v43 = vpop.permute.xlu0 %1233  ;;  %v1238_v46 = vpop.permute.xlu2 %1237 }
 0x1e8   : > { %1329 = vst.msk [vmem:[#allocation4 + $0x8] sm:$0xff] %vm1327_vm7, %v1234_v43  ;;  %v1572_v43 = vld [vmem:[#allocation2 + $0x109] sm:$0xff] }
 0x1e9   : > { %1331 = vst.msk [vmem:[#allocation4 + $0x18] sm:$0xff] %vm1327_vm7, %v1238_v46 }
 0x1ea   : > { %1449 = vrot.lane.b32.xlu1 %v4411_v23, %s3939_s15 }
 0x1ec   : > { %v1236_v45 = vpop.permute.xlu1 %1235 }
 0x1ed   : > { %1453 = vrot.lane.b32.xlu0 %v4413_v33, %s3939_s15  ;;  %1330 = vst.msk [vmem:[#allocation4 + $0x10] sm:$0xff] %vm1327_vm7, %v1236_v45  ;;  %1439 = vrot.lane.b32.xlu2 %v1368_v56, %s3939_s15  ;;  %v1565_v56 = vld [vmem:[#allocation2 + $0xb1] sm:$0xff] }
 0x1ef   : > { %v1240_v48 = vpop.permute.xlu0 %1239  ;;  %v1244_v33 = vpop.permute.xlu2 %1243 }
 0x1f0   : > { %1332 = vst.msk [vmem:[#allocation4 + $0x20] sm:$0xff] %vm1327_vm7, %v1240_v48  ;;  %v1573_v48 = vld [vmem:[#allocation2 + $0x111] sm:$0xff] }
 0x1f1   : > { %1334 = vst.msk [vmem:[#allocation4 + $0x30] sm:$0xff] %vm1327_vm7, %v1244_v33 }
 0x1f2   : > { %1455 = vrot.lane.b32.xlu1 %v4438_v41, %s3939_s15 }
 0x1f4   : > { %v1242_v23 = vpop.permute.xlu1 %1241 }
 0x1f5   : > { %1459 = vrot.lane.b32.xlu0 %v4440_v34, %s3939_s15  ;;  %1333 = vst.msk [vmem:[#allocation4 + $0x28] sm:$0xff] %vm1327_vm7, %v1242_v23  ;;  %1445 = vrot.lane.b32.xlu2 %v1371_v52, %s3939_s15  ;;  %v1575_v23 = vld [vmem:[#allocation2 + $0x129] sm:$0xff] }
 0x1f7   : > { %v1246_v11 = vpop.permute.xlu0 %1245  ;;  %v1250_v34 = vpop.permute.xlu2 %1249 }
 0x1f8   : > { %1335 = vst.msk [vmem:[#allocation4 + $0x38] sm:$0xff] %vm1327_vm7, %v1246_v11 }
 0x1f9   : > { %1337 = vst.msk [vmem:[#allocation4 + $0x48] sm:$0xff] %vm1327_vm7, %v1250_v34  ;;  %v1568_v34 = vld [vmem:[#allocation2 + $0xd9] sm:$0xff] }
 0x1fa   : > { %1461 = vrot.lane.b32.xlu1 %v4465_v17, %s3939_s15 }
 0x1fc   : > { %v1248_v41 = vpop.permute.xlu1 %1247 }
 0x1fd   : > { %1465 = vrot.lane.b32.xlu0 %v4467_v39, %s3939_s15  ;;  %1336 = vst.msk [vmem:[#allocation4 + $0x40] sm:$0xff] %vm1327_vm7, %v1248_v41  ;;  %1451 = vrot.lane.b32.xlu2 %v1374_v2, %s3939_s15  ;;  %v1576_v41 = vld [vmem:[#allocation2 + $0x139] sm:$0xff] }
 0x1ff   : > { %v1252_v59 = vpop.permute.xlu0 %1251  ;;  %v1256_v39 = vpop.permute.xlu2 %1255 }
 0x200   : > { %1338 = vst.msk [vmem:[#allocation4 + $0x50] sm:$0xff] %vm1327_vm7, %v1252_v59  ;;  %v1578_v59 = vld [vmem:[#allocation2 + $0x151] sm:$0xff] }
 0x201   : > { %1340 = vst.msk [vmem:[#allocation4 + $0x60] sm:$0xff] %vm1327_vm7, %v1256_v39 }
 0x202   : > { %1467 = vrot.lane.b32.xlu1 %v4492_v62, %s3939_s15 }
 0x204   : > { %v1254_v17 = vpop.permute.xlu1 %1253 }
 0x205   : > { %1471 = vrot.lane.b32.xlu0 %v4494_v13, %s3939_s15  ;;  %1339 = vst.msk [vmem:[#allocation4 + $0x58] sm:$0xff] %vm1327_vm7, %v1254_v17  ;;  %1457 = vrot.lane.b32.xlu2 %v1377_v3, %s3939_s15  ;;  %v1571_v3 = vld [vmem:[#allocation2 + $0xf9] sm:$0xff] }
 0x207   : > { %v1258_v16 = vpop.permute.xlu0 %1257  ;;  %v1262_v13 = vpop.permute.xlu2 %1261 }
 0x208   : > { %1341 = vst.msk [vmem:[#allocation4 + $0x68] sm:$0xff] %vm1327_vm7, %v1258_v16  ;;  %v1579_v16 = vld [vmem:[#allocation2 + $0x159] sm:$0xff] }
 0x209   : > { %1343 = vst.msk [vmem:[#allocation4 + $0x78] sm:$0xff] %vm1327_vm7, %v1262_v13 }
 0x20a   : > { %1473 = vrot.lane.b32.xlu1 %v4519_v60, %s3939_s15 }
 0x20c   : > { %v1260_v62 = vpop.permute.xlu1 %1259 }
 0x20d   : > { %1477 = vrot.lane.b32.xlu0 %v4521_v1, %s3939_s15  ;;  %1342 = vst.msk [vmem:[#allocation4 + $0x70] sm:$0xff] %vm1327_vm7, %v1260_v62  ;;  %1463 = vrot.lane.b32.xlu2 %v1380_v61, %s3939_s15  ;;  %v1581_v62 = vld [vmem:[#allocation2 + $0x171] sm:$0xff] }
 0x20f   : > { %v1264_v8 = vpop.permute.xlu0 %1263  ;;  %v1268_v1 = vpop.permute.xlu2 %1267 }
 0x210   : > { %1344 = vst.msk [vmem:[#allocation4 + $0x80] sm:$0xff] %vm1327_vm7, %v1264_v8 }
 0x211   : > { %1346 = vst.msk [vmem:[#allocation4 + $0x90] sm:$0xff] %vm1327_vm7, %v1268_v1  ;;  %v1584_v1 = vld [vmem:[#allocation2 + $0x199] sm:$0xff] }
 0x212   : > { %1479 = vrot.lane.b32.xlu1 %v4546_v58, %s3939_s15 }
 0x214   : > { %v1266_v60 = vpop.permute.xlu1 %1265 }
 0x215   : > { %1483 = vrot.lane.b32.xlu0 %v4678_v29, %s3939_s15  ;;  %1345 = vst.msk [vmem:[#allocation4 + $0x88] sm:$0xff] %vm1327_vm7, %v1266_v60  ;;  %1469 = vrot.lane.b32.xlu2 %v4498_v0, %s3939_s15  ;;  %v1574_v60 = vld [vmem:[#allocation2 + $0x121] sm:$0xff] }
 0x217   : > { %v1270_v55 = vpop.permute.xlu0 %1269  ;;  %v1274_v29 = vpop.permute.xlu2 %1273 }
 0x218   : > { %1347 = vst.msk [vmem:[#allocation4 + $0x98] sm:$0xff] %vm1327_vm7, %v1270_v55 }
 0x219   : > { %1349 = vst.msk [vmem:[#allocation4 + $0xa8] sm:$0xff] %vm1327_vm7, %v1274_v29  ;;  %v1577_v29 = vld [vmem:[#allocation2 + $0x141] sm:$0xff] }
 0x21a   : > { %1485 = vrot.lane.b32.xlu1 %v1391_v5, %s3939_s15 }
 0x21c   : > { %v1272_v58 = vpop.permute.xlu1 %1271 }
 0x21d   : > { %1618 = vrot.lane.b32.xlu0 %v1554_v12, %s3940_s16  ;;  %1348 = vst.msk [vmem:[#allocation4 + $0xa0] sm:$0xff] %vm1327_vm7, %v1272_v58  ;;  %1475 = vrot.lane.b32.xlu2 %v4525_v21, %s3939_s15  ;;  %v1585_v58 = vld [vmem:[#allocation2 + $0x1a1] sm:$0xff] }
 0x21f   : > { %v1276_v35 = vpop.permute.xlu0 %1275  ;;  %v1280_v24 = vpop.permute.xlu2 %1279 }
 0x220   : > { %1350 = vst.msk [vmem:[#allocation4 + $0xb0] sm:$0xff] %vm1327_vm7, %v1276_v35  ;;  %v1748_v35 = vld [vmem:[#allocation2 + $0x3a] sm:$0xff] }
 0x221   : > { %1352 = vst.msk [vmem:[#allocation4 + $0xc0] sm:$0xff] %vm1327_vm7, %v1280_v24  ;;  %v1580_v24 = vld [vmem:[#allocation2 + $0x169] sm:$0xff] }
 0x222   : > { %1620 = vrot.lane.b32.xlu1 %v1555_v6, %s3940_s16 }
 0x224   : > { %v1278_v0 = vpop.permute.xlu1 %1277 }
 0x225   : > { %1624 = vrot.lane.b32.xlu0 %v1557_v18, %s3940_s16  ;;  %1351 = vst.msk [vmem:[#allocation4 + $0xb8] sm:$0xff] %vm1327_vm7, %v1278_v0  ;;  %1481 = vrot.lane.b32.xlu2 %v4648_v40, %s3939_s15  ;;  %v1749_v0 = vld [vmem:[#allocation2 + $0x4a] sm:$0xff] }
 0x227   : > { %v1282_v4 = vpop.permute.xlu0 %1281  ;;  %v1286_v21 = vpop.permute.xlu2 %1285 }
 0x228   : > { %1353 = vst.msk [vmem:[#allocation4 + $0xc8] sm:$0xff] %vm1327_vm7, %v1282_v4  ;;  %v1751_v4 = vld [vmem:[#allocation2 + $0x62] sm:$0xff] }
 0x229   : > { %1355 = vst.msk [vmem:[#allocation4 + $0xd8] sm:$0xff] %vm1327_vm7, %v1286_v21  ;;  %v1752_v21 = vld [vmem:[#allocation2 + $0x6a] sm:$0xff] }
 0x22a   : > { %1626 = vrot.lane.b32.xlu1 %v1558_v10, %s3940_s16 }
 0x22c   : > { %v1284_v30 = vpop.permute.xlu1 %1283 }
 0x22d   : > { %1630 = vrot.lane.b32.xlu0 %v1560_v20, %s3940_s16  ;;  %1354 = vst.msk [vmem:[#allocation4 + $0xd0] sm:$0xff] %vm1327_vm7, %v1284_v30  ;;  %1487 = vrot.lane.b32.xlu2 %v1392_v63, %s3939_s15 }
 0x22f   : > { %v1288_v26 = vpop.permute.xlu0 %1287  ;;  %v1292_v40 = vpop.permute.xlu2 %1291 }
 0x230   : > { %1356 = vst.msk [vmem:[#allocation4 + $0xe0] sm:$0xff] %vm1327_vm7, %v1288_v26  ;;  %v1754_v26 = vld [vmem:[#allocation2 + $0x82] sm:$0xff] }
 0x231   : > { %1358 = vst.msk [vmem:[#allocation4 + $0xf0] sm:$0xff] %vm1327_vm7, %v1292_v40  ;;  %v1747_v40 = vld [vmem:[#allocation2 + $0x32] sm:$0xff] }
 0x232   : > { %1632 = vrot.lane.b32.xlu1 %v1561_v36, %s3940_s16 }
 0x234   : > { %v1290_v19 = vpop.permute.xlu1 %1289 }
 0x235   : > { %1636 = vrot.lane.b32.xlu0 %v1563_v22, %s3940_s16  ;;  %1357 = vst.msk [vmem:[#allocation4 + $0xe8] sm:$0xff] %vm1327_vm7, %v1290_v19  ;;  %1622 = vrot.lane.b32.xlu2 %v1556_v38, %s3940_s16  ;;  %v1755_v19 = vld [vmem:[#allocation2 + $0x92] sm:$0xff] }
 0x237   : > { %v1294_v32 = vpop.permute.xlu0 %1293  ;;  %v1428_v44 = vpop.permute.xlu2 %1427 }
 0x238   : > { %1359 = vst.msk [vmem:[#allocation4 + $0xf8] sm:$0xff] %vm1327_vm7, %v1294_v32  ;;  %v1757_v32 = vld [vmem:[#allocation2 + $0xaa] sm:$0xff]  ;;  %vm2502_vm7 = vcmask 326912  }
 0x239   : > { %1523 = vst.msk [vmem:[#allocation4 + $0x8] sm:$0xff] %vm1521_vm8, %v1428_v44  ;;  %v1766_v44 = vld [vmem:[#allocation2 + $0x112] sm:$0xff] }
 0x23a   : > { %1638 = vrot.lane.b32.xlu1 %v1564_v42, %s3940_s16 }
 0x23c   : > { %v1426_v47 = vpop.permute.xlu1 %1425 }
 0x23d   : > { %1642 = vrot.lane.b32.xlu0 %v1566_v25, %s3940_s16  ;;  %1522 = vst.msk [vmem:[#allocation4] sm:$0xff] %vm1521_vm8, %v1426_v47  ;;  %1628 = vrot.lane.b32.xlu2 %v1559_v49, %s3940_s16  ;;  %v1758_v25 = vld [vmem:[#allocation2 + $0xb2] sm:$0xff] }
 0x23e   : > { %v1750_v47 = vld [vmem:[#allocation2 + $0x52] sm:$0xff] }
 0x23f   : > { %v1430_v31 = vpop.permute.xlu0 %1429  ;;  %v1434_v54 = vpop.permute.xlu2 %1433 }
 0x240   : > { %1524 = vst.msk [vmem:[#allocation4 + $0x10] sm:$0xff] %vm1521_vm8, %v1430_v31 }
 0x241   : > { %1526 = vst.msk [vmem:[#allocation4 + $0x20] sm:$0xff] %vm1521_vm8, %v1434_v54  ;;  %v1761_v54 = vld [vmem:[#allocation2 + $0xda] sm:$0xff] }
 0x242   : > { %1644 = vrot.lane.b32.xlu1 %v1567_v51, %s3940_s16 }
 0x244   : > { %v1432_v15 = vpop.permute.xlu1 %1431 }
 0x245   : > { %1648 = vrot.lane.b32.xlu0 %v1569_v14, %s3940_s16  ;;  %1525 = vst.msk [vmem:[#allocation4 + $0x18] sm:$0xff] %vm1521_vm8, %v1432_v15  ;;  %1634 = vrot.lane.b32.xlu2 %v1562_v28, %s3940_s16  ;;  %v1759_v14 = vld [vmem:[#allocation2 + $0xc2] sm:$0xff]  ;;  %v1753_v15 = vld [vmem:[#allocation2 + $0x7a] sm:$0xff] }
 0x247   : > { %v1436_v53 = vpop.permute.xlu0 %1435  ;;  %v1440_v45 = vpop.permute.xlu2 %1439 }
 0x248   : > { %1527 = vst.msk [vmem:[#allocation4 + $0x28] sm:$0xff] %vm1521_vm8, %v1436_v53 }
 0x249   : > { %1529 = vst.msk [vmem:[#allocation4 + $0x38] sm:$0xff] %vm1521_vm8, %v1440_v45  ;;  %v1768_v45 = vld [vmem:[#allocation2 + $0x12a] sm:$0xff] }
 0x24a   : > { %1650 = vrot.lane.b32.xlu1 %v1570_v27, %s3940_s16 }
 0x24c   : > { %v1438_v57 = vpop.permute.xlu1 %1437 }
 0x24d   : > { %1654 = vrot.lane.b32.xlu0 %v1572_v43, %s3940_s16  ;;  %1528 = vst.msk [vmem:[#allocation4 + $0x30] sm:$0xff] %vm1521_vm8, %v1438_v57  ;;  %1640 = vrot.lane.b32.xlu2 %v1565_v56, %s3940_s16  ;;  %v1762_v43 = vld [vmem:[#allocation2 + $0xe2] sm:$0xff]  ;;  %v1756_v57 = vld [vmem:[#allocation2 + $0x9a] sm:$0xff] }
 0x24f   : > { %v1442_v46 = vpop.permute.xlu0 %1441  ;;  %v1446_v11 = vpop.permute.xlu2 %1445 }
 0x250   : > { %1530 = vst.msk [vmem:[#allocation4 + $0x40] sm:$0xff] %vm1521_vm8, %v1442_v46 }
 0x251   : > { %1532 = vst.msk [vmem:[#allocation4 + $0x50] sm:$0xff] %vm1521_vm8, %v1446_v11  ;;  %v1769_v11 = vld [vmem:[#allocation2 + $0x13a] sm:$0xff] }
 0x252   : > { %1656 = vrot.lane.b32.xlu1 %v1573_v48, %s3940_s16 }
 0x254   : > { %v1444_v33 = vpop.permute.xlu1 %1443 }
 0x255   : > { %1660 = vrot.lane.b32.xlu0 %v1575_v23, %s3940_s16  ;;  %1531 = vst.msk [vmem:[#allocation4 + $0x48] sm:$0xff] %vm1521_vm8, %v1444_v33  ;;  %1646 = vrot.lane.b32.xlu2 %v1568_v34, %s3940_s16  ;;  %v1763_v23 = vld [vmem:[#allocation2 + $0xf2] sm:$0xff]  ;;  %v1765_v33 = vld [vmem:[#allocation2 + $0x10a] sm:$0xff] }
 0x257   : > { %v1448_v52 = vpop.permute.xlu0 %1447  ;;  %v1452_v17 = vpop.permute.xlu2 %1451 }
 0x258   : > { %1533 = vst.msk [vmem:[#allocation4 + $0x58] sm:$0xff] %vm1521_vm8, %v1448_v52 }
 0x259   : > { %1535 = vst.msk [vmem:[#allocation4 + $0x68] sm:$0xff] %vm1521_vm8, %v1452_v17  ;;  %v1772_v17 = vld [vmem:[#allocation2 + $0x15a] sm:$0xff] }
 0x25a   : > { %1662 = vrot.lane.b32.xlu1 %v1576_v41, %s3940_s16 }
 0x25c   : > { %v1450_v2 = vpop.permute.xlu1 %1449 }
 0x25d   : > { %1666 = vrot.lane.b32.xlu0 %v1578_v59, %s3940_s16  ;;  %1534 = vst.msk [vmem:[#allocation4 + $0x60] sm:$0xff] %vm1521_vm8, %v1450_v2  ;;  %1652 = vrot.lane.b32.xlu2 %v1571_v3, %s3940_s16  ;;  %v1770_v59 = vld [vmem:[#allocation2 + $0x142] sm:$0xff]  ;;  %v1760_v2 = vld [vmem:[#allocation2 + $0xca] sm:$0xff] }
 0x25f   : > { %v1454_v39 = vpop.permute.xlu0 %1453  ;;  %v1458_v8 = vpop.permute.xlu2 %1457 }
 0x260   : > { %1536 = vst.msk [vmem:[#allocation4 + $0x70] sm:$0xff] %vm1521_vm8, %v1454_v39 }
 0x261   : > { %1538 = vst.msk [vmem:[#allocation4 + $0x80] sm:$0xff] %vm1521_vm8, %v1458_v8 }
 0x262   : > { %1668 = vrot.lane.b32.xlu1 %v1579_v16, %s3940_s16 }
 0x264   : > { %v1456_v13 = vpop.permute.xlu1 %1455 }
 0x265   : > { %1672 = vrot.lane.b32.xlu0 %v1581_v62, %s3940_s16  ;;  %1537 = vst.msk [vmem:[#allocation4 + $0x78] sm:$0xff] %vm1521_vm8, %v1456_v13  ;;  %1658 = vrot.lane.b32.xlu2 %v1574_v60, %s3940_s16  ;;  %v1773_v62 = vld [vmem:[#allocation2 + $0x16a] sm:$0xff]  ;;  %v1767_v13 = vld [vmem:[#allocation2 + $0x122] sm:$0xff] }
 0x267   : > { %v1460_v61 = vpop.permute.xlu0 %1459  ;;  %v1464_v5 = vpop.permute.xlu2 %1463 }
 0x268   : > { %1539 = vst.msk [vmem:[#allocation4 + $0x88] sm:$0xff] %vm1521_vm8, %v1460_v61 }
 0x269   : > { %1541 = vst.msk [vmem:[#allocation4 + $0x98] sm:$0xff] %vm1521_vm8, %v1464_v5 }
 0x26a   : > { %1674 = vrot.lane.b32.xlu1 %v4745_v7, %s3940_s16 }
 0x26c   : > { %v1462_v55 = vpop.permute.xlu1 %1461 }
 0x26d   : > { %1678 = vrot.lane.b32.xlu0 %v1584_v1, %s3940_s16  ;;  %1540 = vst.msk [vmem:[#allocation4 + $0x90] sm:$0xff] %vm1521_vm8, %v1462_v55  ;;  %1664 = vrot.lane.b32.xlu2 %v1577_v29, %s3940_s16  ;;  %v1764_v1 = vld [vmem:[#allocation2 + $0xfa] sm:$0xff]  ;;  %v1992_v55 = vld [vmem:[%s5697_s1 + $0x10] sm:$0x3] }
 0x26e   : > { %v2006_v5 = vunpack.c.l.b16 %v1992_v55 }
 0x26f   : > { %v1466_v12 = vpop.permute.xlu0 %1465  ;;  %v1470_v6 = vpop.permute.xlu2 %1469 }
 0x270   : > { %1542 = vst.msk [vmem:[#allocation4 + $0xa0] sm:$0xff] %vm1521_vm8, %v1466_v12 }
 0x271   : > { %1544 = vst.msk [vmem:[#allocation4 + $0xb0] sm:$0xff] %vm1521_vm8, %v1470_v6 }
 0x272   : > { %1680 = vrot.lane.b32.xlu1 %v1585_v58, %s3940_s16  ;;  %v2009_v58 = vpack.c.b16 %v2006_v5, %v2006_v5 }
 0x274   : > { %v1468_v7 = vpop.permute.xlu1 %1467  ;;  %v2063_v29 = vsel %vm2061_vm10, %v2009_v58, 0  ;;  %vm2673_vm10 = vcmask 523712  }
 0x275   : > { %1813 = vrot.lane.b32.xlu0 %v1748_v35, %s3941_s17  ;;  %1543 = vst.msk [vmem:[#allocation4 + $0xa8] sm:$0xff] %vm1521_vm8, %v1468_v7  ;;  %1670 = vrot.lane.b32.xlu2 %v1580_v24, %s3940_s16  ;;  %v1771_v7 = vld [vmem:[#allocation2 + $0x152] sm:$0xff] }
 0x276   : > { %2070 = vmatpush.bf16.msra.mxu0 %v2063_v29  ;;  %3802 = vmatpush.bf16.msra.mxu3 %v2063_v29 }
 0x277   : > { %v1472_v18 = vpop.permute.xlu0 %1471  ;;  %v1476_v20 = vpop.permute.xlu2 %1475  ;;  %3801 = vmatpush.bf16.msra.mxu2 %v2063_v29 }
 0x278   : > { %1545 = vst.msk [vmem:[#allocation4 + $0xb8] sm:$0xff] %vm1521_vm8, %v1472_v18 }
 0x279   : > { %1547 = vst.msk [vmem:[#allocation4 + $0xc8] sm:$0xff] %vm1521_vm8, %v1476_v20 }
 0x27a   : > { %1815 = vrot.lane.b32.xlu1 %v1749_v0, %s3941_s17  ;;  %v3789_v0 = vld [vmem:[%s5697_s1] sm:$0xff] }
 0x27c   : > { %v1474_v10 = vpop.permute.xlu1 %1473 }
 0x27d   : > { %1819 = vrot.lane.b32.xlu0 %v1751_v4, %s3941_s17  ;;  %1546 = vst.msk [vmem:[#allocation4 + $0xc0] sm:$0xff] %vm1521_vm8, %v1474_v10  ;;  %1676 = vrot.lane.b32.xlu2 %v4753_v50, %s3940_s16  ;;  %v1774_v4 = vld [vmem:[#allocation2 + $0x172] sm:$0xff]  ;;  %s3945_s16 = smov 64  }
 0x27f   : > { %v1478_v30 = vpop.permute.xlu0 %1477  ;;  %v1482_v63 = vpop.permute.xlu2 %1481 }
 0x280   : > { %1548 = vst.msk [vmem:[#allocation4 + $0xd0] sm:$0xff] %vm1521_vm8, %v1478_v30 }
 0x281   : > { %1550 = vst.msk [vmem:[#allocation4 + $0xe0] sm:$0xff] %vm1521_vm8, %v1482_v63 }
 0x282   : > { %1821 = vrot.lane.b32.xlu1 %v1752_v21, %s3941_s17 }
 0x284   : > { %v1480_v36 = vpop.permute.xlu1 %1479 }
 0x285   : > { %1825 = vrot.lane.b32.xlu0 %v1754_v26, %s3941_s17  ;;  %1549 = vst.msk [vmem:[#allocation4 + $0xd8] sm:$0xff] %vm1521_vm8, %v1480_v36  ;;  %1811 = vrot.lane.b32.xlu2 %v1747_v40, %s3941_s17 }
 0x287   : > { %v1484_v22 = vpop.permute.xlu0 %1483  ;;  %v1488_v50 = vpop.permute.xlu2 %1487 }
 0x288   : > { %1551 = vst.msk [vmem:[#allocation4 + $0xe8] sm:$0xff] %vm1521_vm8, %v1484_v22 }
 0x289   : > { %1553 = vst.msk [vmem:[#allocation4 + $0xf8] sm:$0xff] %vm1521_vm8, %v1488_v50 }
 0x28a   : > { %1827 = vrot.lane.b32.xlu1 %v1755_v19, %s3941_s17 }
 0x28c   : > { %v1486_v42 = vpop.permute.xlu1 %1485 }
 0x28d   : > { %1831 = vrot.lane.b32.xlu0 %v1757_v32, %s3941_s17  ;;  %1552 = vst.msk [vmem:[#allocation4 + $0xf0] sm:$0xff] %vm1521_vm8, %v1486_v42  ;;  %1817 = vrot.lane.b32.xlu2 %v1750_v47, %s3941_s17  ;;  %vm2559_vm8 = vcmask 392512  }
 0x28f   : > { %v1619_v38 = vpop.permute.xlu0 %1618  ;;  %v1623_v51 = vpop.permute.xlu2 %1622 }
 0x290   : > { %1715 = vst.msk [vmem:[#allocation4] sm:$0xff] %vm1714_vm9, %v1619_v38 }
 0x291   : > { %1717 = vst.msk [vmem:[#allocation4 + $0x10] sm:$0xff] %vm1714_vm9, %v1623_v51 }
 0x292   : > { %1833 = vrot.lane.b32.xlu1 %v1758_v25, %s3941_s17 }
 0x294   : > { %v1621_v31 = vpop.permute.xlu1 %1620 }
 0x295   : > { %1849 = vrot.lane.b32.xlu0 %v1766_v44, %s3941_s17  ;;  %1716 = vst.msk [vmem:[#allocation4 + $0x8] sm:$0xff] %vm1714_vm9, %v1621_v31  ;;  %1823 = vrot.lane.b32.xlu2 %v1753_v15, %s3941_s17 }
 0x297   : > { %v1625_v49 = vpop.permute.xlu0 %1624  ;;  %v1629_v27 = vpop.permute.xlu2 %1628 }
 0x298   : > { %1718 = vst.msk [vmem:[#allocation4 + $0x18] sm:$0xff] %vm1714_vm9, %v1625_v49 }
 0x299   : > { %1720 = vst.msk [vmem:[#allocation4 + $0x28] sm:$0xff] %vm1714_vm9, %v1629_v27 }
 0x29a   : > { %1835 = vrot.lane.b32.xlu1 %v1759_v14, %s3941_s17 }
 0x29c   : > { %v1627_v53 = vpop.permute.xlu1 %1626 }
 0x29d   : > { %1839 = vrot.lane.b32.xlu0 %v1761_v54, %s3941_s17  ;;  %1719 = vst.msk [vmem:[#allocation4 + $0x20] sm:$0xff] %vm1714_vm9, %v1627_v53  ;;  %1829 = vrot.lane.b32.xlu2 %v1756_v57, %s3941_s17 }
 0x29f   : > { %v1631_v28 = vpop.permute.xlu0 %1630  ;;  %v1635_v48 = vpop.permute.xlu2 %1634 }
 0x2a0   : > { %1721 = vst.msk [vmem:[#allocation4 + $0x30] sm:$0xff] %vm1714_vm9, %v1631_v28 }
 0x2a1   : > { %1723 = vst.msk [vmem:[#allocation4 + $0x40] sm:$0xff] %vm1714_vm9, %v1635_v48 }
 0x2a2   : > { %1841 = vrot.lane.b32.xlu1 %v1762_v43, %s3941_s17 }
 0x2a4   : > { %v1633_v46 = vpop.permute.xlu1 %1632 }
 0x2a5   : > { %1853 = vrot.lane.b32.xlu0 %v1768_v45, %s3941_s17  ;;  %1722 = vst.msk [vmem:[#allocation4 + $0x38] sm:$0xff] %vm1714_vm9, %v1633_v46  ;;  %1847 = vrot.lane.b32.xlu2 %v1765_v33, %s3941_s17 }
 0x2a7   : > { %v1637_v56 = vpop.permute.xlu0 %1636  ;;  %v1641_v41 = vpop.permute.xlu2 %1640 }
 0x2a8   : > { %1724 = vst.msk [vmem:[#allocation4 + $0x48] sm:$0xff] %vm1714_vm9, %v1637_v56 }
 0x2a9   : > { %1726 = vst.msk [vmem:[#allocation4 + $0x58] sm:$0xff] %vm1714_vm9, %v1641_v41 }
 0x2aa   : > { %1843 = vrot.lane.b32.xlu1 %v1763_v23, %s3941_s17 }
 0x2ac   : > { %v1639_v52 = vpop.permute.xlu1 %1638 }
 0x2ad   : > { %1725 = vst.msk [vmem:[#allocation4 + $0x50] sm:$0xff] %vm1714_vm9, %v1639_v52  ;;  %1855 = vrot.lane.b32.xlu0 %v1769_v11, %s3941_s17  ;;  %1837 = vrot.lane.b32.xlu2 %v1760_v2, %s3941_s17 }
 0x2af   : > { %v1643_v34 = vpop.permute.xlu0 %1642  ;;  %v1647_v16 = vpop.permute.xlu2 %1646 }
 0x2b0   : > { %1727 = vst.msk [vmem:[#allocation4 + $0x60] sm:$0xff] %vm1714_vm9, %v1643_v34 }
 0x2b1   : > { %1729 = vst.msk [vmem:[#allocation4 + $0x70] sm:$0xff] %vm1714_vm9, %v1647_v16 }
 0x2b2   : > { %1857 = vrot.lane.b32.xlu1 %v1770_v59, %s3941_s17 }
 0x2b4   : > { %v1645_v39 = vpop.permute.xlu1 %1644 }
 0x2b5   : > { %1728 = vst.msk [vmem:[#allocation4 + $0x68] sm:$0xff] %vm1714_vm9, %v1645_v39  ;;  %1861 = vrot.lane.b32.xlu0 %v1772_v17, %s3941_s17  ;;  %1851 = vrot.lane.b32.xlu2 %v1767_v13, %s3941_s17 }
 0x2b7   : > { %v1649_v3 = vpop.permute.xlu0 %1648  ;;  %v1653_v61 = vpop.permute.xlu2 %1652 }
 0x2b8   : > { %1730 = vst.msk [vmem:[#allocation4 + $0x78] sm:$0xff] %vm1714_vm9, %v1649_v3 }
 0x2b9   : > { %1732 = vst.msk [vmem:[#allocation4 + $0x88] sm:$0xff] %vm1714_vm9, %v1653_v61 }
 0x2ba   : > { %1863 = vrot.lane.b32.xlu1 %v1773_v62, %s3941_s17 }
 0x2bc   : > { %v1651_v8 = vpop.permute.xlu1 %1650 }
 0x2bd   : > { %1731 = vst.msk [vmem:[#allocation4 + $0x80] sm:$0xff] %vm1714_vm9, %v1651_v8  ;;  %1867 = vrot.lane.b32.xlu0 %v4873_v37, %s3941_s17  ;;  %1845 = vrot.lane.b32.xlu2 %v1764_v1, %s3941_s17 }
 0x2bf   : > { %v1655_v60 = vpop.permute.xlu0 %1654  ;;  %v1659_v37 = vpop.permute.xlu2 %1658 }
 0x2c0   : > { %1733 = vst.msk [vmem:[#allocation4 + $0x90] sm:$0xff] %vm1714_vm9, %v1655_v60 }
 0x2c1   : > { %1735 = vst.msk [vmem:[#allocation4 + $0xa0] sm:$0xff] %vm1714_vm9, %v1659_v37 }
 0x2c2   : > { %1869 = vrot.lane.b32.xlu1 %v4848_v9, %s3941_s17  ;;  %v3790_v9 = vld [vmem:[%s5697_s1 + $0x8] sm:$0xff] }
 0x2c3   : > { %2071 = vmatpush.bf16.msra.mxu0 %v3790_v9  ;;  %3804 = vmatpush.bf16.msra.mxu3 %v3790_v9 }
 0x2c4   : > { %v1657_v12 = vpop.permute.xlu1 %1656  ;;  %3803 = vmatpush.bf16.msra.mxu2 %v3790_v9 }
 0x2c5   : > { %1734 = vst.msk [vmem:[#allocation4 + $0x98] sm:$0xff] %vm1714_vm9, %v1657_v12  ;;  %1859 = vrot.lane.b32.xlu2 %v1771_v7, %s3941_s17 }
 0x2c7   : > { %v1661_v35 = vpop.permute.xlu0 %1660  ;;  %v1665_v18 = vpop.permute.xlu2 %1664  ;;  %2072 = vmatpush.bf16.msra.mxu0 %v3789_v0  ;;  %3806 = vmatpush.bf16.msra.mxu3 %v3789_v0 }
 0x2c8   : > { %1736 = vst.msk [vmem:[#allocation4 + $0xa8] sm:$0xff] %vm1714_vm9, %v1661_v35  ;;  %3805 = vmatpush.bf16.msra.mxu2 %v3789_v0 }
 0x2c9   : > { %1738 = vst.msk [vmem:[#allocation4 + $0xb8] sm:$0xff] %vm1714_vm9, %v1665_v18 }
 0x2cc   : > { %v1663_v6 = vpop.permute.xlu1 %1662 }
 0x2cd   : > { %1737 = vst.msk [vmem:[#allocation4 + $0xb0] sm:$0xff] %vm1714_vm9, %v1663_v6  ;;  %1865 = vrot.lane.b32.xlu2 %v1774_v4, %s3941_s17 }
 0x2cf   : > { %v1667_v24 = vpop.permute.xlu0 %1666  ;;  %v1671_v20 = vpop.permute.xlu2 %1670 }
 0x2d0   : > { %1739 = vst.msk [vmem:[#allocation4 + $0xc0] sm:$0xff] %vm1714_vm9, %v1667_v24 }
 0x2d1   : > { %1741 = vst.msk [vmem:[#allocation4 + $0xd0] sm:$0xff] %vm1714_vm9, %v1671_v20  ;;  %v1778_v20 = vld [vmem:[#allocation2 + $0x1a2] sm:$0xff] }
 0x2d2   : > { %1873 = vrot.lane.b32.xlu0 %v1778_v20, %s3941_s17 }
 0x2d4   : > { %v1669_v10 = vpop.permute.xlu1 %1668 }
 0x2d5   : > { %1740 = vst.msk [vmem:[#allocation4 + $0xc8] sm:$0xff] %vm1714_vm9, %v1669_v10 }
 0x2d7   : > { %v1673_v30 = vpop.permute.xlu0 %1672  ;;  %v1677_v26 = vpop.permute.xlu2 %1676 }
 0x2d8   : > { %1742 = vst.msk [vmem:[#allocation4 + $0xd8] sm:$0xff] %vm1714_vm9, %v1673_v30  ;;  %v1777_v30 = vld [vmem:[#allocation2 + $0x19a] sm:$0xff] }
 0x2d9   : > { %1744 = vst.msk [vmem:[#allocation4 + $0xe8] sm:$0xff] %vm1714_vm9, %v1677_v26  ;;  %1871 = vrot.lane.b32.xlu2 %v1777_v30, %s3941_s17 }
 0x2dc   : > { %v1675_v21 = vpop.permute.xlu1 %1674 }
 0x2dd   : > { %1743 = vst.msk [vmem:[#allocation4 + $0xe0] sm:$0xff] %vm1714_vm9, %v1675_v21 }
 0x2df   : > { %v1679_v36 = vpop.permute.xlu0 %1678  ;;  %v1812_v22 = vpop.permute.xlu2 %1811 }
 0x2e0   : > { %1745 = vst.msk [vmem:[#allocation4 + $0xf0] sm:$0xff] %vm1714_vm9, %v1679_v36 }
 0x2e1   : > { %1908 = vst.msk [vmem:[#allocation4] sm:$0xff] %vm1907_vm11, %v1812_v22 }
 0x2e4   : > { %v1681_v63 = vpop.permute.xlu1 %1680 }
 0x2e5   : > { %1746 = vst.msk [vmem:[#allocation4 + $0xf8] sm:$0xff] %vm1714_vm9, %v1681_v63  ;;  %vm2616_vm9 = vcmask 458112  }
 0x2e7   : > { %v1814_v19 = vpop.permute.xlu0 %1813  ;;  %v1818_v32 = vpop.permute.xlu2 %1817 }
 0x2e8   : > { %1909 = vst.msk [vmem:[#allocation4 + $0x8] sm:$0xff] %vm1907_vm11, %v1814_v19  ;;  %v1940_v42 = vld [vmem:[#allocation4] sm:$0xff] }
 0x2e9   : > { %1911 = vst.msk [vmem:[#allocation4 + $0x18] sm:$0xff] %vm1907_vm11, %v1818_v32 }
 0x2ec   : > { %v1816_v40 = vpop.permute.xlu1 %1815 }
 0x2ed   : > { %1910 = vst.msk [vmem:[#allocation4 + $0x10] sm:$0xff] %vm1907_vm11, %v1816_v40 }
 0x2ef   : > { %v1820_v50 = vpop.permute.xlu0 %1819  ;;  %v1941_v38 = vld [vmem:[#allocation4 + $0x8] sm:$0xff]  ;;  %v1824_v44 = vpop.permute.xlu2 %1823 }
 0x2f0   : > { %1912 = vst.msk [vmem:[#allocation4 + $0x20] sm:$0xff] %vm1907_vm11, %v1820_v50  ;;  %v1972_v25 = vpack.c.bf16 %v1941_v38, %v1940_v42  ;;  %v1943_v49 = vld [vmem:[#allocation4 + $0x18] sm:$0xff] }
 0x2f1   : > { %1914 = vst.msk [vmem:[#allocation4 + $0x30] sm:$0xff] %vm1907_vm11, %v1824_v44 }
 0x2f2   : > { %3727 = vmatmul.msk.bf16.vlgmr.msra.gmra.mxu0 %vm2012_vm12, %v1972_v25 }
 0x2f4   : > { %v1822_v47 = vpop.permute.xlu1 %1821  ;;  %v1942_v51 = vld [vmem:[#allocation4 + $0x10] sm:$0xff] }
 0x2f5   : > { %1913 = vst.msk [vmem:[#allocation4 + $0x28] sm:$0xff] %vm1907_vm11, %v1822_v47  ;;  %v1973_v54 = vpack.c.bf16 %v1943_v49, %v1942_v51  ;;  %v5790_v47 = vmov 0.0   ;;  %v5184_v51 = vld [vmem:[%s5698_s2] ss:$0 sm:$0xff] }
 0x2f6   : > { %2187 = vst.msk [vmem:[#allocation3] sm:$0xff] %vm2186_vm13, %v5790_v47 }
 0x2f7   : > { %v1826_v31 = vpop.permute.xlu0 %1825  ;;  %v1830_v15 = vpop.permute.xlu2 %1829  ;;  %v1944_v46 = vld [vmem:[#allocation4 + $0x20] sm:$0xff]  ;;  %2188 = vst.msk [vmem:[#allocation3 + $0x8] sm:$0xff] %vm2186_vm13, %v5790_v47 }
 0x2f8   : > { %1915 = vst.msk [vmem:[#allocation4 + $0x38] sm:$0xff] %vm1907_vm11, %v1826_v31  ;;  %v1946_v3 = vld [vmem:[#allocation4 + $0x30] sm:$0xff] }
 0x2f9   : > { %1917 = vst.msk [vmem:[#allocation4 + $0x48] sm:$0xff] %vm1907_vm11, %v1830_v15 }
 0x2fa   : > { %2192 = vst.msk [vmem:[#allocation3 + $0x198] sm:$0xff] %vm2186_vm13, %v5790_v47 }
 0x2fb   : > { %2193 = vst.msk [vmem:[#allocation3 + $0x1a0] sm:$0xff] %vm2186_vm13, %v5790_v47 }
 0x2fc   : > { %v1828_v14 = vpop.permute.xlu1 %1827  ;;  %v1945_v48 = vld [vmem:[#allocation4 + $0x28] sm:$0xff]  ;;  %2214 = vst.msk [vmem:[#allocation3 + $0x41] sm:$0x1] %vm2196_vm14, %v5790_v47 }
 0x2fd   : > { %1916 = vst.msk [vmem:[#allocation4 + $0x40] sm:$0xff] %vm1907_vm11, %v1828_v14  ;;  %v1974_v11 = vpack.c.bf16 %v1945_v48, %v1944_v46 }
 0x2fe   : > { %2197 = vst.msk [vmem:[#allocation3 + $0x18] sm:$0x1] %vm2196_vm14, %v5790_v47 }
 0x2ff   : > { %v1832_v53 = vpop.permute.xlu0 %1831  ;;  %v1848_v28 = vpop.permute.xlu2 %1847  ;;  %v1947_v62 = vld [vmem:[#allocation4 + $0x38] sm:$0xff]  ;;  %2198 = vst.msk [vmem:[#allocation3 + $0x30] sm:$0x1] %vm2196_vm14, %v5790_v47 }
 0x300   : > { %1918 = vst.msk [vmem:[#allocation4 + $0x50] sm:$0xff] %vm1907_vm11, %v1832_v53  ;;  %v1975_v1 = vpack.c.bf16 %v1947_v62, %v1946_v3  ;;  %v1949_v0 = vld [vmem:[#allocation4 + $0x48] sm:$0xff] }
 0x301   : > { %1926 = vst.msk [vmem:[#allocation4 + $0x90] sm:$0xff] %vm1907_vm11, %v1848_v28 }
 0x302   : > { %3728 = vmatmul.msk.bf16.gmra.mxu0 %vm2012_vm12, %v1973_v54  ;;  %2199 = vst.msk [vmem:[#allocation3 + $0x48] sm:$0x1] %vm2196_vm14, %v5790_v47 }
 0x303   : > { %2200 = vst.msk [vmem:[#allocation3 + $0x60] sm:$0x1] %vm2196_vm14, %v5790_v47 }
 0x304   : > { %v1834_v27 = vpop.permute.xlu1 %1833  ;;  %v1948_v18 = vld [vmem:[#allocation4 + $0x40] sm:$0xff]  ;;  %2201 = vst.msk [vmem:[#allocation3 + $0x78] sm:$0x1] %vm2196_vm14, %v5790_v47 }
 0x305   : > { %1919 = vst.msk [vmem:[#allocation4 + $0x58] sm:$0xff] %vm1907_vm11, %v1834_v27  ;;  %v1976_v10 = vpack.c.bf16 %v1949_v0, %v1948_v18 }
 0x306   : > { %2202 = vst.msk [vmem:[#allocation3 + $0x90] sm:$0x1] %vm2196_vm14, %v5790_v47 }
 0x307   : > { %v1850_v43 = vpop.permute.xlu0 %1849  ;;  %v1838_v45 = vpop.permute.xlu2 %1837  ;;  %v1950_v36 = vld [vmem:[#allocation4 + $0x50] sm:$0xff]  ;;  %2203 = vst.msk [vmem:[#allocation3 + $0xa8] sm:$0x1] %vm2196_vm14, %v5790_v47 }
 0x308   : > { %1927 = vst.msk [vmem:[#allocation4 + $0x98] sm:$0xff] %vm1907_vm11, %v1850_v43  ;;  %v1958_v56 = vld [vmem:[#allocation4 + $0x90] sm:$0xff] }
 0x309   : > { %1921 = vst.msk [vmem:[#allocation4 + $0x68] sm:$0xff] %vm1907_vm11, %v1838_v45 }
 0x30a   : > { %2204 = vst.msk [vmem:[#allocation3 + $0xc0] sm:$0x1] %vm2196_vm14, %v5790_v47 }
 0x30b   : > { %2205 = vst.msk [vmem:[#allocation3 + $0xd8] sm:$0x1] %vm2196_vm14, %v5790_v47 }
 0x30c   : > { %v1836_v57 = vpop.permute.xlu1 %1835  ;;  %v1951_v63 = vld [vmem:[#allocation4 + $0x58] sm:$0xff]  ;;  %2206 = vst.msk [vmem:[#allocation3 + $0xf0] sm:$0x1] %vm2196_vm14, %v5790_v47 }
 0x30d   : > { %1920 = vst.msk [vmem:[#allocation4 + $0x60] sm:$0xff] %vm1907_vm11, %v1836_v57  ;;  %v1977_v19 = vpack.c.bf16 %v1951_v63, %v1950_v36 }
 0x30e   : > { %2207 = vst.msk [vmem:[#allocation3 + $0x108] sm:$0x1] %vm2196_vm14, %v5790_v47 }
 0x30f   : > { %v1840_v23 = vpop.permute.xlu0 %1839  ;;  %v1959_v33 = vld [vmem:[#allocation4 + $0x98] sm:$0xff]  ;;  %v1852_v34 = vpop.permute.xlu2 %1851  ;;  %2208 = vst.msk [vmem:[#allocation3 + $0x120] sm:$0x1] %vm2196_vm14, %v5790_v47 }
 0x310   : > { %1922 = vst.msk [vmem:[#allocation4 + $0x70] sm:$0xff] %vm1907_vm11, %v1840_v23  ;;  %v1981_v52 = vpack.c.bf16 %v1959_v33, %v1958_v56  ;;  %v1953_v50 = vld [vmem:[#allocation4 + $0x68] sm:$0xff] }
 0x311   : > { %1928 = vst.msk [vmem:[#allocation4 + $0xa0] sm:$0xff] %vm1907_vm11, %v1852_v34 }
 0x312   : > { %3729 = vmatmul.msk.bf16.gmra.mxu0 %vm2012_vm12, %v1974_v11  ;;  %3736 = vmatmul.msk.bf16.vlgmr.msra.gmra.mxu3 %vm2012_vm12, %v1981_v52  ;;  %2209 = vst.msk [vmem:[#allocation3 + $0x138] sm:$0x1] %vm2196_vm14, %v5790_v47 }
 0x313   : > { %2210 = vst.msk [vmem:[#allocation3 + $0x150] sm:$0x1] %vm2196_vm14, %v5790_v47 }
 0x314   : > { %v1842_v41 = vpop.permute.xlu1 %1841  ;;  %v1952_v42 = vld [vmem:[#allocation4 + $0x60] sm:$0xff]  ;;  %2211 = vst.msk [vmem:[#allocation3 + $0x168] sm:$0x1] %vm2196_vm14, %v5790_v47 }
 0x315   : > { %1923 = vst.msk [vmem:[#allocation4 + $0x78] sm:$0xff] %vm1907_vm11, %v1842_v41  ;;  %v1978_v25 = vpack.c.bf16 %v1953_v50, %v1952_v42 }
 0x316   : > { %2212 = vst.msk [vmem:[#allocation3 + $0x180] sm:$0x1] %vm2196_vm14, %v5790_v47 }
 0x317   : > { %v1854_v59 = vpop.permute.xlu0 %1853  ;;  %v1954_v2 = vld [vmem:[#allocation4 + $0x70] sm:$0xff]  ;;  %v1846_v8 = vpop.permute.xlu2 %1845  ;;  %2213 = vst.msk [vmem:[#allocation3 + $0x29] sm:$0x1] %vm2196_vm14, %v5790_v47 }
 0x318   : > { %1929 = vst.msk [vmem:[#allocation4 + $0xa8] sm:$0xff] %vm1907_vm11, %v1854_v59  ;;  %v1960_v13 = vld [vmem:[#allocation4 + $0xa0] sm:$0xff] }
 0x319   : > { %1925 = vst.msk [vmem:[#allocation4 + $0x88] sm:$0xff] %vm1907_vm11, %v1846_v8 }
 0x31a   : > { %2215 = vst.msk [vmem:[#allocation3 + $0x59] sm:$0x1] %vm2196_vm14, %v5790_v47 }
 0x31b   : > { %2216 = vst.msk [vmem:[#allocation3 + $0x71] sm:$0x1] %vm2196_vm14, %v5790_v47 }
 0x31c   : > { %v1844_v17 = vpop.permute.xlu1 %1843  ;;  %v1955_v39 = vld [vmem:[#allocation4 + $0x78] sm:$0xff]  ;;  %2217 = vst.msk [vmem:[#allocation3 + $0x89] sm:$0x1] %vm2196_vm14, %v5790_v47 }
 0x31d   : > { %1924 = vst.msk [vmem:[#allocation4 + $0x80] sm:$0xff] %vm1907_vm11, %v1844_v17  ;;  %v1979_v16 = vpack.c.bf16 %v1955_v39, %v1954_v2 }
 0x31e   : > { %2218 = vst.msk [vmem:[#allocation3 + $0xa1] sm:$0x1] %vm2196_vm14, %v5790_v47 }
 0x31f   : > { %3734 = vmatmul.msk.bf16.vlgmr.msra.gmra.mxu2 %vm2012_vm12, %v1979_v16  ;;  %v1961_v61 = vld [vmem:[#allocation4 + $0xa8] sm:$0xff]  ;;  %v1856_v60 = vpop.permute.xlu0 %1855  ;;  %v1860_v12 = vpop.permute.xlu2 %1859  ;;  %2219 = vst.msk [vmem:[#allocation3 + $0xb9] sm:$0x1] %vm2196_vm14, %v5790_v47 }
 0x320   : > { %v1982_v55 = vpack.c.bf16 %v1961_v61, %v1960_v13  ;;  %1930 = vst.msk [vmem:[#allocation4 + $0xb0] sm:$0xff] %vm1907_vm11, %v1856_v60  ;;  %v1957_v29 = vld [vmem:[#allocation4 + $0x88] sm:$0xff] }
 0x321   : > { %1932 = vst.msk [vmem:[#allocation4 + $0xc0] sm:$0xff] %vm1907_vm11, %v1860_v12 }
 0x322   : > { %3730 = vmatmul.msk.bf16.gmra.mxu0 %vm2012_vm12, %v1975_v1  ;;  %3737 = vmatmul.msk.bf16.gmra.mxu3 %vm2012_vm12, %v1982_v55  ;;  %2220 = vst.msk [vmem:[#allocation3 + $0xd1] sm:$0x1] %vm2196_vm14, %v5790_v47 }
 0x323   : > { %2221 = vst.msk [vmem:[#allocation3 + $0xe9] sm:$0x1] %vm2196_vm14, %v5790_v47 }
 0x324   : > { %v1858_v5 = vpop.permute.xlu1 %1857  ;;  %v1956_v37 = vld [vmem:[#allocation4 + $0x80] sm:$0xff]  ;;  %2222 = vst.msk [vmem:[#allocation3 + $0x101] sm:$0x1] %vm2196_vm14, %v5790_v47 }
 0x325   : > { %1931 = vst.msk [vmem:[#allocation4 + $0xb8] sm:$0xff] %vm1907_vm11, %v1858_v5  ;;  %v1980_v35 = vpack.c.bf16 %v1957_v29, %v1956_v37 }
 0x326   : > { %2223 = vst.msk [vmem:[#allocation3 + $0x119] sm:$0x1] %vm2196_vm14, %v5790_v47 }
 0x327   : > { %v1862_v58 = vpop.permute.xlu0 %1861  ;;  %v1962_v7 = vld [vmem:[#allocation4 + $0xb0] sm:$0xff]  ;;  %v1866_v24 = vpop.permute.xlu2 %1865  ;;  %2224 = vst.msk [vmem:[#allocation3 + $0x131] sm:$0x1] %vm2196_vm14, %v5790_v47 }
 0x328   : > { %1933 = vst.msk [vmem:[#allocation4 + $0xc8] sm:$0xff] %vm1907_vm11, %v1862_v58  ;;  %v1964_v21 = vld [vmem:[#allocation4 + $0xc0] sm:$0xff] }
 0x329   : > { %1935 = vst.msk [vmem:[#allocation4 + $0xd8] sm:$0xff] %vm1907_vm11, %v1866_v24 }
 0x32a   : > { %2225 = vst.msk [vmem:[#allocation3 + $0x149] sm:$0x1] %vm2196_vm14, %v5790_v47 }
 0x32b   : > { %2226 = vst.msk [vmem:[#allocation3 + $0x161] sm:$0x1] %vm2196_vm14, %v5790_v47 }
 0x32c   : > { %v1963_v9 = vld [vmem:[#allocation4 + $0xb8] sm:$0xff]  ;;  %v1864_v6 = vpop.permute.xlu1 %1863  ;;  %2227 = vst.msk [vmem:[#allocation3 + $0x179] sm:$0x1] %vm2196_vm14, %v5790_v47 }
 0x32d   : > { %1934 = vst.msk [vmem:[#allocation4 + $0xd0] sm:$0xff] %vm1907_vm11, %v1864_v6  ;;  %v1983_v4 = vpack.c.bf16 %v1963_v9, %v1962_v7 }
 0x32e   : > { %2228 = vst.msk [vmem:[#allocation3 + $0x191] sm:$0x1] %vm2196_vm14, %v5790_v47  ;;  %vm2844_vm14 = vcmask 720512  }
 0x32f   : > { %3735 = vmatmul.msk.bf16.gmra.mxu2 %vm2012_vm12, %v1980_v35  ;;  %v1965_v26 = vld [vmem:[#allocation4 + $0xc8] sm:$0xff]  ;;  %v1868_v44 = vpop.permute.xlu0 %1867  ;;  %2190 = vst.msk [vmem:[#allocation3 + $0x10] sm:$0x3] %vm2189_vm15, %v5790_v47 }
 0x330   : > { %v1984_v22 = vpack.c.bf16 %v1965_v26, %v1964_v21  ;;  %v1967_v32 = vld [vmem:[#allocation4 + $0xd8] sm:$0xff]  ;;  %1936 = vst.msk [vmem:[#allocation4 + $0xe0] sm:$0xff] %vm1907_vm11, %v1868_v44 }
 0x331   : > { %2194 = vst.msk [vmem:[#allocation3 + $0x1a8] sm:$0x3] %vm2189_vm15, %v5790_v47  ;;  %vm2901_vm15 = vcmask 786112  }
 0x332   : > { %3731 = vmatmul.msk.bf16.gmra.mxu0 %vm2012_vm12, %v1976_v10  ;;  %3738 = vmatmul.msk.bf16.gmra.mxu3 %vm2012_vm12, %v1983_v4  ;;  %v2285_v10 = vld [vmem:[#allocation3 + $0x1] ss:$2 sm:$0xff] }
 0x333   : > { %v1872_v24 = vpop.permute.xlu2 %1871  ;;  %2308 = vrot.lane.b32.xlu1 %v2285_v10, %s3935_s11 }
 0x334   : > { %v1966_v40 = vld [vmem:[#allocation4 + $0xd0] sm:$0xff]  ;;  %v1870_v31 = vpop.permute.xlu1 %1869  ;;  %1938 = vst.msk [vmem:[#allocation4 + $0xf0] sm:$0xff] %vm1907_vm11, %v1872_v24 }
 0x335   : > { %v1985_v38 = vpack.c.bf16 %v1967_v32, %v1966_v40  ;;  %1937 = vst.msk [vmem:[#allocation4 + $0xe8] sm:$0xff] %vm1907_vm11, %v1870_v31 }
 0x337   : > { %v1968_v14 = vld [vmem:[#allocation4 + $0xe0] sm:$0xff] }
 0x33c   : > { %v1969_v15 = vld [vmem:[#allocation4 + $0xe8] sm:$0xff] }
 0x33d   : > { %v1986_v53 = vpack.c.bf16 %v1969_v15, %v1968_v14 }
 0x342   : > { %3732 = vmatmul.msk.bf16.gmra.mxu0 %vm2012_vm12, %v1977_v19  ;;  %3739 = vmatmul.msk.bf16.gmra.mxu3 %vm2012_vm12, %v1984_v22 }
 0x344   : > { %v1874_v6 = vpop.permute.xlu0 %1873 }
 0x345   : > { %1939 = vst.msk [vmem:[#allocation4 + $0xf8] sm:$0xff] %vm1907_vm11, %v1874_v6  ;;  %vm2730_vm11 = vcmask 589312  }
 0x34c   : > { %v1971_v32 = vld [vmem:[#allocation4 + $0xf8] sm:$0xff] }
 0x352   : > { %3733 = vmatmul.msk.bf16.gmra.mxu0 %vm2012_vm12, %v1978_v25  ;;  %3740 = vmatmul.msk.bf16.gmra.mxu3 %vm2012_vm12, %v1985_v38  ;;  %v1970_v38 = vld [vmem:[#allocation4 + $0xf0] sm:$0xff] }
 0x353   : > { %v1987_v31 = vpack.c.bf16 %v1971_v32, %v1970_v38 }
 0x362   : > { %3741 = vmatmul.msk.bf16.gmra.mxu3 %vm2012_vm12, %v1986_v53 }
 0x36f   : > { %v2074_v49 = vpop.f32.mrf.mxu0 }
 0x370   : > { %v2075_v54 = vadd.f32 %v5184_v51, %v2074_v49 }
 0x372   : > { %v2154_v27 = vmax.f32 %v2075_v54, 0.0  ;;  %3742 = vmatmul.msk.bf16.gmra.mxu3 %vm2012_vm12, %v1987_v31  ;;  %vm2787_vm12 = vcmask 654912  }
 0x374   : > { %2229 = vst.msk [vmem:[#allocation3 + $0x19] sm:$0xff] %vm2186_vm13, %v2154_v27 }
 0x377   : > { %v2076_v28 = vpop.f32.mrf.mxu0 }
 0x378   : > { %v2077_v43 = vadd.f32 %v5184_v51, %v2076_v28 }
 0x37a   : > { %v2155_v57 = vmax.f32 %v2077_v43, 0.0 }
 0x37c   : > { %2230 = vst.msk [vmem:[#allocation3 + $0x21] sm:$0xff] %vm2186_vm13, %v2155_v57 }
 0x37f   : > { %v2079_v45 = vpop.f32.mrf.mxu0 }
 0x380   : > { %v2080_v46 = vadd.f32 %v5184_v51, %v2079_v45 }
 0x382   : > { %v2156_v48 = vmax.f32 %v2080_v46, 0.0 }
 0x384   : > { %2231 = vst.msk [vmem:[#allocation3 + $0x31] sm:$0xff] %vm2186_vm13, %v2156_v48 }
 0x387   : > { %v2081_v56 = vpop.f32.mrf.mxu0 }
 0x388   : > { %v2082_v23 = vadd.f32 %v5184_v51, %v2081_v56 }
 0x38a   : > { %v2157_v33 = vmax.f32 %v2082_v23, 0.0 }
 0x38c   : > { %2232 = vst.msk [vmem:[#allocation3 + $0x39] sm:$0xff] %vm2186_vm13, %v2157_v33 }
 0x38f   : > { %v2084_v11 = vpop.f32.mrf.mxu0 }
 0x390   : > { %v2085_v52 = vadd.f32 %v5184_v51, %v2084_v11 }
 0x392   : > { %v2158_v41 = vmax.f32 %v2085_v52, 0.0  ;;  %v2342_v52 = vld [vmem:[#allocation3 + $0x2] ss:$2 sm:$0xff] }
 0x393   : > { %v2287_v34 = vld [vmem:[#allocation3 + $0x31] ss:$2 sm:$0xff]  ;;  %v2263_v59 = vld [vmem:[#allocation3 + $0x30] ss:$2 sm:$0xff] }
 0x394   : > { %2233 = vst.msk [vmem:[#allocation3 + $0x49] sm:$0xff] %vm2186_vm13, %v2158_v41  ;;  %2310 = vrot.lane.b32.xlu2 %v2287_v34, %s3935_s11  ;;  %v2401_v10 = vld [vmem:[#allocation3 + $0x33] ss:$2 sm:$0xff] }
 0x395   : > { %v2119_v2 = vpop.f32.mrf.mxu3  ;;  %2277 = vst.msk [vmem:[#allocation5 + $0x10] sm:$0xff] %vm2186_vm13, %v2263_v59 }
 0x396   : > { %v2120_v17 = vadd.f32 %v5184_v51, %v2119_v2 }
 0x397   : > { %v2086_v39 = vpop.f32.mrf.mxu0 }
 0x398   : > { %v2172_v16 = vmax.f32 %v2120_v17, 0.0  ;;  %v2087_v3 = vadd.f32 %v5184_v51, %v2086_v39 }
 0x39a   : > { %2247 = vst.msk [vmem:[#allocation3 + $0xf1] sm:$0xff] %vm2186_vm13, %v2172_v16  ;;  %v2159_v62 = vmax.f32 %v2087_v3, 0.0 }
 0x39c   : > { %2234 = vst.msk [vmem:[#allocation3 + $0x51] sm:$0xff] %vm2186_vm13, %v2159_v62 }
 0x39d   : > { %v2121_v13 = vpop.f32.mrf.mxu3 }
 0x39e   : > { %v2122_v8 = vadd.f32 %v5184_v51, %v2121_v13 }
 0x39f   : > { %v2089_v61 = vpop.f32.mrf.mxu0 }
 0x3a0   : > { %v2173_v60 = vmax.f32 %v2122_v8, 0.0  ;;  %v2090_v1 = vadd.f32 %v5184_v51, %v2089_v61 }
 0x3a2   : > { %2248 = vst.msk [vmem:[#allocation3 + $0xf9] sm:$0xff] %vm2186_vm13, %v2173_v60  ;;  %v2160_v55 = vmax.f32 %v2090_v1, 0.0  ;;  %v2109_v5 = vpop.f32.mrf.mxu2 }
 0x3a3   : > { %v2110_v12 = vadd.f32 %v5184_v51, %v2109_v5 }
 0x3a4   : > { %2235 = vst.msk [vmem:[#allocation3 + $0x61] sm:$0xff] %vm2186_vm13, %v2160_v55 }
 0x3a5   : > { %v2168_v58 = vmax.f32 %v2110_v12, 0.0  ;;  %v2124_v37 = vpop.f32.mrf.mxu3 }
 0x3a6   : > { %v2125_v29 = vadd.f32 %v5184_v51, %v2124_v37 }
 0x3a7   : > { %2243 = vst.msk [vmem:[#allocation3 + $0xc1] sm:$0xff] %vm2186_vm13, %v2168_v58  ;;  %v2091_v35 = vpop.f32.mrf.mxu0 }
 0x3a8   : > { %v2174_v7 = vmax.f32 %v2125_v29, 0.0  ;;  %v2092_v9 = vadd.f32 %v5184_v51, %v2091_v35 }
 0x3a9   : > { %v2271_v20 = vld [vmem:[#allocation3 + $0xf0] ss:$2 sm:$0xff]  ;;  %v2295_v45 = vld [vmem:[#allocation3 + $0xf1] ss:$2 sm:$0xff] }
 0x3aa   : > { %2249 = vst.msk [vmem:[#allocation3 + $0x109] sm:$0xff] %vm2186_vm13, %v2174_v7  ;;  %v2161_v18 = vmax.f32 %v2092_v9, 0.0  ;;  %v2111_v0 = vpop.f32.mrf.mxu2  ;;  %v2352_v38 = vld [vmem:[#allocation3 + $0xf2] ss:$2 sm:$0xff] }
 0x3ab   : > { %v2112_v4 = vadd.f32 %v5184_v51, %v2111_v0  ;;  %2281 = vst.msk [vmem:[#allocation5 + $0x50] sm:$0xff] %vm2186_vm13, %v2271_v20  ;;  %v2344_v20 = vld [vmem:[#allocation3 + $0x32] ss:$2 sm:$0xff] }
 0x3ac   : > { %2236 = vst.msk [vmem:[#allocation3 + $0x69] sm:$0xff] %vm2186_vm13, %v2161_v18 }
 0x3ad   : > { %v2169_v30 = vmax.f32 %v2112_v4, 0.0  ;;  %v2126_v21 = vpop.f32.mrf.mxu3 }
 0x3ae   : > { %v2127_v26 = vadd.f32 %v5184_v51, %v2126_v21 }
 0x3af   : > { %2244 = vst.msk [vmem:[#allocation3 + $0xc9] sm:$0xff] %vm2186_vm13, %v2169_v30  ;;  %v2094_v36 = vpop.f32.mrf.mxu0 }
 0x3b0   : > { %v2175_v63 = vmax.f32 %v2127_v26, 0.0  ;;  %v2095_v22 = vadd.f32 %v5184_v51, %v2094_v36 }
 0x3b2   : > { %2250 = vst.msk [vmem:[#allocation3 + $0x111] sm:$0xff] %vm2186_vm13, %v2175_v63  ;;  %v2162_v19 = vmax.f32 %v2095_v22, 0.0  ;;  %v2114_v40 = vpop.f32.mrf.mxu2 }
 0x3b3   : > { %v2115_v42 = vadd.f32 %v5184_v51, %v2114_v40  ;;  %v2289_v50 = vld [vmem:[#allocation3 + $0x61] ss:$2 sm:$0xff]  ;;  %v2265_v25 = vld [vmem:[#allocation3 + $0x60] ss:$2 sm:$0xff] }
 0x3b4   : > { %2237 = vst.msk [vmem:[#allocation3 + $0x79] sm:$0xff] %vm2186_vm13, %v2162_v19  ;;  %2312 = vrot.lane.b32.xlu0 %v2289_v50, %s3935_s11  ;;  %v2346_v22 = vld [vmem:[#allocation3 + $0x62] ss:$2 sm:$0xff] }
 0x3b5   : > { %v2170_v47 = vmax.f32 %v2115_v42, 0.0  ;;  %v2129_v44 = vpop.f32.mrf.mxu3  ;;  %2278 = vst.msk [vmem:[#allocation5 + $0x20] sm:$0xff] %vm2186_vm13, %v2265_v25 }
 0x3b6   : > { %v2130_v49 = vadd.f32 %v5184_v51, %v2129_v44  ;;  %v2293_v14 = vld [vmem:[#allocation3 + $0xc1] ss:$2 sm:$0xff]  ;;  %v2269_v54 = vld [vmem:[#allocation3 + $0xc0] ss:$2 sm:$0xff] }
 0x3b7   : > { %2245 = vst.msk [vmem:[#allocation3 + $0xd9] sm:$0xff] %vm2186_vm13, %v2170_v47  ;;  %v2096_v15 = vpop.f32.mrf.mxu0  ;;  %2316 = vrot.lane.b32.xlu2 %v2293_v14, %s3935_s11  ;;  %v2407_v26 = vld [vmem:[#allocation3 + $0xc3] ss:$2 sm:$0xff]  ;;  %v2350_v36 = vld [vmem:[#allocation3 + $0xc2] ss:$2 sm:$0xff] }
 0x3b8   : > { %v2176_v53 = vmax.f32 %v2130_v49, 0.0  ;;  %v2097_v27 = vadd.f32 %v5184_v51, %v2096_v15  ;;  %2280 = vst.msk [vmem:[#allocation5 + $0x40] sm:$0xff] %vm2186_vm13, %v2269_v54  ;;  %v2403_v47 = vld [vmem:[#allocation3 + $0x63] ss:$2 sm:$0xff]  ;;  %v2409_v54 = vld [vmem:[#allocation3 + $0xf3] ss:$2 sm:$0xff] }
 0x3b9   : > { %v2399_v49 = vld [vmem:[#allocation3 + $0x3] ss:$2 sm:$0xff]  ;;  %v2465_v15 = vld [vmem:[#allocation3 + $0x108] ss:$2 sm:$0xff] }
 0x3ba   : > { %2251 = vst.msk [vmem:[#allocation3 + $0x121] sm:$0xff] %vm2186_vm13, %v2176_v53  ;;  %v2163_v28 = vmax.f32 %v2097_v27, 0.0  ;;  %v2116_v43 = vpop.f32.mrf.mxu2  ;;  %v2512_v27 = vld [vmem:[#allocation3 + $0x19] ss:$2 sm:$0xff] }
 0x3bb   : > { %v2117_v57 = vadd.f32 %v5184_v51, %v2116_v43 }
 0x3bc   : > { %2238 = vst.msk [vmem:[#allocation3 + $0x81] sm:$0xff] %vm2186_vm13, %v2163_v28  ;;  %2318 = vrot.lane.b32.xlu0 %v2295_v45, %s3935_s11  ;;  %v2455_v28 = vld [vmem:[#allocation3 + $0x18] ss:$2 sm:$0xff] }
 0x3bd   : > { %v2171_v46 = vmax.f32 %v2117_v57, 0.0  ;;  %v2131_v48 = vpop.f32.mrf.mxu3 }
 0x3be   : > { %v2132_v56 = vadd.f32 %v5184_v51, %v2131_v48  ;;  %v2457_v48 = vld [vmem:[#allocation3 + $0x48] ss:$2 sm:$0xff] }
 0x3bf   : > { %2246 = vst.msk [vmem:[#allocation3 + $0xe1] sm:$0xff] %vm2186_vm13, %v2171_v46  ;;  %v2099_v23 = vpop.f32.mrf.mxu0 }
 0x3c0   : > { %v2177_v33 = vmax.f32 %v2132_v56, 0.0  ;;  %v2100_v11 = vadd.f32 %v5184_v51, %v2099_v23 }
 0x3c2   : > { %2252 = vst.msk [vmem:[#allocation3 + $0x129] sm:$0xff] %vm2186_vm13, %v2177_v33  ;;  %v2164_v41 = vmax.f32 %v2100_v11, 0.0  ;;  %v2261_v33 = vld [vmem:[#allocation3] ss:$2 sm:$0xff]  ;;  %v2309_v11 = vpop.permute.xlu1 %2308 }
 0x3c3   : > { %v2459_v25 = vld [vmem:[#allocation3 + $0x78] ss:$2 sm:$0xff]  ;;  %2276 = vst.msk [vmem:[#allocation5] sm:$0xff] %vm2186_vm13, %v2261_v33 }
 0x3c4   : > { %2239 = vst.msk [vmem:[#allocation3 + $0x91] sm:$0xff] %vm2186_vm13, %v2164_v41  ;;  %2365 = vrot.lane.b32.xlu0 %v2342_v52, %s3937_s13  ;;  %v2571_v41 = vld [vmem:[#allocation3 + $0x4a] ss:$2 sm:$0xff] }
 0x3c5   : > { %v2134_v34 = vpop.f32.mrf.mxu3  ;;  %2333 = vst.msk [vmem:[#allocation5] sm:$0xff] %vm2332_vm1, %v2309_v11 }
 0x3c6   : > { %v2135_v59 = vadd.f32 %v5184_v51, %v2134_v34  ;;  %v2463_v52 = vld [vmem:[#allocation3 + $0xd8] ss:$2 sm:$0xff]  ;;  %v2514_v34 = vld [vmem:[#allocation3 + $0x49] ss:$2 sm:$0xff] }
 0x3c7   : > { %v2101_v2 = vpop.f32.mrf.mxu0 }
 0x3c8   : > { %v2178_v17 = vmax.f32 %v2135_v59, 0.0  ;;  %v2102_v39 = vadd.f32 %v5184_v51, %v2101_v2 }
 0x3c9   : > { %v2273_v3 = vld [vmem:[#allocation3 + $0x120] ss:$2 sm:$0xff]  ;;  %v2297_v6 = vld [vmem:[#allocation3 + $0x121] ss:$2 sm:$0xff] }
 0x3ca   : > { %2253 = vst.msk [vmem:[#allocation3 + $0x139] sm:$0xff] %vm2186_vm13, %v2178_v17  ;;  %v2165_v16 = vmax.f32 %v2102_v39, 0.0  ;;  %v2354_v18 = vld [vmem:[#allocation3 + $0x122] ss:$2 sm:$0xff]  ;;  %v2411_v43 = vld [vmem:[#allocation3 + $0x123] ss:$2 sm:$0xff] }
 0x3cb   : > { %2282 = vst.msk [vmem:[#allocation5 + $0x60] sm:$0xff] %vm2186_vm13, %v2273_v3  ;;  %v2577_v17 = vld [vmem:[#allocation3 + $0xda] ss:$2 sm:$0xff]  ;;  %v2520_v39 = vld [vmem:[#allocation3 + $0xd9] ss:$2 sm:$0xff] }
 0x3cc   : > { %2240 = vst.msk [vmem:[#allocation3 + $0x99] sm:$0xff] %vm2186_vm13, %v2165_v16  ;;  %v2516_v3 = vld [vmem:[#allocation3 + $0x79] ss:$2 sm:$0xff]  ;;  %v2693_v11 = vld [vmem:[#allocation3 + $0x120] ss:$2 sm:$0xff] }
 0x3cd   : > { %v2136_v62 = vpop.f32.mrf.mxu3 }
 0x3ce   : > { %v2137_v13 = vadd.f32 %v5184_v51, %v2136_v62 }
 0x3cf   : > { %v2104_v8 = vpop.f32.mrf.mxu0 }
 0x3d0   : > { %v2179_v61 = vmax.f32 %v2137_v13, 0.0  ;;  %v2105_v60 = vadd.f32 %v5184_v51, %v2104_v8 }
 0x3d2   : > { %2254 = vst.msk [vmem:[#allocation3 + $0x141] sm:$0xff] %vm2186_vm13, %v2179_v61  ;;  %v2166_v1 = vmax.f32 %v2105_v60, 0.0  ;;  %v2522_v61 = vld [vmem:[#allocation3 + $0x109] ss:$2 sm:$0xff] }
 0x3d3   : > { %v2291_v55 = vld [vmem:[#allocation3 + $0x91] ss:$2 sm:$0xff]  ;;  %v2348_v5 = vld [vmem:[#allocation3 + $0x92] ss:$2 sm:$0xff] }
 0x3d4   : > { %2241 = vst.msk [vmem:[#allocation3 + $0xa9] sm:$0xff] %vm2186_vm13, %v2166_v1  ;;  %2314 = vrot.lane.b32.xlu1 %v2291_v55, %s3935_s11  ;;  %2371 = vrot.lane.b32.xlu0 %v2348_v5, %s3937_s13  ;;  %v2267_v12 = vld [vmem:[#allocation3 + $0x90] ss:$2 sm:$0xff]  ;;  %v2405_v53 = vld [vmem:[#allocation3 + $0x93] ss:$2 sm:$0xff] }
 0x3d5   : > { %v2139_v58 = vpop.f32.mrf.mxu3  ;;  %2279 = vst.msk [vmem:[#allocation5 + $0x30] sm:$0xff] %vm2186_vm13, %v2267_v12  ;;  %v2630_v1 = vld [vmem:[#allocation3 + $0x7b] ss:$2 sm:$0xff]  ;;  %v2573_v55 = vld [vmem:[#allocation3 + $0x7a] ss:$2 sm:$0xff] }
 0x3d6   : > { %v2140_v37 = vadd.f32 %v5184_v51, %v2139_v58  ;;  %v2569_v58 = vld [vmem:[#allocation3 + $0x1a] ss:$2 sm:$0xff] }
 0x3d7   : > { %v2106_v29 = vpop.f32.mrf.mxu0 }
 0x3d8   : > { %v2180_v35 = vmax.f32 %v2140_v37, 0.0  ;;  %v2107_v7 = vadd.f32 %v5184_v51, %v2106_v29  ;;  %v2636_v29 = vld [vmem:[#allocation3 + $0x10b] ss:$2 sm:$0xff] }
 0x3d9   : > { %v2524_v56 = vld [vmem:[#allocation3 + $0x139] ss:$2 sm:$0xff]  ;;  %v2467_v23 = vld [vmem:[#allocation3 + $0x138] ss:$2 sm:$0xff] }
 0x3da   : > { %2255 = vst.msk [vmem:[#allocation3 + $0x151] sm:$0xff] %vm2186_vm13, %v2180_v35  ;;  %v2167_v9 = vmax.f32 %v2107_v7, 0.0  ;;  %v2579_v35 = vld [vmem:[#allocation3 + $0x10a] ss:$2 sm:$0xff] }
 0x3dc   : > { %2242 = vst.msk [vmem:[#allocation3 + $0xb1] sm:$0xff] %vm2186_vm13, %v2167_v9  ;;  %2320 = vrot.lane.b32.xlu1 %v2297_v6, %s3935_s11  ;;  %2377 = vrot.lane.b32.xlu0 %v2354_v18, %s3937_s13 }
 0x3dd   : > { %v2141_v0 = vpop.f32.mrf.mxu3 }
 0x3de   : > { %v2142_v24 = vadd.f32 %v5184_v51, %v2141_v0 }
 0x3e0   : > { %v2181_v4 = vmax.f32 %v2142_v24, 0.0 }
 0x3e2   : > { %2256 = vst.msk [vmem:[#allocation3 + $0x159] sm:$0xff] %vm2186_vm13, %v2181_v4  ;;  %v2626_v4 = vld [vmem:[#allocation3 + $0x1b] ss:$2 sm:$0xff] }
 0x3e3   : > { %v2518_v45 = vld [vmem:[#allocation3 + $0xa9] ss:$2 sm:$0xff]  ;;  %v2461_v46 = vld [vmem:[#allocation3 + $0xa8] ss:$2 sm:$0xff] }
 0x3e4   : > { %2424 = vrot.lane.b32.xlu0 %v2401_v10, %s3939_s15  ;;  %2367 = vrot.lane.b32.xlu1 %v2344_v20, %s3937_s13  ;;  %v2575_v24 = vld [vmem:[#allocation3 + $0xaa] ss:$2 sm:$0xff] }
 0x3e5   : > { %v2144_v32 = vpop.f32.mrf.mxu3 }
 0x3e6   : > { %v2145_v42 = vadd.f32 %v5184_v51, %v2144_v32 }
 0x3e8   : > { %v2182_v50 = vmax.f32 %v2145_v42, 0.0  ;;  %v2638_v42 = vld [vmem:[#allocation3 + $0x13b] ss:$2 sm:$0xff] }
 0x3e9   : > { %v2299_v30 = vld [vmem:[#allocation3 + $0x151] ss:$2 sm:$0xff]  ;;  %v2275_v21 = vld [vmem:[#allocation3 + $0x150] ss:$2 sm:$0xff] }
 0x3ea   : > { %2322 = vrot.lane.b32.xlu2 %v2299_v30, %s3935_s11  ;;  %2283 = vst.msk [vmem:[#allocation5 + $0x70] sm:$0xff] %vm2186_vm13, %v2275_v21  ;;  %v2413_v19 = vld [vmem:[#allocation3 + $0x153] ss:$2 sm:$0xff]  ;;  %v2356_v40 = vld [vmem:[#allocation3 + $0x152] ss:$2 sm:$0xff] }
 0x3eb   : > { %2257 = vst.msk [vmem:[#allocation3 + $0x169] sm:$0xff] %vm2186_vm13, %v2182_v50  ;;  %v2581_v21 = vld [vmem:[#allocation3 + $0x13a] ss:$2 sm:$0xff] }
 0x3ec   : > { %2430 = vrot.lane.b32.xlu0 %v2407_v26, %s3939_s15  ;;  %2373 = vrot.lane.b32.xlu1 %v2350_v36, %s3937_s13  ;;  %v2689_v26 = vld [vmem:[#allocation3 + $0xc0] ss:$2 sm:$0xff]  ;;  %v2632_v36 = vld [vmem:[#allocation3 + $0xab] ss:$2 sm:$0xff]  ;;  %v2695_v32 = vld [vmem:[#allocation3 + $0x150] ss:$2 sm:$0xff] }
 0x3ed   : > { %v2146_v44 = vpop.f32.mrf.mxu3 }
 0x3ee   : > { %v2311_v63 = vpop.permute.xlu2 %2310  ;;  %v2147_v31 = vadd.f32 %v5184_v51, %v2146_v44  ;;  %v2742_v44 = vld [vmem:[#allocation3 + $0x61] ss:$2 sm:$0xff] }
 0x3ef   : > { %2334 = vst.msk [vmem:[#allocation5 + $0x10] sm:$0xff] %vm2332_vm1, %v2311_v63 }
 0x3f0   : > { %v2183_v14 = vmax.f32 %v2147_v31, 0.0  ;;  %v2685_v31 = vld [vmem:[#allocation3 + $0x60] ss:$2 sm:$0xff] }
 0x3f2   : > { %2369 = vrot.lane.b32.xlu2 %v2346_v22, %s3937_s13  ;;  %2258 = vst.msk [vmem:[#allocation3 + $0x171] sm:$0xff] %vm2186_vm13, %v2183_v14 }
 0x3f4   : > { %2436 = vrot.lane.b32.xlu0 %v2413_v19, %s3939_s15  ;;  %2379 = vrot.lane.b32.xlu1 %v2356_v40, %s3937_s13  ;;  %v2628_v40 = vld [vmem:[#allocation3 + $0x4b] ss:$2 sm:$0xff] }
 0x3f5   : > { %v2149_v60 = vpop.f32.mrf.mxu3 }
 0x3f6   : > { %v2150_v5 = vadd.f32 %v5184_v51, %v2149_v60  ;;  %v2854_v60 = vld [vmem:[#allocation3 + $0x33] ss:$2 sm:$0xff] }
 0x3f8   : > { %v2184_v12 = vmax.f32 %v2150_v5, 0.0 }
 0x3f9   : > { %v2469_v2 = vld [vmem:[#allocation3 + $0x168] ss:$2 sm:$0xff]  ;;  %v2526_v13 = vld [vmem:[#allocation3 + $0x169] ss:$2 sm:$0xff] }
 0x3fa   : > { %2375 = vrot.lane.b32.xlu2 %v2352_v38, %s3937_s13  ;;  %s3942_s13 = smov 40   ;;  %v2583_v62 = vld [vmem:[#allocation3 + $0x16a] ss:$2 sm:$0xff]  ;;  %2259 = vst.msk [vmem:[#allocation3 + $0x181] sm:$0xff] %vm2186_vm13, %v2184_v12  ;;  %v3219_v12 = vld [vmem:[#allocation2 + $0x31] ss:$2 sm:$0xff] }
 0x3fc   : > { %2482 = vrot.lane.b32.xlu0 %v2459_v25, %s3941_s17  ;;  %2426 = vrot.lane.b32.xlu1 %v2403_v47, %s3939_s15  ;;  %v2634_v47 = vld [vmem:[#allocation3 + $0xdb] ss:$2 sm:$0xff] }
 0x3fd   : > { %v2151_v37 = vpop.f32.mrf.mxu3 }
 0x3fe   : > { %v2152_v7 = vadd.f32 %v5184_v51, %v2151_v37  ;;  %v2683_v51 = vld [vmem:[#allocation3 + $0x30] ss:$2 sm:$0xff]  ;;  %v3084_v37 = vld [vmem:[#allocation3 + $0x7b] ss:$2 sm:$0xff] }
 0x400   : > { %v2185_v6 = vmax.f32 %v2152_v7, 0.0 }
 0x402   : > { %2422 = vrot.lane.b32.xlu2 %v2399_v49, %s3939_s15  ;;  %2260 = vst.msk [vmem:[#allocation3 + $0x189] sm:$0xff] %vm2186_vm13, %v2185_v6  ;;  %v3167_v6 = vld [vmem:[#allocation2 + $0x7a] ss:$2 sm:$0xff] }
 0x404   : > { %2488 = vrot.lane.b32.xlu0 %v2465_v15, %s3941_s17  ;;  %2432 = vrot.lane.b32.xlu1 %v2409_v54, %s3939_s15  ;;  %v2640_v54 = vld [vmem:[#allocation3 + $0x16b] ss:$2 sm:$0xff] }
 0x40a   : > { %2428 = vrot.lane.b32.xlu2 %v2405_v53, %s3939_s15  ;;  %v2797_v53 = vld [vmem:[#allocation3 + $0x32] ss:$2 sm:$0xff] }
 0x40c   : > { %2535 = vrot.lane.b32.xlu0 %v2512_v27, %s3942_s13  ;;  %2478 = vrot.lane.b32.xlu1 %v2455_v28, %s3941_s17  ;;  %v2691_v27 = vld [vmem:[#allocation3 + $0xf0] ss:$2 sm:$0xff] }
 0x411   : > { %v2317_v57 = vpop.permute.xlu2 %2316 }
 0x412   : > { %2434 = vrot.lane.b32.xlu2 %v2411_v43, %s3939_s15  ;;  %2337 = vst.msk [vmem:[#allocation5 + $0x40] sm:$0xff] %vm2332_vm1, %v2317_v57  ;;  %s3944_s15 = smov 56  }
 0x414   : > { %2541 = vrot.lane.b32.xlu0 %v2518_v45, %s3942_s13  ;;  %2484 = vrot.lane.b32.xlu1 %v2461_v46, %s3941_s17  ;;  %v2687_v45 = vld [vmem:[#allocation3 + $0x90] ss:$2 sm:$0xff]  ;;  %v3221_v46 = vld [vmem:[#allocation2 + $0x61] ss:$2 sm:$0xff] }
 0x41a   : > { %2480 = vrot.lane.b32.xlu2 %v2457_v48, %s3941_s17  ;;  %v2697_v48 = vld [vmem:[#allocation3 + $0x180] ss:$2 sm:$0xff] }
 0x41c   : > { %2547 = vrot.lane.b32.xlu0 %v2524_v56, %s3942_s13  ;;  %2490 = vrot.lane.b32.xlu1 %v2467_v23, %s3941_s17 }
 0x422   : > { %2486 = vrot.lane.b32.xlu2 %v2463_v52, %s3941_s17  ;;  %v3275_v52 = vld [vmem:[#allocation2 + $0x32] ss:$2 sm:$0xff] }
 0x424   : > { %2594 = vrot.lane.b32.xlu0 %v2571_v41, %s3943_s14  ;;  %2537 = vrot.lane.b32.xlu1 %v2514_v34, %s3942_s13  ;;  %v3163_v41 = vld [vmem:[#allocation2 + $0x1a] ss:$2 sm:$0xff] }
 0x426   : > { %v2313_v59 = vpop.permute.xlu0 %2312 }
 0x427   : > { %2335 = vst.msk [vmem:[#allocation5 + $0x20] sm:$0xff] %vm2332_vm1, %v2313_v59 }
 0x42a   : > { %2492 = vrot.lane.b32.xlu2 %v2469_v2, %s3941_s17  ;;  %s3946_s17 = smov 72  }
 0x42c   : > { %2600 = vrot.lane.b32.xlu0 %v2577_v17, %s3943_s14  ;;  %2543 = vrot.lane.b32.xlu1 %v2520_v39, %s3942_s13  ;;  %v2740_v17 = vld [vmem:[#allocation3 + $0x31] ss:$2 sm:$0xff]  ;;  %v2913_v39 = vld [vmem:[#allocation3 + $0x78] ss:$2 sm:$0xff] }
 0x42e   : > { %v2319_v16 = vpop.permute.xlu0 %2318 }
 0x42f   : > { %2338 = vst.msk [vmem:[#allocation5 + $0x50] sm:$0xff] %vm2332_vm1, %v2319_v16  ;;  %v2799_v16 = vld [vmem:[#allocation3 + $0x62] ss:$2 sm:$0xff] }
 0x432   : > { %2539 = vrot.lane.b32.xlu2 %v2516_v3, %s3942_s13 }
 0x434   : > { %2606 = vrot.lane.b32.xlu0 %v2583_v62, %s3943_s14  ;;  %2549 = vrot.lane.b32.xlu1 %v2526_v13, %s3942_s13 }
 0x436   : > { %v2366_v8 = vpop.permute.xlu0 %2365 }
 0x437   : > { %2390 = vst.msk [vmem:[#allocation5] sm:$0xff] %vm2389_vm2, %v2366_v8  ;;  %v3165_v8 = vld [vmem:[#allocation2 + $0x4a] ss:$2 sm:$0xff] }
 0x43a   : > { %2545 = vrot.lane.b32.xlu2 %v2522_v61, %s3942_s13  ;;  %v3025_v61 = vld [vmem:[#allocation3 + $0x4a] ss:$2 sm:$0xff] }
 0x43c   : > { %2653 = vrot.lane.b32.xlu0 %v2630_v1, %s3944_s15  ;;  %2596 = vrot.lane.b32.xlu1 %v2573_v55, %s3943_s14 }
 0x442   : > { %2592 = vrot.lane.b32.xlu2 %v2569_v58, %s3943_s14  ;;  %v3277_v58 = vld [vmem:[#allocation2 + $0x62] ss:$2 sm:$0xff] }
 0x444   : > { %2659 = vrot.lane.b32.xlu0 %v2636_v29, %s3944_s15  ;;  %2602 = vrot.lane.b32.xlu1 %v2579_v35, %s3943_s14  ;;  %v2323_v9 = vpop.permute.xlu2 %2322 }
 0x445   : > { %2340 = vst.msk [vmem:[#allocation5 + $0x70] sm:$0xff] %vm2332_vm1, %v2323_v9  ;;  %v2856_v9 = vld [vmem:[#allocation3 + $0x63] ss:$2 sm:$0xff] }
 0x446   : > { %v2315_v18 = vpop.permute.xlu1 %2314  ;;  %v2372_v0 = vpop.permute.xlu0 %2371 }
 0x447   : > { %2336 = vst.msk [vmem:[#allocation5 + $0x30] sm:$0xff] %vm2332_vm1, %v2315_v18  ;;  %v2968_v18 = vld [vmem:[#allocation3 + $0x49] ss:$2 sm:$0xff] }
 0x448   : > { %2393 = vst.msk [vmem:[#allocation5 + $0x30] sm:$0xff] %vm2389_vm2, %v2372_v0 }
 0x44a   : > { %2598 = vrot.lane.b32.xlu2 %v2575_v24, %s3943_s14 }
 0x44c   : > { %2706 = vrot.lane.b32.xlu0 %v2683_v51, %s3945_s16  ;;  %2649 = vrot.lane.b32.xlu1 %v2626_v4, %s3944_s15  ;;  %v2370_v10 = vpop.permute.xlu2 %2369  ;;  %v2911_v4 = vld [vmem:[#allocation3 + $0x48] ss:$2 sm:$0xff] }
 0x44d   : > { %2392 = vst.msk [vmem:[#allocation5 + $0x20] sm:$0xff] %vm2389_vm2, %v2370_v10  ;;  %v2803_v10 = vld [vmem:[#allocation3 + $0xc2] ss:$2 sm:$0xff] }
 0x44e   : > { %v2321_v20 = vpop.permute.xlu1 %2320  ;;  %v2378_v30 = vpop.permute.xlu0 %2377 }
 0x44f   : > { %2339 = vst.msk [vmem:[#allocation5 + $0x60] sm:$0xff] %vm2332_vm1, %v2321_v20  ;;  %v3027_v20 = vld [vmem:[#allocation3 + $0x7a] ss:$2 sm:$0xff]  ;;  %vm2958_vm1 = vcmask 851712  }
 0x450   : > { %2396 = vst.msk [vmem:[#allocation5 + $0x60] sm:$0xff] %vm2389_vm2, %v2378_v30 }
 0x452   : > { %2604 = vrot.lane.b32.xlu2 %v2581_v21, %s3943_s14 }
 0x454   : > { %2712 = vrot.lane.b32.xlu0 %v2689_v26, %s3945_s16  ;;  %2655 = vrot.lane.b32.xlu1 %v2632_v36, %s3944_s15  ;;  %v2376_v63 = vpop.permute.xlu2 %2375  ;;  %v2970_v36 = vld [vmem:[#allocation3 + $0x79] ss:$2 sm:$0xff] }
 0x455   : > { %2395 = vst.msk [vmem:[#allocation5 + $0x50] sm:$0xff] %vm2389_vm2, %v2376_v63  ;;  %v2858_v63 = vld [vmem:[#allocation3 + $0x93] ss:$2 sm:$0xff] }
 0x456   : > { %v2425_v22 = vpop.permute.xlu0 %2424  ;;  %v2368_v19 = vpop.permute.xlu1 %2367 }
 0x457   : > { %2391 = vst.msk [vmem:[#allocation5 + $0x10] sm:$0xff] %vm2389_vm2, %v2368_v19 }
 0x458   : > { %2448 = vst.msk [vmem:[#allocation5 + $0x10] sm:$0xff] %vm2446_vm6, %v2425_v22  ;;  %v2744_v22 = vld [vmem:[#allocation3 + $0x91] ss:$2 sm:$0xff] }
 0x45a   : > { %2651 = vrot.lane.b32.xlu2 %v2628_v40, %s3944_s15 }
 0x45c   : > { %2718 = vrot.lane.b32.xlu0 %v2695_v32, %s3945_s16  ;;  %2661 = vrot.lane.b32.xlu1 %v2638_v42, %s3944_s15  ;;  %v2423_v50 = vpop.permute.xlu2 %2422  ;;  %v3082_v42 = vld [vmem:[#allocation3 + $0x4b] ss:$2 sm:$0xff] }
 0x45d   : > { %2447 = vst.msk [vmem:[#allocation5] sm:$0xff] %vm2446_vm6, %v2423_v50  ;;  %v3281_v50 = vld [vmem:[#allocation2 + $0xc2] ss:$2 sm:$0xff] }
 0x45e   : > { %v2431_v38 = vpop.permute.xlu0 %2430  ;;  %v2374_v25 = vpop.permute.xlu1 %2373 }
 0x45f   : > { %2394 = vst.msk [vmem:[#allocation5 + $0x40] sm:$0xff] %vm2389_vm2, %v2374_v25 }
 0x460   : > { %2451 = vst.msk [vmem:[#allocation5 + $0x40] sm:$0xff] %vm2446_vm6, %v2431_v38  ;;  %v3169_v38 = vld [vmem:[#allocation2 + $0xaa] ss:$2 sm:$0xff] }
 0x462   : > { %2657 = vrot.lane.b32.xlu2 %v2634_v47, %s3944_s15 }
 0x464   : > { %2765 = vrot.lane.b32.xlu0 %v2742_v44, %s3946_s17  ;;  %2708 = vrot.lane.b32.xlu1 %v2685_v31, %s3945_s16  ;;  %v2429_v49 = vpop.permute.xlu2 %2428  ;;  %v2746_v31 = vld [vmem:[#allocation3 + $0xc1] ss:$2 sm:$0xff] }
 0x465   : > { %2450 = vst.msk [vmem:[#allocation5 + $0x30] sm:$0xff] %vm2446_vm6, %v2429_v49  ;;  %v3223_v49 = vld [vmem:[#allocation2 + $0x91] ss:$2 sm:$0xff] }
 0x466   : > { %v2437_v14 = vpop.permute.xlu0 %2436  ;;  %v2380_v15 = vpop.permute.xlu1 %2379 }
 0x467   : > { %2397 = vst.msk [vmem:[#allocation5 + $0x70] sm:$0xff] %vm2389_vm2, %v2380_v15  ;;  %vm3015_vm2 = vcmask 917312  }
 0x468   : > { %2454 = vst.msk [vmem:[#allocation5 + $0x70] sm:$0xff] %vm2446_vm6, %v2437_v14  ;;  %v2972_v14 = vld [vmem:[#allocation3 + $0xa9] ss:$2 sm:$0xff] }
 0x46a   : > { %2663 = vrot.lane.b32.xlu2 %v2640_v54, %s3944_s15 }
 0x46c   : > { %2820 = vrot.lane.b32.xlu0 %v2797_v53, %s3947_s23  ;;  %2714 = vrot.lane.b32.xlu1 %v2691_v27, %s3945_s16  ;;  %v2435_v28 = vpop.permute.xlu2 %2434  ;;  %v2801_v27 = vld [vmem:[#allocation3 + $0x92] ss:$2 sm:$0xff] }
 0x46d   : > { %2453 = vst.msk [vmem:[#allocation5 + $0x60] sm:$0xff] %vm2446_vm6, %v2435_v28  ;;  %v3031_v28 = vld [vmem:[#allocation3 + $0xda] ss:$2 sm:$0xff] }
 0x46e   : > { %v2483_v43 = vpop.permute.xlu0 %2482  ;;  %v2427_v57 = vpop.permute.xlu1 %2426 }
 0x46f   : > { %2449 = vst.msk [vmem:[#allocation5 + $0x20] sm:$0xff] %vm2446_vm6, %v2427_v57 }
 0x470   : > { %2505 = vst.msk [vmem:[#allocation5 + $0x20] sm:$0xff] %vm2502_vm7, %v2483_v43  ;;  %v2860_v43 = vld [vmem:[#allocation3 + $0xc3] ss:$2 sm:$0xff] }
 0x472   : > { %2710 = vrot.lane.b32.xlu2 %v2687_v45, %s3945_s16  ;;  %v3141_v45 = vld [vmem:[#allocation2 + $0x49] ss:$2 sm:$0xff] }
 0x473   : > { %3155 = vst.msk [vmem:[#allocation5 + $0x18] sm:$0xff] %vm224_vm0, %v3141_v45  ;;  %v2809_v45 = vld [vmem:[#allocation3 + $0x152] ss:$2 sm:$0xff] }
 0x474   : > { %3244 = vrot.lane.b32.xlu0 %v3221_v46, %s3935_s11  ;;  %2720 = vrot.lane.b32.xlu1 %v2697_v48, %s3945_s16  ;;  %v2481_v56 = vpop.permute.xlu2 %2480 }
 0x475   : > { %2504 = vst.msk [vmem:[#allocation5 + $0x10] sm:$0xff] %vm2502_vm7, %v2481_v56  ;;  %v3225_v56 = vld [vmem:[#allocation2 + $0xc1] ss:$2 sm:$0xff] }
 0x476   : > { %v2489_v23 = vpop.permute.xlu0 %2488  ;;  %v2433_v33 = vpop.permute.xlu1 %2432 }
 0x477   : > { %2452 = vst.msk [vmem:[#allocation5 + $0x50] sm:$0xff] %vm2446_vm6, %v2433_v33  ;;  %v2915_v33 = vld [vmem:[#allocation3 + $0xa8] ss:$2 sm:$0xff]  ;;  %vm3072_vm6 = vcmask 982912  }
 0x478   : > { %2508 = vst.msk [vmem:[#allocation5 + $0x50] sm:$0xff] %vm2502_vm7, %v2489_v23  ;;  %v2748_v23 = vld [vmem:[#allocation3 + $0xf1] ss:$2 sm:$0xff] }
 0x47a   : > { %2716 = vrot.lane.b32.xlu2 %v2693_v11, %s3945_s16 }
 0x47c   : > { %3298 = vrot.lane.b32.xlu0 %v3275_v52, %s3936_s12  ;;  %3186 = vrot.lane.b32.xlu1 %v3163_v41, %s3934_s10  ;;  %v2487_v34 = vpop.permute.xlu2 %2486 }
 0x47d   : > { %2507 = vst.msk [vmem:[#allocation5 + $0x40] sm:$0xff] %vm2502_vm7, %v2487_v34  ;;  %v3139_v34 = vld [vmem:[#allocation2 + $0x19] ss:$2 sm:$0xff] }
 0x47e   : > { %v2536_v59 = vpop.permute.xlu0 %2535  ;;  %v2479_v2 = vpop.permute.xlu1 %2478  ;;  %3154 = vst.msk [vmem:[#allocation5 + $0x8] sm:$0xff] %vm224_vm0, %v3139_v34  ;;  %v3233_v34 = vld [vmem:[#allocation2 + $0x181] ss:$2 sm:$0xff] }
 0x47f   : > { %2503 = vst.msk [vmem:[#allocation5] sm:$0xff] %vm2502_vm7, %v2479_v2  ;;  %v3173_v2 = vld [vmem:[#allocation2 + $0x10a] ss:$2 sm:$0xff] }
 0x480   : > { %2560 = vst.msk [vmem:[#allocation5] sm:$0xff] %vm2559_vm8, %v2536_v59  ;;  %v3279_v59 = vld [vmem:[#allocation2 + $0x92] ss:$2 sm:$0xff] }
 0x482   : > { %2763 = vrot.lane.b32.xlu2 %v2740_v17, %s3946_s17  ;;  %v2974_v17 = vld [vmem:[#allocation3 + $0xd9] ss:$2 sm:$0xff] }
 0x484   : > { %2936 = vrot.lane.b32.xlu0 %v2913_v39, %s3948_s25  ;;  %2822 = vrot.lane.b32.xlu1 %v2799_v16, %s3947_s23  ;;  %v2493_v3 = vpop.permute.xlu2 %2492 }
 0x485   : > { %2510 = vst.msk [vmem:[#allocation5 + $0x70] sm:$0xff] %vm2502_vm7, %v2493_v3 }
 0x486   : > { %v2542_v62 = vpop.permute.xlu0 %2541  ;;  %v2485_v13 = vpop.permute.xlu1 %2484 }
 0x487   : > { %2506 = vst.msk [vmem:[#allocation5 + $0x30] sm:$0xff] %vm2502_vm7, %v2485_v13  ;;  %v3227_v13 = vld [vmem:[#allocation2 + $0xf1] ss:$2 sm:$0xff] }
 0x488   : > { %2563 = vst.msk [vmem:[#allocation5 + $0x30] sm:$0xff] %vm2559_vm8, %v2542_v62  ;;  %v2917_v62 = vld [vmem:[#allocation3 + $0xd8] ss:$2 sm:$0xff] }
 0x48a   : > { %3188 = vrot.lane.b32.xlu2 %v3165_v8, %s3934_s10  ;;  %v3086_v8 = vld [vmem:[#allocation3 + $0xab] ss:$2 sm:$0xff] }
 0x48c   : > { %3048 = vrot.lane.b32.xlu0 %v3025_v61, %s3949_s26  ;;  %2877 = vrot.lane.b32.xlu1 %v2854_v60, %s3950_s30  ;;  %v2540_v1 = vpop.permute.xlu2 %2539 }
 0x48d   : > { %2562 = vst.msk [vmem:[#allocation5 + $0x20] sm:$0xff] %vm2559_vm8, %v2540_v1 }
 0x48e   : > { %v2548_v55 = vpop.permute.xlu0 %2547  ;;  %v2491_v5 = vpop.permute.xlu1 %2490 }
 0x48f   : > { %2509 = vst.msk [vmem:[#allocation5 + $0x60] sm:$0xff] %vm2502_vm7, %v2491_v5  ;;  %v3798_v5 = vld [vmem:[%s5699_s3 + $0x38] sm:$0xff]  ;;  %vm3430_vm7 = vcmask 130048  }
 0x490   : > { %2566 = vst.msk [vmem:[#allocation5 + $0x60] sm:$0xff] %vm2559_vm8, %v2548_v55  ;;  %v3029_v55 = vld [vmem:[#allocation3 + $0xaa] ss:$2 sm:$0xff]  ;;  %3443 = vmatpush.bf16.msra.mxu1 %v3798_v5 }
 0x492   : > { %3242 = vrot.lane.b32.xlu2 %v3219_v12, %s3935_s11  ;;  %v2864_v12 = vld [vmem:[#allocation3 + $0x123] ss:$2 sm:$0xff] }
 0x494   : > { %3107 = vrot.lane.b32.xlu0 %v3084_v37, %s3951_s6  ;;  %3300 = vrot.lane.b32.xlu1 %v3277_v58, %s3936_s12  ;;  %v2546_v29 = vpop.permute.xlu2 %2545  ;;  %v2750_v58 = vld [vmem:[#allocation3 + $0x121] ss:$2 sm:$0xff] }
 0x495   : > { %2565 = vst.msk [vmem:[#allocation5 + $0x50] sm:$0xff] %vm2559_vm8, %v2546_v29 }
 0x496   : > { %v2595_v35 = vpop.permute.xlu0 %2594  ;;  %v2538_v7 = vpop.permute.xlu1 %2537 }
 0x497   : > { %2561 = vst.msk [vmem:[#allocation5 + $0x10] sm:$0xff] %vm2559_vm8, %v2538_v7  ;;  %v3797_v7 = vld [vmem:[%s5699_s3 + $0x30] sm:$0xff] }
 0x498   : > { %2618 = vst.msk [vmem:[#allocation5 + $0x10] sm:$0xff] %vm2616_vm9, %v2595_v35  ;;  %3444 = vmatpush.bf16.msra.mxu1 %v3797_v7 }
 0x49a   : > { %2879 = vrot.lane.b32.xlu2 %v2856_v9, %s3950_s30  ;;  %v3088_v9 = vld [vmem:[#allocation3 + $0xdb] ss:$2 sm:$0xff] }
 0x49c   : > { %3190 = vrot.lane.b32.xlu0 %v3167_v6, %s3934_s10  ;;  %2991 = vrot.lane.b32.xlu1 %v2968_v18, %s3952_s7  ;;  %v2593_v0 = vpop.permute.xlu2 %2592  ;;  %v3796_v6 = vld [vmem:[%s5699_s3 + $0x28] sm:$0xff]  ;;  %v2919_v18 = vld [vmem:[#allocation3 + $0x108] ss:$2 sm:$0xff] }
 0x49d   : > { %2617 = vst.msk [vmem:[#allocation5] sm:$0xff] %vm2616_vm9, %v2593_v0  ;;  %v2805_v0 = vld [vmem:[#allocation3 + $0xf2] ss:$2 sm:$0xff]  ;;  %3445 = vmatpush.bf16.msra.mxu1 %v3796_v6  ;;  %v3147_v6 = vld [vmem:[#allocation2 + $0xd9] ss:$2 sm:$0xff] }
 0x49e   : > { %v2601_v24 = vpop.permute.xlu0 %2600  ;;  %v2544_v51 = vpop.permute.xlu1 %2543  ;;  %3158 = vst.msk [vmem:[#allocation5 + $0x48] sm:$0xff] %vm224_vm0, %v3147_v6 }
 0x49f   : > { %2564 = vst.msk [vmem:[#allocation5 + $0x40] sm:$0xff] %vm2559_vm8, %v2544_v51  ;;  %v3799_v51 = vld [vmem:[%s5699_s3 + $0x40] sm:$0xff] }
 0x4a0   : > { %2621 = vst.msk [vmem:[#allocation5 + $0x40] sm:$0xff] %vm2616_vm9, %v2601_v24  ;;  %3479 = vmatpush.bf16.msrb.mxu2 %v3799_v51 }
 0x4a2   : > { %2934 = vrot.lane.b32.xlu2 %v2911_v4, %s3948_s25  ;;  %v3143_v4 = vld [vmem:[#allocation2 + $0x79] ss:$2 sm:$0xff] }
 0x4a3   : > { %3156 = vst.msk [vmem:[#allocation5 + $0x28] sm:$0xff] %vm224_vm0, %v3143_v4 }
 0x4a4   : > { %2826 = vrot.lane.b32.xlu0 %v2803_v10, %s3947_s23  ;;  %3050 = vrot.lane.b32.xlu1 %v3027_v20, %s3949_s26  ;;  %v2599_v30 = vpop.permute.xlu2 %2598 }
 0x4a5   : > { %2620 = vst.msk [vmem:[#allocation5 + $0x30] sm:$0xff] %vm2616_vm9, %v2599_v30  ;;  %v3171_v30 = vld [vmem:[#allocation2 + $0xda] ss:$2 sm:$0xff] }
 0x4a6   : > { %v2607_v21 = vpop.permute.xlu0 %2606  ;;  %v2550_v26 = vpop.permute.xlu1 %2549 }
 0x4a7   : > { %2567 = vst.msk [vmem:[#allocation5 + $0x70] sm:$0xff] %vm2559_vm8, %v2550_v26  ;;  %v3795_v26 = vld [vmem:[%s5699_s3 + $0x20] sm:$0xff]  ;;  %vm3129_vm8 = vcmask 1048512  }
 0x4a8   : > { %2624 = vst.msk [vmem:[#allocation5 + $0x70] sm:$0xff] %vm2616_vm9, %v2607_v21  ;;  %v3229_v21 = vld [vmem:[#allocation2 + $0x121] ss:$2 sm:$0xff]  ;;  %3446 = vmatpush.bf16.msra.mxu1 %v3795_v26 }
 0x4aa   : > { %2993 = vrot.lane.b32.xlu2 %v2970_v36, %s3952_s7  ;;  %v2978_v36 = vld [vmem:[#allocation3 + $0x139] ss:$2 sm:$0xff] }
 0x4ac   : > { %2881 = vrot.lane.b32.xlu0 %v2858_v63, %s3950_s30  ;;  %2767 = vrot.lane.b32.xlu1 %v2744_v22, %s3946_s17  ;;  %v2605_v19 = vpop.permute.xlu2 %2604  ;;  %v3794_v22 = vld [vmem:[%s5699_s3 + $0x18] sm:$0xff] }
 0x4ad   : > { %2623 = vst.msk [vmem:[#allocation5 + $0x60] sm:$0xff] %vm2616_vm9, %v2605_v19  ;;  %3447 = vmatpush.bf16.msra.mxu1 %v3794_v22 }
 0x4ae   : > { %v2654_v40 = vpop.permute.xlu0 %2653  ;;  %v2597_v32 = vpop.permute.xlu1 %2596 }
 0x4af   : > { %2619 = vst.msk [vmem:[#allocation5 + $0x20] sm:$0xff] %vm2616_vm9, %v2597_v32  ;;  %v2807_v32 = vld [vmem:[#allocation3 + $0x122] ss:$2 sm:$0xff] }
 0x4b0   : > { %2676 = vst.msk [vmem:[#allocation5 + $0x20] sm:$0xff] %vm2673_vm10, %v2654_v40 }
 0x4b2   : > { %3105 = vrot.lane.b32.xlu2 %v3082_v42, %s3951_s6  ;;  %v3283_v42 = vld [vmem:[#allocation2 + $0xf2] ss:$2 sm:$0xff] }
 0x4b4   : > { %3304 = vrot.lane.b32.xlu0 %v3281_v50, %s3936_s12  ;;  %3192 = vrot.lane.b32.xlu1 %v3169_v38, %s3934_s10  ;;  %v2652_v25 = vpop.permute.xlu2 %2651  ;;  %v3793_v50 = vld [vmem:[%s5699_s3 + $0x10] sm:$0xff]  ;;  %v3090_v38 = vld [vmem:[#allocation3 + $0x10b] ss:$2 sm:$0xff] }
 0x4b5   : > { %2675 = vst.msk [vmem:[#allocation5 + $0x10] sm:$0xff] %vm2673_vm10, %v2652_v25  ;;  %3448 = vmatpush.bf16.msra.mxu1 %v3793_v50 }
 0x4b6   : > { %v2660_v47 = vpop.permute.xlu0 %2659  ;;  %v2603_v44 = vpop.permute.xlu1 %2602 }
 0x4b7   : > { %2622 = vst.msk [vmem:[#allocation5 + $0x50] sm:$0xff] %vm2616_vm9, %v2603_v44 }
 0x4b8   : > { %2679 = vst.msk [vmem:[#allocation5 + $0x50] sm:$0xff] %vm2673_vm10, %v2660_v47  ;;  %v3792_v47 = vld [vmem:[%s5699_s3 + $0x8] sm:$0xff] }
 0x4b9   : > { %3449 = vmatpush.bf16.msra.mxu1 %v3792_v47  ;;  %v3039_v47 = vld [vmem:[#allocation3 + $0x19a] ss:$2 sm:$0xff] }
 0x4ba   : > { %2769 = vrot.lane.b32.xlu2 %v2746_v31, %s3946_s17 }
 0x4bc   : > { %2995 = vrot.lane.b32.xlu0 %v2972_v14, %s3952_s7  ;;  %3246 = vrot.lane.b32.xlu1 %v3223_v49, %s3935_s11  ;;  %v2658_v15 = vpop.permute.xlu2 %2657  ;;  %v2862_v49 = vld [vmem:[#allocation3 + $0xf3] ss:$2 sm:$0xff] }
 0x4bd   : > { %2678 = vst.msk [vmem:[#allocation5 + $0x40] sm:$0xff] %vm2673_vm10, %v2658_v15  ;;  %v3791_v14 = vld [vmem:[%s5699_s3] sm:$0xff]  ;;  %v2754_v15 = vld [vmem:[#allocation3 + $0x181] ss:$2 sm:$0xff] }
 0x4be   : > { %v2707_v54 = vpop.permute.xlu0 %2706  ;;  %v2650_v53 = vpop.permute.xlu1 %2649  ;;  %3450 = vmatpush.bf16.msra.mxu1 %v3791_v14  ;;  %v2982_v14 = vld [vmem:[#allocation3 + $0x199] ss:$2 sm:$0xff] }
 0x4bf   : > { %2674 = vst.msk [vmem:[#allocation5] sm:$0xff] %vm2673_vm10, %v2650_v53 }
 0x4c0   : > { %2731 = vst.msk [vmem:[#allocation5] sm:$0xff] %vm2730_vm11, %v2707_v54  ;;  %v2921_v54 = vld [vmem:[#allocation3 + $0x138] ss:$2 sm:$0xff] }
 0x4c2   : > { %2824 = vrot.lane.b32.xlu2 %v2801_v27, %s3947_s23 }
 0x4c4   : > { %3054 = vrot.lane.b32.xlu0 %v3031_v28, %s3949_s26  ;;  %2883 = vrot.lane.b32.xlu1 %v2860_v43, %s3950_s30  ;;  %v2664_v57 = vpop.permute.xlu2 %2663  ;;  %v3145_v43 = vld [vmem:[#allocation2 + $0xa9] ss:$2 sm:$0xff] }
 0x4c5   : > { %2681 = vst.msk [vmem:[#allocation5 + $0x70] sm:$0xff] %vm2673_vm10, %v2664_v57  ;;  %v3285_v57 = vld [vmem:[#allocation2 + $0x122] ss:$2 sm:$0xff] }
 0x4c6   : > { %v2713_v46 = vpop.permute.xlu0 %2712  ;;  %v2656_v48 = vpop.permute.xlu1 %2655  ;;  %3157 = vst.msk [vmem:[#allocation5 + $0x38] sm:$0xff] %vm224_vm0, %v3145_v43 }
 0x4c7   : > { %2677 = vst.msk [vmem:[#allocation5 + $0x30] sm:$0xff] %vm2673_vm10, %v2656_v48 }
 0x4c8   : > { %2734 = vst.msk [vmem:[#allocation5 + $0x30] sm:$0xff] %vm2730_vm11, %v2713_v46  ;;  %v3033_v46 = vld [vmem:[#allocation3 + $0x10a] ss:$2 sm:$0xff] }
 0x4ca   : > { %3248 = vrot.lane.b32.xlu2 %v3225_v56, %s3935_s11 }
 0x4cc   : > { %2771 = vrot.lane.b32.xlu0 %v2748_v23, %s3946_s17  ;;  %2938 = vrot.lane.b32.xlu1 %v2915_v33, %s3948_s25  ;;  %v2711_v11 = vpop.permute.xlu2 %2710 }
 0x4cd   : > { %2733 = vst.msk [vmem:[#allocation5 + $0x20] sm:$0xff] %vm2730_vm11, %v2711_v11 }
 0x4ce   : > { %v2719_v52 = vpop.permute.xlu0 %2718  ;;  %v2662_v41 = vpop.permute.xlu1 %2661 }
 0x4cf   : > { %2680 = vst.msk [vmem:[#allocation5 + $0x60] sm:$0xff] %vm2673_vm10, %v2662_v41  ;;  %v2976_v41 = vld [vmem:[#allocation3 + $0x109] ss:$2 sm:$0xff] }
 0x4d0   : > { %2737 = vst.msk [vmem:[#allocation5 + $0x60] sm:$0xff] %vm2730_vm11, %v2719_v52 }
 0x4d2   : > { %3302 = vrot.lane.b32.xlu2 %v3279_v59, %s3936_s12  ;;  %v3092_v59 = vld [vmem:[#allocation3 + $0x13b] ss:$2 sm:$0xff] }
 0x4d4   : > { %3196 = vrot.lane.b32.xlu0 %v3173_v2, %s3934_s10  ;;  %2997 = vrot.lane.b32.xlu1 %v2974_v17, %s3952_s7  ;;  %v2717_v39 = vpop.permute.xlu2 %2716 }
 0x4d5   : > { %2736 = vst.msk [vmem:[#allocation5 + $0x50] sm:$0xff] %vm2730_vm11, %v2717_v39 }
 0x4d6   : > { %v2766_v16 = vpop.permute.xlu0 %2765  ;;  %v2709_v3 = vpop.permute.xlu1 %2708 }
 0x4d7   : > { %2732 = vst.msk [vmem:[#allocation5 + $0x10] sm:$0xff] %vm2730_vm11, %v2709_v3  ;;  %v3287_v3 = vld [vmem:[#allocation2 + $0x152] ss:$2 sm:$0xff] }
 0x4d8   : > { %2789 = vst.msk [vmem:[#allocation5 + $0x10] sm:$0xff] %vm2787_vm12, %v2766_v16  ;;  %v3035_v16 = vld [vmem:[#allocation3 + $0x13a] ss:$2 sm:$0xff] }
 0x4da   : > { %2940 = vrot.lane.b32.xlu2 %v2917_v62, %s3948_s25  ;;  %v3175_v62 = vld [vmem:[#allocation2 + $0x13a] ss:$2 sm:$0xff] }
 0x4dc   : > { %3250 = vrot.lane.b32.xlu0 %v3227_v13, %s3935_s11  ;;  %3109 = vrot.lane.b32.xlu1 %v3086_v8, %s3951_s6  ;;  %v2764_v61 = vpop.permute.xlu2 %2763 }
 0x4dd   : > { %2788 = vst.msk [vmem:[#allocation5] sm:$0xff] %vm2787_vm12, %v2764_v61 }
 0x4de   : > { %v2821_v60 = vpop.permute.xlu0 %2820  ;;  %v2715_v1 = vpop.permute.xlu1 %2714 }
 0x4df   : > { %2845 = vst.msk [vmem:[#allocation5] sm:$0xff] %vm2844_vm14, %v2821_v60 }
 0x4e0   : > { %2735 = vst.msk [vmem:[#allocation5 + $0x40] sm:$0xff] %vm2730_vm11, %v2715_v1 }
 0x4e2   : > { %3052 = vrot.lane.b32.xlu2 %v3029_v55, %s3949_s26  ;;  %v2752_v55 = vld [vmem:[#allocation3 + $0x151] ss:$2 sm:$0xff] }
 0x4e4   : > { %2887 = vrot.lane.b32.xlu0 %v2864_v12, %s3950_s30  ;;  %2773 = vrot.lane.b32.xlu1 %v2750_v58, %s3946_s17  ;;  %v3189_v37 = vpop.permute.xlu2 %3188  ;;  %v2925_v12 = vld [vmem:[#allocation3 + $0x198] ss:$2 sm:$0xff] }
 0x4e5   : > { %3211 = vst.msk [vmem:[#allocation5 + $0x18] sm:$0xff] %vm555_vm3, %v3189_v37  ;;  %v2811_v58 = vld [vmem:[#allocation3 + $0x182] ss:$2 sm:$0xff] }
 0x4e6   : > { %v3245_v29 = vpop.permute.xlu0 %3244  ;;  %v2721_v35 = vpop.permute.xlu1 %2720 }
 0x4e7   : > { %3267 = vst.msk [vmem:[#allocation5 + $0x18] sm:$0xff] %vm748_vm4, %v3245_v29  ;;  %v3149_v29 = vld [vmem:[#allocation2 + $0x109] ss:$2 sm:$0xff] }
 0x4e8   : > { %2738 = vst.msk [vmem:[#allocation5 + $0x70] sm:$0xff] %vm2730_vm11, %v2721_v35 }
 0x4e9   : > { %3159 = vst.msk [vmem:[#allocation5 + $0x58] sm:$0xff] %vm224_vm0, %v3149_v29 }
 0x4ea   : > { %3111 = vrot.lane.b32.xlu2 %v3088_v9, %s3951_s6  ;;  %v3177_v9 = vld [vmem:[#allocation2 + $0x16a] ss:$2 sm:$0xff] }
 0x4ec   : > { %2942 = vrot.lane.b32.xlu0 %v2919_v18, %s3948_s25  ;;  %2828 = vrot.lane.b32.xlu1 %v2805_v0, %s3947_s23  ;;  %v3243_v24 = vpop.permute.xlu2 %3242  ;;  %v3037_v18 = vld [vmem:[#allocation3 + $0x16a] ss:$2 sm:$0xff]  ;;  %v2866_v0 = vld [vmem:[#allocation3 + $0x153] ss:$2 sm:$0xff] }
 0x4ee   : > { %v3299_v10 = vpop.permute.xlu0 %3298  ;;  %v3187_v20 = vpop.permute.xlu1 %3186 }
 0x4ef   : > { %3210 = vst.msk [vmem:[#allocation5 + $0x8] sm:$0xff] %vm555_vm3, %v3187_v20  ;;  %v3289_v20 = vld [vmem:[#allocation2 + $0x182] ss:$2 sm:$0xff] }
 0x4f0   : > { %3266 = vst.msk [vmem:[#allocation5 + $0x8] sm:$0xff] %vm748_vm4, %v3243_v24 }
 0x4f1   : > { %3322 = vst.msk [vmem:[#allocation5 + $0x8] sm:$0xff] %vm941_vm5, %v3299_v10  ;;  %v3231_v10 = vld [vmem:[#allocation2 + $0x151] ss:$2 sm:$0xff] }
 0x4f2   : > { %3194 = vrot.lane.b32.xlu2 %v3171_v30, %s3934_s10  ;;  %v3096_v30 = vld [vmem:[#allocation3 + $0x19b] ss:$2 sm:$0xff] }
 0x4f4   : > { %3001 = vrot.lane.b32.xlu0 %v2978_v36, %s3952_s7  ;;  %3252 = vrot.lane.b32.xlu1 %v3229_v21, %s3935_s11  ;;  %v2880_v63 = vpop.permute.xlu2 %2879 }
 0x4f6   : > { %v2937_v19 = vpop.permute.xlu0 %2936  ;;  %v2823_v40 = vpop.permute.xlu1 %2822 }
 0x4f7   : > { %2846 = vst.msk [vmem:[#allocation5 + $0x10] sm:$0xff] %vm2844_vm14, %v2823_v40  ;;  %v2868_v40 = vld [vmem:[#allocation3 + $0x183] ss:$2 sm:$0xff] }
 0x4f8   : > { %2903 = vst.msk [vmem:[#allocation5 + $0x10] sm:$0xff] %vm2901_vm15, %v2880_v63  ;;  %v3331_v33 = vld [vmem:[#allocation5 + $0x8] sm:$0xff] }
 0x4f9   : > { %2960 = vst.msk [vmem:[#allocation5 + $0x10] sm:$0xff] %vm2958_vm1, %v2937_v19 }
 0x4fa   : > { %2830 = vrot.lane.b32.xlu2 %v2807_v32, %s3947_s23  ;;  %v2980_v32 = vld [vmem:[#allocation3 + $0x169] ss:$2 sm:$0xff] }
 0x4fc   : > { %3113 = vrot.lane.b32.xlu0 %v3090_v38, %s3951_s6  ;;  %3306 = vrot.lane.b32.xlu1 %v3283_v42, %s3936_s12  ;;  %v2935_v25 = vpop.permute.xlu2 %2934 }
 0x4fe   : > { %v3049_v44 = vpop.permute.xlu0 %3048  ;;  %v2878_v31 = vpop.permute.xlu1 %2877 }
 0x4ff   : > { %2902 = vst.msk [vmem:[#allocation5] sm:$0xff] %vm2901_vm15, %v2878_v31 }
 0x500   : > { %2959 = vst.msk [vmem:[#allocation5] sm:$0xff] %vm2958_vm1, %v2935_v25  ;;  %v2923_v25 = vld [vmem:[#allocation3 + $0x168] ss:$2 sm:$0xff] }
 0x502   : > { %2885 = vrot.lane.b32.xlu2 %v2862_v49, %s3950_s30 }
 0x504   : > { %2777 = vrot.lane.b32.xlu0 %v2754_v15, %s3946_s17  ;;  %2944 = vrot.lane.b32.xlu1 %v2921_v54, %s3948_s25  ;;  %v2994_v53 = vpop.permute.xlu2 %2993 }
 0x505   : > { %3017 = vst.msk [vmem:[#allocation5 + $0x10] sm:$0xff] %vm3015_vm2, %v2994_v53 }
 0x506   : > { %v3108_v27 = vpop.permute.xlu0 %3107  ;;  %v3301_v28 = vpop.permute.xlu1 %3300 }
 0x507   : > { %3323 = vst.msk [vmem:[#allocation5 + $0x18] sm:$0xff] %vm941_vm5, %v3301_v28 }
 0x50a   : > { %3308 = vrot.lane.b32.xlu2 %v3285_v57, %s3936_s12 }
 0x50c   : > { %2832 = vrot.lane.b32.xlu0 %v2809_v45, %s3947_s23  ;;  %3056 = vrot.lane.b32.xlu1 %v3033_v46, %s3949_s26  ;;  %v3106_v48 = vpop.permute.xlu2 %3105 }
 0x50e   : > { %v3191_v56 = vpop.permute.xlu0 %3190  ;;  %v2992_v23 = vpop.permute.xlu1 %2991  ;;  %v3333_v11 = vld [vmem:[#allocation5 + $0x18] sm:$0xff] }
 0x50f   : > { %3212 = vst.msk [vmem:[#allocation5 + $0x28] sm:$0xff] %vm555_vm3, %v3191_v56  ;;  %v3347_v52 = vpack.c.bf16 %v3333_v11, %v3331_v33  ;;  %v3153_v11 = vld [vmem:[#allocation2 + $0x169] ss:$2 sm:$0xff] }
 0x510   : > { %3016 = vst.msk [vmem:[#allocation5] sm:$0xff] %vm3015_vm2, %v2992_v23 }
 0x511   : > { %3073 = vst.msk [vmem:[#allocation5] sm:$0xff] %vm3072_vm6, %v3049_v44  ;;  %3779 = vmatmul.msk.bf16.vlgmr.msrb.gmra.mxu2 %vm3430_vm7, %v3347_v52 }
 0x512   : > { %3130 = vst.msk [vmem:[#allocation5] sm:$0xff] %vm3129_vm8, %v3106_v48  ;;  %2999 = vrot.lane.b32.xlu2 %v2976_v41, %s3952_s7 }
 0x513   : > { %3161 = vst.msk [vmem:[#allocation5 + $0x78] sm:$0xff] %vm224_vm0, %v3153_v11 }
 0x514   : > { %3256 = vrot.lane.b32.xlu0 %v3233_v34, %s3935_s11  ;;  %3115 = vrot.lane.b32.xlu1 %v3092_v59, %s3951_s6  ;;  %v2770_v2 = vpop.permute.xlu2 %2769 }
 0x515   : > { %2791 = vst.msk [vmem:[#allocation5 + $0x30] sm:$0xff] %vm2787_vm12, %v2770_v2 }
 0x516   : > { %v2827_v17 = vpop.permute.xlu0 %2826  ;;  %v3051_v39 = vpop.permute.xlu1 %3050 }
 0x517   : > { %2848 = vst.msk [vmem:[#allocation5 + $0x30] sm:$0xff] %vm2844_vm14, %v2827_v17 }
 0x518   : > { %3074 = vst.msk [vmem:[#allocation5 + $0x10] sm:$0xff] %vm3072_vm6, %v3051_v39  ;;  %v3151_v39 = vld [vmem:[#allocation2 + $0x139] ss:$2 sm:$0xff] }
 0x519   : > { %3131 = vst.msk [vmem:[#allocation5 + $0x10] sm:$0xff] %vm3129_vm8, %v3108_v27  ;;  %v3330_v60 = vld [vmem:[#allocation5] sm:$0xff] }
 0x51a   : > { %3058 = vrot.lane.b32.xlu2 %v3035_v16, %s3949_s26  ;;  %v3094_v27 = vld [vmem:[#allocation3 + $0x16b] ss:$2 sm:$0xff]  ;;  %3160 = vst.msk [vmem:[#allocation5 + $0x68] sm:$0xff] %vm224_vm0, %v3151_v39 }
 0x51c   : > { %3310 = vrot.lane.b32.xlu0 %v3287_v3, %s3936_s12  ;;  %3198 = vrot.lane.b32.xlu1 %v3175_v62, %s3934_s10  ;;  %v2825_v13 = vpop.permute.xlu2 %2824 }
 0x51e   : > { %v2882_v8 = vpop.permute.xlu0 %2881  ;;  %v2768_v61 = vpop.permute.xlu1 %2767 }
 0x51f   : > { %2790 = vst.msk [vmem:[#allocation5 + $0x20] sm:$0xff] %vm2787_vm12, %v2768_v61 }
 0x520   : > { %2847 = vst.msk [vmem:[#allocation5 + $0x20] sm:$0xff] %vm2844_vm14, %v2825_v13  ;;  %v3332_v1 = vld [vmem:[#allocation5 + $0x10] sm:$0xff] }
 0x521   : > { %2904 = vst.msk [vmem:[#allocation5 + $0x20] sm:$0xff] %vm2901_vm15, %v2882_v8  ;;  %v3346_v5 = vpack.c.bf16 %v3332_v1, %v3330_v60 }
 0x522   : > { %2775 = vrot.lane.b32.xlu2 %v2752_v55, %s3946_s17 }
 0x523   : > { %3451 = vmatmul.bf16.vlgmr.msra.gmra.mxu1 %v3346_v5 }
 0x524   : > { %2948 = vrot.lane.b32.xlu0 %v2925_v12, %s3948_s25  ;;  %2834 = vrot.lane.b32.xlu1 %v2811_v58, %s3947_s23  ;;  %v3249_v37 = vpop.permute.xlu2 %3248 }
 0x526   : > { %v3305_v35 = vpop.permute.xlu0 %3304  ;;  %v3193_v7 = vpop.permute.xlu1 %3192 }
 0x527   : > { %3213 = vst.msk [vmem:[#allocation5 + $0x38] sm:$0xff] %vm555_vm3, %v3193_v7 }
 0x528   : > { %3269 = vst.msk [vmem:[#allocation5 + $0x38] sm:$0xff] %vm748_vm4, %v3249_v37 }
 0x529   : > { %3325 = vst.msk [vmem:[#allocation5 + $0x38] sm:$0xff] %vm941_vm5, %v3305_v35 }
 0x52a   : > { %3200 = vrot.lane.b32.xlu2 %v3177_v9, %s3934_s10  ;;  %s215_s10 = sand.u32 1, %s3923_s19  }
 0x52b   : > { %s3716_s23 = sshll.u32 %s215_s10, 6 }
 0x52c   : > { %3060 = vrot.lane.b32.xlu0 %v3037_v18, %s3949_s26  ;;  %2889 = vrot.lane.b32.xlu1 %v2866_v0, %s3950_s30  ;;  %v3303_v24 = vpop.permute.xlu2 %3302 }
 0x52e   : > { %v2996_v51 = vpop.permute.xlu0 %2995  ;;  %v3247_v4 = vpop.permute.xlu1 %3246 }
 0x52f   : > { %3268 = vst.msk [vmem:[#allocation5 + $0x28] sm:$0xff] %vm748_vm4, %v3247_v4  ;;  %v5621_v4 = vld [vmem:[%s5700_s4] ss:$0 sm:$0xff] }
 0x530   : > { %3324 = vst.msk [vmem:[#allocation5 + $0x28] sm:$0xff] %vm941_vm5, %v3303_v24  ;;  %v3337_v26 = vld [vmem:[#allocation5 + $0x38] sm:$0xff] }
 0x532   : > { %3254 = vrot.lane.b32.xlu2 %v3231_v10, %s3935_s11 }
 0x534   : > { %3312 = vrot.lane.b32.xlu1 %v3289_v20, %s3936_s12  ;;  %v2941_v21 = vpop.permute.xlu2 %2940  ;;  %3119 = vrot.lane.b32.xlu0 %v3096_v30, %s3951_s6  ;;  %s3889_s12 = scalar_lea.hbm %s5701_s5, 128 }
 0x536   : > { %v3055_v36 = vpop.permute.xlu0 %3054  ;;  %v2884_v63 = vpop.permute.xlu1 %2883 }
 0x537   : > { %2905 = vst.msk [vmem:[#allocation5 + $0x30] sm:$0xff] %vm2901_vm15, %v2884_v63  ;;  %v3335_v22 = vld [vmem:[#allocation5 + $0x28] sm:$0xff] }
 0x538   : > { %2962 = vst.msk [vmem:[#allocation5 + $0x30] sm:$0xff] %vm2958_vm1, %v2941_v21  ;;  %v3349_v19 = vpack.c.bf16 %v3337_v26, %v3335_v22 }
 0x53a   : > { %2891 = vrot.lane.b32.xlu2 %v2868_v40, %s3950_s30  ;;  %3780 = vmatmul.msk.bf16.gmra.mxu2 %vm3430_vm7, %v3349_v19 }
 0x53c   : > { %3003 = vrot.lane.b32.xlu1 %v2980_v32, %s3952_s7  ;;  %v3053_v42 = vpop.permute.xlu2 %3052 }
 0x53e   : > { %v2772_v50 = vpop.permute.xlu0 %2771  ;;  %v2939_v38 = vpop.permute.xlu1 %2938 }
 0x53f   : > { %2792 = vst.msk [vmem:[#allocation5 + $0x40] sm:$0xff] %vm2787_vm12, %v2772_v50 }
 0x540   : > { %2961 = vst.msk [vmem:[#allocation5 + $0x20] sm:$0xff] %vm2958_vm1, %v2939_v38 }
 0x541   : > { %3018 = vst.msk [vmem:[#allocation5 + $0x20] sm:$0xff] %vm3015_vm2, %v2996_v51 }
 0x542   : > { %3075 = vst.msk [vmem:[#allocation5 + $0x20] sm:$0xff] %vm3072_vm6, %v3053_v42  ;;  %2946 = vrot.lane.b32.xlu2 %v2923_v25, %s3948_s25  ;;  %s5628_s25 = scalar_lea.vmem [#allocation6], %s3716_s23 }
 0x543   : > { %s3522_s8 = sshll.u32 %s5628_s25, 4  ;;  %s3523_s8 = int_to_ptr.vmem [resolvable:$true] %s3522_s8 }
 0x544   : > { %3062 = vrot.lane.b32.xlu1 %v3039_v47, %s3949_s26  ;;  %v3112_v44 = vpop.permute.xlu2 %3111  ;;  %s3800_s26 = sshll.u32 %s4005_s22, 6  ;;  %s3510_s22 = scalar_lea.sflag [#allocation7], %s215_s10 }
 0x546   : > { %v3197_v31 = vpop.permute.xlu0 %3196  ;;  %v2998_v49 = vpop.permute.xlu1 %2997 }
 0x547   : > { %3215 = vst.msk [vmem:[#allocation5 + $0x58] sm:$0xff] %vm555_vm3, %v3197_v31 }
 0x548   : > { %3019 = vst.msk [vmem:[#allocation5 + $0x30] sm:$0xff] %vm3015_vm2, %v2998_v49 }
 0x549   : > { %3076 = vst.msk [vmem:[#allocation5 + $0x30] sm:$0xff] %vm3072_vm6, %v3055_v36 }
 0x54a   : > { %3133 = vst.msk [vmem:[#allocation5 + $0x30] sm:$0xff] %vm3129_vm8, %v3112_v44  ;;  %3005 = vrot.lane.b32.xlu2 %v2982_v14, %s3952_s7  ;;  %s3521_s7 = scalar_lea.hbm %s5701_s5, %s3800_s26 }
 0x54b   : > { %s3524_s9 = sshll.u32 %s3521_s7, 4  ;;  %s3525_s9 = int_to_ptr.hbm [resolvable:$true] %s3524_s9 }
 0x54c   : > { %v3195_v15 = vpop.permute.xlu2 %3194  ;;  %s3883_s13 = sshra.s32 %s3525_s9, 4  ;;  %s3884_s13 = int_to_ptr.hbm [resolvable:$true] %s3883_s13 }
 0x54d   : > { %3214 = vst.msk [vmem:[#allocation5 + $0x48] sm:$0xff] %vm555_vm3, %v3195_v15  ;;  %s3885_s14 = scalar_lea.hbm %s3884_s13, 64  ;;  %p3890_p0 = scmp.lt.s32.totalorder %s3884_s13, %s5701_s5 }
 0x54e   : > { %v3251_v54 = vpop.permute.xlu0 %3250  ;;  %v3110_v53 = vpop.permute.xlu1 %3109  ;;  %p3886_p11 = scmp.ne.s32.totalorder %s3884_s13, %s3885_s14  ;;  %p3891_p1 = scmp.lt.s32.totalorder %s3889_s12, %s3885_s14 }
 0x54f   : > { %3270 = vst.msk [vmem:[#allocation5 + $0x48] sm:$0xff] %vm748_vm4, %v3251_v54 }
 0x550   : > { %3132 = vst.msk [vmem:[#allocation5 + $0x20] sm:$0xff] %vm3129_vm8, %v3110_v53  ;;  %p3887_p12 = pnand %p3886_p11, %p4022_p5  ;;  %p3892_p2 = por %p3891_p1, %p3890_p0 }
 0x551   : > { %v3336_v46 = vld [vmem:[#allocation5 + $0x30] sm:$0xff] }
 0x552   : > { %3117 = vrot.lane.b32.xlu2 %v3094_v27, %s3951_s6  ;;  %p3888_p13 = pneg %p3887_p12 }
 0x554   : > { %v2831_v28 = vpop.permute.xlu2 %2830  ;;  %p3893_p3 = pnand %p3892_p2, %p3888_p13 }
 0x556   : > { %v2888_v43 = vpop.permute.xlu0 %2887  ;;  %v2774_v57 = vpop.permute.xlu1 %2773 }
 0x557   : > { %2793 = vst.msk [vmem:[#allocation5 + $0x50] sm:$0xff] %vm2787_vm12, %v2774_v57  ;;  %v3334_v45 = vld [vmem:[#allocation5 + $0x20] sm:$0xff] }
 0x558   : > { %2850 = vst.msk [vmem:[#allocation5 + $0x50] sm:$0xff] %vm2844_vm14, %v2831_v28  ;;  %v3348_v48 = vpack.c.bf16 %v3336_v46, %v3334_v45 }
 0x559   : > { %2907 = vst.msk [vmem:[#allocation5 + $0x50] sm:$0xff] %vm2901_vm15, %v2888_v43 }
 0x55a   : > { %3456 = vmatmul.bf16.gmra.mxu1 %v3348_v48 }
 0x55c   : > { %v2886_v56 = vpop.permute.xlu2 %2885 }
 0x55e   : > { %v2943_v23 = vpop.permute.xlu0 %2942  ;;  %v2829_v33 = vpop.permute.xlu1 %2828 }
 0x55f   : > { %2849 = vst.msk [vmem:[#allocation5 + $0x40] sm:$0xff] %vm2844_vm14, %v2829_v33 }
 0x560   : > { %2906 = vst.msk [vmem:[#allocation5 + $0x40] sm:$0xff] %vm2901_vm15, %v2886_v56 }
 0x561   : > { %2963 = vst.msk [vmem:[#allocation5 + $0x40] sm:$0xff] %vm2958_vm1, %v2943_v23 }
 0x564   : > { %v3309_v52 = vpop.permute.xlu2 %3308 }
 0x566   : > { %v3002_v41 = vpop.permute.xlu0 %3001  ;;  %v3253_v34 = vpop.permute.xlu1 %3252 }
 0x567   : > { %3271 = vst.msk [vmem:[#allocation5 + $0x58] sm:$0xff] %vm748_vm4, %v3253_v34 }
 0x568   : > { %3327 = vst.msk [vmem:[#allocation5 + $0x58] sm:$0xff] %vm941_vm5, %v3309_v52 }
 0x56c   : > { %v3000_v59 = vpop.permute.xlu2 %2999 }
 0x56d   : > { %3020 = vst.msk [vmem:[#allocation5 + $0x40] sm:$0xff] %vm3015_vm2, %v3000_v59 }
 0x56e   : > { %v3114_v2 = vpop.permute.xlu0 %3113  ;;  %v3307_v17 = vpop.permute.xlu1 %3306 }
 0x56f   : > { %3326 = vst.msk [vmem:[#allocation5 + $0x48] sm:$0xff] %vm941_vm5, %v3307_v17  ;;  %v3341_v3 = vld [vmem:[#allocation5 + $0x58] sm:$0xff] }
 0x574   : > { %v3059_v16 = vpop.permute.xlu2 %3058 }
 0x576   : > { %v2778_v62 = vpop.permute.xlu0 %2777  ;;  %v2945_v13 = vpop.permute.xlu1 %2944  ;;  %v3339_v8 = vld [vmem:[#allocation5 + $0x48] sm:$0xff] }
 0x577   : > { %2795 = vst.msk [vmem:[#allocation5 + $0x70] sm:$0xff] %vm2787_vm12, %v2778_v62  ;;  %v3351_v61 = vpack.c.bf16 %v3341_v3, %v3339_v8 }
 0x578   : > { %2964 = vst.msk [vmem:[#allocation5 + $0x50] sm:$0xff] %vm2958_vm1, %v2945_v13 }
 0x579   : > { %3021 = vst.msk [vmem:[#allocation5 + $0x50] sm:$0xff] %vm3015_vm2, %v3002_v41  ;;  %3781 = vmatmul.msk.bf16.gmra.mxu2 %vm3430_vm7, %v3351_v61 }
 0x57a   : > { %3078 = vst.msk [vmem:[#allocation5 + $0x50] sm:$0xff] %vm3072_vm6, %v3059_v16 }
 0x57c   : > { %v2776_v60 = vpop.permute.xlu2 %2775 }
 0x57d   : > { %2794 = vst.msk [vmem:[#allocation5 + $0x60] sm:$0xff] %vm2787_vm12, %v2776_v60 }
 0x57e   : > { %v2833_v1 = vpop.permute.xlu0 %2832  ;;  %v3057_v55 = vpop.permute.xlu1 %3056 }
 0x57f   : > { %2851 = vst.msk [vmem:[#allocation5 + $0x60] sm:$0xff] %vm2844_vm14, %v2833_v1 }
 0x580   : > { %3077 = vst.msk [vmem:[#allocation5 + $0x40] sm:$0xff] %vm3072_vm6, %v3057_v55 }
 0x581   : > { %3134 = vst.msk [vmem:[#allocation5 + $0x40] sm:$0xff] %vm3129_vm8, %v3114_v2 }
 0x584   : > { %v3201_v5 = vpop.permute.xlu2 %3200 }
 0x585   : > { %3217 = vst.msk [vmem:[#allocation5 + $0x78] sm:$0xff] %vm555_vm3, %v3201_v5 }
 0x586   : > { %v3257_v12 = vpop.permute.xlu0 %3256  ;;  %v3116_v58 = vpop.permute.xlu1 %3115 }
 0x587   : > { %3273 = vst.msk [vmem:[#allocation5 + $0x78] sm:$0xff] %vm748_vm4, %v3257_v12 }
 0x588   : > { %3135 = vst.msk [vmem:[#allocation5 + $0x50] sm:$0xff] %vm3129_vm8, %v3116_v58  ;;  %v3338_v7 = vld [vmem:[#allocation5 + $0x40] sm:$0xff] }
 0x58c   : > { %v3255_v37 = vpop.permute.xlu2 %3254 }
 0x58e   : > { %v3311_v29 = vpop.permute.xlu0 %3310  ;;  %v3199_v35 = vpop.permute.xlu1 %3198 }
 0x58f   : > { %3216 = vst.msk [vmem:[#allocation5 + $0x68] sm:$0xff] %vm555_vm3, %v3199_v35  ;;  %v3340_v9 = vld [vmem:[#allocation5 + $0x50] sm:$0xff] }
 0x590   : > { %3272 = vst.msk [vmem:[#allocation5 + $0x68] sm:$0xff] %vm748_vm4, %v3255_v37  ;;  %v3350_v6 = vpack.c.bf16 %v3340_v9, %v3338_v7 }
 0x591   : > { %3328 = vst.msk [vmem:[#allocation5 + $0x68] sm:$0xff] %vm941_vm5, %v3311_v29 }
 0x592   : > { %3461 = vmatmul.bf16.gmra.mxu1 %v3350_v6 }
 0x594   : > { %v2892_v18 = vpop.permute.xlu2 %2891  ;;  %v3481_v20 = vpop.f32.mrf.mxu2 }
 0x596   : > { %v2835_v0 = vpop.permute.xlu1 %2834  ;;  %v2949_v24 = vpop.permute.xlu0 %2948 }
 0x597   : > { %2852 = vst.msk [vmem:[#allocation5 + $0x70] sm:$0xff] %vm2844_vm14, %v2835_v0 }
 0x598   : > { %2909 = vst.msk [vmem:[#allocation5 + $0x70] sm:$0xff] %vm2901_vm15, %v2892_v18  ;;  %v3343_v38 = vld [vmem:[#allocation5 + $0x68] sm:$0xff] }
 0x599   : > { %2966 = vst.msk [vmem:[#allocation5 + $0x70] sm:$0xff] %vm2958_vm1, %v2949_v24 }
 0x59c   : > { %v2947_v51 = vpop.permute.xlu2 %2946  ;;  %v3483_v40 = vpop.f32.mrf.mxu2 }
 0x59e   : > { %v2890_v10 = vpop.permute.xlu1 %2889  ;;  %v3061_v42 = vpop.permute.xlu0 %3060 }
 0x59f   : > { %2908 = vst.msk [vmem:[#allocation5 + $0x60] sm:$0xff] %vm2901_vm15, %v2890_v10 }
 0x5a0   : > { %2965 = vst.msk [vmem:[#allocation5 + $0x60] sm:$0xff] %vm2958_vm1, %v2947_v51  ;;  %v3452_v30 = vpop.f32.mrf.mxu1 }
 0x5a1   : > { %v3453_v21 = vadd.f32 %v5621_v4, %v3452_v30 }
 0x5a3   : > { %v3482_v26 = vadd.f32 %v3481_v20, %v3453_v21 }
 0x5a4   : > { %v3006_v36 = vpop.permute.xlu2 %3005 }
 0x5a5   : > { %3501 = vst.msk [vmem:[%s5628_s25] sm:$0xff] %vm2186_vm13, %v3482_v26 }
 0x5a6   : > { %3023 = vst.msk [vmem:[#allocation5 + $0x70] sm:$0xff] %vm3015_vm2, %v3006_v36  ;;  %v3313_v63 = vpop.permute.xlu1 %3312  ;;  %v3120_v31 = vpop.permute.xlu0 %3119 }
 0x5a7   : > { %3329 = vst.msk [vmem:[#allocation5 + $0x78] sm:$0xff] %vm941_vm5, %v3313_v63 }
 0x5a8   : > { %v3454_v22 = vpop.f32.mrf.mxu1 }
 0x5a9   : > { %v3455_v19 = vadd.f32 %v5621_v4, %v3454_v22 }
 0x5ab   : > { %v3484_v32 = vadd.f32 %v3483_v40, %v3455_v19 }
 0x5ac   : > { %v3118_v44 = vpop.permute.xlu2 %3117 }
 0x5ad   : > { %3502 = vst.msk [vmem:[%s5628_s25 + $0x8] sm:$0xff] %vm2186_vm13, %v3484_v32 }
 0x5ae   : > { %v3004_v50 = vpop.permute.xlu1 %3003  ;;  %v3345_v25 = vld [vmem:[#allocation5 + $0x78] sm:$0xff] }
 0x5af   : > { %3022 = vst.msk [vmem:[#allocation5 + $0x60] sm:$0xff] %vm3015_vm2, %v3004_v50  ;;  %v3353_v47 = vpack.c.bf16 %v3345_v25, %v3343_v38 }
 0x5b0   : > { %3079 = vst.msk [vmem:[#allocation5 + $0x60] sm:$0xff] %vm3072_vm6, %v3061_v42 }
 0x5b1   : > { %3136 = vst.msk [vmem:[#allocation5 + $0x60] sm:$0xff] %vm3129_vm8, %v3118_v44  ;;  %3782 = vmatmul.msk.bf16.gmra.mxu2 %vm3430_vm7, %v3353_v47 }
 0x5b6   : > { %v3063_v49 = vpop.permute.xlu1 %3062 }
 0x5b7   : > { %3080 = vst.msk [vmem:[#allocation5 + $0x70] sm:$0xff] %vm3072_vm6, %v3063_v49 }
 0x5b8   : > { %3137 = vst.msk [vmem:[#allocation5 + $0x70] sm:$0xff] %vm3129_vm8, %v3120_v31  ;;  %v3342_v14 = vld [vmem:[#allocation5 + $0x60] sm:$0xff] }
 0x5bd   : > { %v3486_v53 = vpop.f32.mrf.mxu2 }
 0x5bf   : > { %v3344_v15 = vld [vmem:[#allocation5 + $0x70] sm:$0xff] }
 0x5c0   : > { %v3352_v54 = vpack.c.bf16 %v3344_v15, %v3342_v14 }
 0x5c2   : > { %3466 = vmatmul.bf16.gmra.mxu1 %v3352_v54 }
 0x5c5   : > { %v3488_v46 = vpop.f32.mrf.mxu2 }
 0x5d7   : > { %v3457_v27 = vpop.f32.mrf.mxu1 }
 0x5d8   : > { %v3458_v28 = vadd.f32 %v5621_v4, %v3457_v27 }
 0x5da   : > { %v3487_v43 = vadd.f32 %v3486_v53, %v3458_v28 }
 0x5dc   : > { %3503 = vst.msk [vmem:[%s5628_s25 + $0x10] sm:$0xff] %vm2186_vm13, %v3487_v43 }
 0x5df   : > { %v3459_v57 = vpop.f32.mrf.mxu1 }
 0x5e0   : > { %v3460_v45 = vadd.f32 %v5621_v4, %v3459_v57 }
 0x5e2   : > { %v3489_v48 = vadd.f32 %v3488_v46, %v3460_v45 }
 0x5e4   : > { %3504 = vst.msk [vmem:[%s5628_s25 + $0x18] sm:$0xff] %vm2186_vm13, %v3489_v48 }
 0x5fc   : > { %v3491_v56 = vpop.f32.mrf.mxu2 }
 0x604   : > { %v3493_v34 = vpop.f32.mrf.mxu2 }
 0x60f   : > { %v3462_v23 = vpop.f32.mrf.mxu1 }
 0x610   : > { %v3463_v33 = vadd.f32 %v5621_v4, %v3462_v23 }
 0x612   : > { %v3492_v11 = vadd.f32 %v3491_v56, %v3463_v33 }
 0x614   : > { %3505 = vst.msk [vmem:[%s5628_s25 + $0x20] sm:$0xff] %vm2186_vm13, %v3492_v11 }
 0x617   : > { %v3464_v52 = vpop.f32.mrf.mxu1 }
 0x618   : > { %v3465_v41 = vadd.f32 %v5621_v4, %v3464_v52 }
 0x61a   : > { %v3494_v59 = vadd.f32 %v3493_v34, %v3465_v41 }
 0x61c   : > { %3506 = vst.msk [vmem:[%s5628_s25 + $0x28] sm:$0xff] %vm2186_vm13, %v3494_v59 }
 0x634   : > { %v3496_v2 = vpop.f32.mrf.mxu2 }
 0x63c   : > { %v3498_v13 = vpop.f32.mrf.mxu2 }
 0x63f   : > { %v3467_v17 = vpop.f32.mrf.mxu1 }
 0x640   : > { %v3468_v39 = vadd.f32 %v5621_v4, %v3467_v17 }
 0x642   : > { %v3497_v16 = vadd.f32 %v3496_v2, %v3468_v39 }
 0x644   : > { %3507 = vst.msk [vmem:[%s5628_s25 + $0x30] sm:$0xff] %vm2186_vm13, %v3497_v16 }
 0x647   : > { %v3469_v3 = vpop.f32.mrf.mxu1 }
 0x648   : > { %v3470_v62 = vadd.f32 %v5621_v4, %v3469_v3 }
 0x64a   : > { %v3499_v8 = vadd.f32 %v3498_v13, %v3470_v62 }
 0x64c   : > { %3508 = vst.msk [vmem:[%s5628_s25 + $0x38] sm:$0xff] %vm2186_vm13, %v3499_v8 }
 0x64d   : > { %3896 = shalt.err (!%p3893_p3)
}
 0x64e   : > { %s3953_s10 = smov 128  }
 0x64f   : > { %3807 = dma.vmem_to_hbm [thread:$0]  (%p4022_p5), %s3523_s8, 1024, %s3525_s9, %s3510_s22, %s3953_s10, %s3953_s10, %s3935_s11  }
 0x650 PF: > { %p3813_p4 = scmp.ge.s32.totalorder %s3931_s21, 2  ;;  %s3539_s25 = sand.u32 1, %s3919_s18  }
 0x651   : > { %s3540_s26 = scalar_lea.sflag [#allocation7], %s3539_s25 }
 0x652   : > { %p3810_p7 = pnand %p3813_p4, %p4026_p6 }
 0x654   : > { %p3811_p8 = pneg %p3810_p7 }
 0x656   : > { %3914 = dma.done.wait (%p3811_p8), %s3540_s26, 1024  }
 0x657   : > { %3916 = vsyncadd (%p3811_p8), %s3540_s26, 4294966272  ;;  %p15_p9 = scmp.ge.s32.totalorder %s4009_s24, 4   ;;  %s5791_s18 = smov %s3923_s19 }
 0x658   : > { %s5792_s19 = smov %s3927_s20  ;;  %s5793_s20 = smov %s4020_s27 }
 0x659   : > { %s5794_s21 = smov %s4009_s24  ;;  %17 = sbr.rel (!%p15_p9) target bundleno = 3 (0x3), region = 238 }
 0x65e   :  { %3546 = vsyncpa [#allocation7], 1 }
 0x65f   :  { %3548 = vsyncpa [#allocation7 + $0x1], 1 }

</bundles_post_ra>
